<compile_context>
chip_gen: v7x
topology: tpu7x:2x2x1
jax: 0.10.0
libtpu: 0.0.40
codegen_flags: <defaults>
</compile_context>

<pallas_src>
import functools
import math

import jax
import jax.numpy as jnp
from jax import lax
from jax.experimental import pallas as pl
from jax.experimental.pallas import tpu as pltpu

_DIMS_A_BT = (((1,), (1,)), ((), ()))   # A @ B.T
_DIMS_AT_B = (((0,), (0,)), ((), ()))   # A.T @ B
_NEG = -1e30


# ----------------------------------------------------------------------------
# The fused forward kernel: one grid step == one GET layer
# ----------------------------------------------------------------------------
def _get_fused_kernel(
    # grid-invariant data / graph structure
    x0_ref, pos0_ref, membT_ref, invcnt_ref, mask_ref, ssrc_ref, sdst_ref,
    sdstt_ref, hmask_ref, hexp_ref, cent_ref, ea_ref,
    # edge preprocessing + pre-LN params (consumed at l == 0 only)
    eng_ref, enb_ref, elw_ref, elb_ref, preg_ref, preb_ref,
    # per-layer params (leading dim indexed by the layer grid axis)
    wqkv_ref, bqkv_ref, wo_ref, bo_ref, wer_ref, ber_ref,
    w1_ref, b1_ref, w2_ref, b2_ref,
    ln0g_ref, ln0b_ref, ln1g_ref, ln1b_ref,
    # outputs
    out_ref, pos_out_ref,
    # persistent VMEM state across grid steps
    x_sc, pos_sc, rs_sc, ea_sc,
    *, n_layers, n_head, n_rbf, cutoff):

    f32 = jnp.float32
    bf16 = jnp.bfloat16
    l = pl.program_id(0)

    membT = membT_ref[...]          # [N, G]
    inv_cnt = invcnt_ref[...]       # [G, 1]
    N, G = membT.shape
    D = x_sc.shape[-1]
    H = n_head
    rbf_gamma = float(n_rbf) / float(cutoff)

    def mm(a, b, dims=None):
        # MXU matmul: bf16 operands, f32 accumulation (weights are already bf16).
        a16 = a.astype(bf16)
        b16 = b.astype(bf16)
        if dims is None:
            return jnp.dot(a16, b16, preferred_element_type=f32)
        return lax.dot_general(a16, b16, dimension_numbers=dims,
                               preferred_element_type=f32)

    def seg_sum(vals):
        # [N, C] -> [G, C] per-graph sums: masked VPU multiply + sublane reduce.
        # TODO(synk): switch to a membership matmul if graphs-per-call (G) grows large.
        rows = [jnp.sum(vals * membT[:, g:g + 1], axis=0, keepdims=True)
                for g in range(G)]
        return jnp.concatenate(rows, axis=0)

    def expand(vg):
        # [G, C] -> [N, C]: graph->node broadcast on the VPU.
        acc = membT[:, 0:1] * vg[0:1, :]
        for g in range(1, G):
            acc = acc + membT[:, g:g + 1] * vg[g:g + 1, :]
        return acc

    def layer_norm_x(xv, gamma, beta):
        mu = jnp.mean(xv, axis=-1, keepdims=True)
        xc = xv - mu
        var = jnp.mean(xc * xc, axis=-1, keepdims=True)
        return xc * lax.rsqrt(var + 1e-5) * gamma + beta

    def pos_norm(pv):
        # EquivariantLayerNorm coordinate branch: per-graph center + RMS rescale.
        center_n = expand(seg_sum(pv) * inv_cnt)
        pc = pv - center_n
        ssq = seg_sum(jnp.sum(pc * pc, axis=-1, keepdims=True)) * inv_cnt
        sigma = jnp.sqrt(ssq / 3.0 + 1e-6)                       # [G, 1]
        return center_n + pc * expand(1.0 / sigma), sigma        # exact reciprocal

    # ---- one-time preprocessing at layer 0: edge LN + linear, pre_layernorm ----
    # TODO(synk): reference LayerNorm takes a per-edge batch id; per-edge LN used.
    @pl.when(l == 0)
    def _init():
        ea0 = ea_ref[...]
        mu = jnp.mean(ea0, axis=-1, keepdims=True)
        eac = ea0 - mu
        var = jnp.mean(eac * eac, axis=-1, keepdims=True)
        ean = eac * lax.rsqrt(var + 1e-5) * eng_ref[...] + enb_ref[...]
        ea_sc[...] = mm(ean, elw_ref[...]) + elb_ref[...]

        x_sc[...] = layer_norm_x(x0_ref[...], preg_ref[...], preb_ref[...])
        p0, s0 = pos_norm(pos0_ref[...])
        pos_sc[...] = p0
        rs_sc[...] = s0

    x = x_sc[...]                   # [N, D]
    pos = pos_sc[...]               # [N, 3]
    ea = ea_sc[...]                 # [E, hid_edge]
    rs = rs_sc[...]                 # [G, 1]
    hmask = hmask_ref[...]          # [H*N, D]
    s_src = ssrc_ref[...]           # [E, N]

    # ---- GETLayer: graph-masked multi-head attention, all heads packed ----------
    # TODO(synk): reference GETLayer not provided; simplified equivariant attention.
    qkv = mm(x, wqkv_ref[0]) + bqkv_ref[0]                        # [N, 3D]
    q = qkv[:, :D]
    k = qkv[:, D:2 * D]
    v = qkv[:, 2 * D:]

    q_stack = jnp.concatenate([q] * H, axis=0) * hmask            # [H*N, D]
    s = mm(q_stack, k, _DIMS_A_BT)                                # [H*N, N] (1/sqrt(dh) in Wq)

    # per-edge attention bias (edge features + RBF(distance)); distances via dense D2
    iprod = lax.dot_general(pos, pos, _DIMS_A_BT,
                            preferred_element_type=f32)           # [N, N]
    ridx = lax.broadcasted_iota(jnp.int32, (N, N), 0)
    cidx = lax.broadcasted_iota(jnp.int32, (N, N), 1)
    diag = jnp.where(ridx == cidx, iprod, 0.0)
    d2 = jnp.maximum(jnp.sum(diag, axis=1, keepdims=True)
                     + jnp.sum(diag, axis=0, keepdims=True) - 2.0 * iprod, 0.0)
    d2_e = jnp.sum(mm(sdst_ref[...], d2) * s_src, axis=-1, keepdims=True)   # [E, 1]
    dist = jnp.sqrt(d2_e + 1e-12)
    rbf = jnp.exp(-rbf_gamma * (dist - cent_ref[...]) ** 2)                 # [E, n_rbf]
    eb = mm(jnp.concatenate([ea, rbf], axis=-1), wer_ref[0]) + ber_ref[0]   # [E, H]
    z = mm(eb, hexp_ref[...]) * sdstt_ref[...]                              # [E, H*N]
    bias = mm(z, s_src, _DIMS_AT_B)                                         # [H*N, N]

    s = s + bias + mask_ref[...]
    m = jnp.max(s, axis=-1, keepdims=True)
    p = jnp.exp(s - m)
    p = p * pl.reciprocal(jnp.sum(p, axis=-1, keepdims=True), approx=True)  # [H*N, N]

    ov = mm(p, v)                                                 # [H*N, D]
    attn_stack = mm(ov * hmask, wo_ref[0])                        # [H*N, D]
    attn = jnp.sum(attn_stack.reshape(H, N, D), axis=0)           # [N, D]
    x = x + attn + bo_ref[0]

    # equivariant coordinate update: sum_j a_ij (pos_i - pos_j)
    a = jnp.sum(p.reshape(H, N, N), axis=0) * (1.0 / H)           # [N, N]
    row = jnp.sum(a, axis=-1, keepdims=True)
    pos = pos + (pos * row - jnp.dot(a, pos, preferred_element_type=f32))

    # ---- layernorm0 ----
    x = layer_norm_x(x, ln0g_ref[0], ln0b_ref[0])
    pos, sg0 = pos_norm(pos)

    # ---- EquivariantFFN: 2-layer SiLU MLP, residual (dropout = identity in eval) ----
    # TODO(synk): reference EquivariantFFN not provided; invariant MLP used.
    hmid = mm(x, w1_ref[0]) + b1_ref[0]
    hmid = hmid * jax.nn.sigmoid(hmid)
    x = x + mm(hmid, w2_ref[0]) + b2_ref[0]

    # ---- layernorm1 ----
    x = layer_norm_x(x, ln1g_ref[0], ln1b_ref[0])
    pos, sg1 = pos_norm(pos)

    rs = rs * sg0 * sg1
    x_sc[...] = x
    pos_sc[...] = pos
    rs_sc[...] = rs

    # ---- recover_scale + global max/mean pooling on the last layer --------------
    @pl.when(l == n_layers - 1)
    def _final():
        center_n = expand(seg_sum(pos) * inv_cnt)
        # reference: Z = Z_c + (Z - Z_c) / record_scale   (exact reciprocal)
        pos_out_ref[...] = center_n + (pos - center_n) * expand(1.0 / rs)

        meanp = seg_sum(x) * inv_cnt                                         # [G, D]
        maxs = [jnp.max(x + (1.0 - membT[:, g:g + 1]) * _NEG,
                        axis=0, keepdims=True) for g in range(G)]
        maxp = jnp.concatenate(maxs, axis=0)                                 # [G, D]
        out_ref[...] = jnp.concatenate([maxp, meanp], axis=-1)               # one store


# ----------------------------------------------------------------------------
# Wrapper: graph preprocessing in JAX, one pallas_call with a layer grid
# ----------------------------------------------------------------------------
def get_forward(params, x, pos, edge_attr, batch, edge_index, *,
                num_graphs, n_layers, n_head, n_rbf, cutoff, d_edge):
    assert d_edge != 0, "TODO(synk): d_edge == 0 path not implemented"
    f32 = jnp.float32
    N, D = x.shape
    G = num_graphs
    H = n_head
    dh = D // H
    assert D % H == 0
    E = edge_index.shape[1]
    hn = H * N
    hid_edge = params["edge_lin_b"].shape[-1]

    # graph-structure preprocessing (membership / one-hot incidence / masks)
    membT = (batch[:, None] == jnp.arange(G)[None, :]).astype(f32)       # [N, G]
    inv_cnt = 1.0 / jnp.maximum(jnp.sum(membT, axis=0), 1.0)[:, None]    # [G, 1]

    src, dst = edge_index[0], edge_index[1]
    s_src = (jnp.arange(N)[None, :] == src[:, None]).astype(f32)         # [E, N]
    s_dst = (jnp.arange(N)[None, :] == dst[:, None]).astype(f32)         # [E, N]
    s_dst_t = jnp.tile(s_dst, (1, H))                                     # [E, H*N]

    adj = jnp.zeros((N, N), f32).at[dst, src].set(1.0)
    mask = jnp.maximum(adj, jnp.eye(N, dtype=f32))                        # keep self-edge
    mask_pack = jnp.tile((1.0 - mask) * _NEG, (H, 1))                     # [H*N, N]

    heads = jnp.arange(hn) // N                                           # packed row -> head
    head_mask = (heads[:, None] ==
                 (jnp.arange(D) // dh)[None, :]).astype(f32)              # [H*N, D]
    head_expand = (jnp.arange(H)[:, None] == heads[None, :]).astype(f32)  # [H, H*N]

    centers = jnp.linspace(0.0, cutoff, n_rbf, dtype=f32).reshape(1, n_rbf)

    args = (
        x.astype(f32), pos.astype(f32), membT, inv_cnt, mask_pack, s_src, s_dst,
        s_dst_t, head_mask, head_expand, centers, edge_attr.astype(f32),
        params["edge_norm_g"], params["edge_norm_b"],
        params["edge_lin_w"], params["edge_lin_b"],
        params["pre_ln_g"], params["pre_ln_b"],
        params["wqkv"], params["bqkv"], params["wo"], params["bo"],
        params["wer"], params["ber"], params["w1"], params["b1"],
        params["w2"], params["b2"],
        params["ln0_g"], params["ln0_b"], params["ln1_g"], params["ln1_b"],
    )
    n_invariant = 18

    def inv_spec(a):
        zeros = (0,) * a.ndim
        return pl.BlockSpec(tuple(a.shape), lambda l: zeros)

    def lyr_spec(a):
        tail = (0,) * (a.ndim - 1)
        return pl.BlockSpec((1,) + tuple(a.shape[1:]), lambda l: (l,) + tail)

    in_specs = ([inv_spec(a) for a in args[:n_invariant]]
                + [lyr_spec(a) for a in args[n_invariant:]])

    kernel = functools.partial(_get_fused_kernel, n_layers=n_layers,
                               n_head=n_head, n_rbf=n_rbf, cutoff=cutoff)

    out, pos_out = pl.pallas_call(
        kernel,
        out_shape=(jax.ShapeDtypeStruct((G, 2 * D), f32),
                   jax.ShapeDtypeStruct((N, 3), f32)),
        grid_spec=pltpu.PrefetchScalarGridSpec(
            num_scalar_prefetch=0,
            grid=(n_layers,),
            in_specs=in_specs,
            out_specs=(pl.BlockSpec((G, 2 * D), lambda l: (0, 0)),
                       pl.BlockSpec((N, 3), lambda l: (0, 0))),
            scratch_shapes=[pltpu.VMEM((N, D), f32),
                            pltpu.VMEM((N, 3), f32),
                            pltpu.VMEM((G, 1), f32),
                            pltpu.VMEM((E, hid_edge), f32)]),
        compiler_params=pltpu.CompilerParams(
            dimension_semantics=("arbitrary",),
            vmem_limit_bytes=32 * 1024 * 1024),
    )(*args)

    return out[:, None, :], pos_out    # [G, 1, 2D], [N, 3]


# ----------------------------------------------------------------------------
# Deterministic parameter initialization (stacked per-layer, weights in bf16)
# ----------------------------------------------------------------------------
def init_params(key, D, n_rbf, d_edge, hid_edge, n_layers, n_head):
    bf16 = jnp.bfloat16
    dh = D // n_head
    inv_sqrt_dh = 1.0 / math.sqrt(dh)

    def dense(k, fin, fout):
        k1, k2 = jax.random.split(k)
        lim = 1.0 / math.sqrt(fin)
        w = jax.random.uniform(k1, (fin, fout), jnp.float32, -lim, lim)
        b = jax.random.uniform(k2, (fout,), jnp.float32, -lim, lim)
        return w, b

    keys = iter(jax.random.split(key, 2 + 8 * n_layers))
    p = {}
    p["edge_norm_g"] = jnp.ones((1, d_edge), jnp.float32)
    p["edge_norm_b"] = jnp.zeros((1, d_edge), jnp.float32)
    w, b = dense(next(keys), d_edge, hid_edge)
    p["edge_lin_w"], p["edge_lin_b"] = w.astype(bf16), b.reshape(1, -1)

    wqkv, bqkv, wo, bo, wer, ber, w1, b1, w2, b2 = ([] for _ in range(10))
    for _ in range(n_layers):
        wq, bq = dense(next(keys), D, D)
        wk, bk = dense(next(keys), D, D)
        wv, bv = dense(next(keys), D, D)
        wq = wq * inv_sqrt_dh          # fold attention score scaling into Wq / bq
        bq = bq * inv_sqrt_dh
        wqkv.append(jnp.concatenate([wq, wk, wv], axis=1))                # [D, 3D]
        bqkv.append(jnp.concatenate([bq, bk, bv]).reshape(1, -1))         # [1, 3D]
        w_, b_ = dense(next(keys), D, D);       wo.append(w_); bo.append(b_.reshape(1, -1))
        we_, be_ = dense(next(keys), hid_edge, n_head)
        wr_, br_ = dense(next(keys), n_rbf, n_head)
        wer.append(jnp.concatenate([we_, wr_], axis=0))                   # [hid+n_rbf, H]
        ber.append((be_ + br_).reshape(1, -1))                            # [1, H]
        w_, b_ = dense(next(keys), D, 2 * D);   w1.append(w_); b1.append(b_.reshape(1, -1))
        w_, b_ = dense(next(keys), 2 * D, D);   w2.append(w_); b2.append(b_.reshape(1, -1))

    stack = lambda xs: jnp.stack(xs, axis=0)
    stack16 = lambda xs: jnp.stack(xs, axis=0).astype(bf16)
    p.update(wqkv=stack16(wqkv), bqkv=stack(bqkv), wo=stack16(wo), bo=stack(bo),
             wer=stack16(wer), ber=stack(ber),
             w1=stack16(w1), b1=stack(b1), w2=stack16(w2), b2=stack(b2))
    p["pre_ln_g"] = jnp.ones((1, D), jnp.float32)
    p["pre_ln_b"] = jnp.zeros((1, D), jnp.float32)
    p["ln0_g"] = jnp.ones((n_layers, 1, D), jnp.float32)
    p["ln0_b"] = jnp.zeros((n_layers, 1, D), jnp.float32)
    p["ln1_g"] = jnp.ones((n_layers, 1, D), jnp.float32)
    p["ln1_b"] = jnp.zeros((n_layers, 1, D), jnp.float32)
    return p


# ----------------------------------------------------------------------------
# Main
# ----------------------------------------------------------------------------
if __name__ == "__main__":
    G = 2                  # num_graphs
    nodes_per_graph = 8
    N = G * nodes_per_graph
    D = 32                 # d_hidden
    n_rbf = 16
    d_edge = 8
    hid_edge = 16
    n_layers = 3
    n_head = 4
    cutoff = 7.0

    key = jax.random.PRNGKey(0)
    k0, k1, k2, k3 = jax.random.split(key, 4)

    x = jax.random.normal(k0, (N, D), jnp.float32)
    pos = jax.random.normal(k1, (N, 3), jnp.float32) * 2.0
    batch = jnp.repeat(jnp.arange(G, dtype=jnp.int32), nodes_per_graph)

    # bidirectional chain edges inside each graph
    src_list, dst_list = [], []
    for g in range(G):
        off = g * nodes_per_graph
        for i in range(nodes_per_graph - 1):
            src_list += [off + i, off + i + 1]
            dst_list += [off + i + 1, off + i]
    edge_index = jnp.array([src_list, dst_list], dtype=jnp.int32)
    E = edge_index.shape[1]
    edge_attr = jax.random.normal(k2, (E, d_edge), jnp.float32)

    params = init_params(k3, D, n_rbf, d_edge, hid_edge, n_layers, n_head)

    fwd = jax.jit(get_forward,
                  static_argnames=("num_graphs", "n_layers", "n_head",
                                   "n_rbf", "cutoff", "d_edge"))
    out, pos_out = fwd(params, x, pos, edge_attr, batch, edge_index,
                       num_graphs=G, n_layers=n_layers, n_head=n_head,
                       n_rbf=n_rbf, cutoff=cutoff, d_edge=d_edge)
    out = jax.block_until_ready(out)
    assert out.shape == (G, 1, 2 * D), out.shape
    assert pos_out.shape == (N, 3), pos_out.shape
    assert bool(jnp.all(jnp.isfinite(out)))
    assert bool(jnp.all(jnp.isfinite(pos_out)))
    print("KERNEL_OK")
</pallas_src>

<mosaic_0001>
module attributes {stable_mosaic.version = 11 : i64} {
  func.func @_get_fused_kernel(%arg0: i32, %arg1: memref<16x32xf32, #tpu.memory_space<vmem>>, %arg2: memref<16x3xf32, #tpu.memory_space<vmem>>, %arg3: memref<16x2xf32, #tpu.memory_space<vmem>>, %arg4: memref<2x1xf32, #tpu.memory_space<vmem>>, %arg5: memref<64x16xf32, #tpu.memory_space<vmem>>, %arg6: memref<28x16xf32, #tpu.memory_space<vmem>>, %arg7: memref<28x16xf32, #tpu.memory_space<vmem>>, %arg8: memref<28x64xf32, #tpu.memory_space<vmem>>, %arg9: memref<64x32xf32, #tpu.memory_space<vmem>>, %arg10: memref<4x64xf32, #tpu.memory_space<vmem>>, %arg11: memref<1x16xf32, #tpu.memory_space<vmem>>, %arg12: memref<28x8xf32, #tpu.memory_space<vmem>>, %arg13: memref<1x8xf32, #tpu.memory_space<vmem>>, %arg14: memref<1x8xf32, #tpu.memory_space<vmem>>, %arg15: memref<8x16xbf16, #tpu.memory_space<vmem>>, %arg16: memref<1x16xf32, #tpu.memory_space<vmem>>, %arg17: memref<1x32xf32, #tpu.memory_space<vmem>>, %arg18: memref<1x32xf32, #tpu.memory_space<vmem>>, %arg19: memref<1x32x96xbf16, #tpu.memory_space<vmem>>, %arg20: memref<1x1x96xf32, #tpu.memory_space<vmem>>, %arg21: memref<1x32x32xbf16, #tpu.memory_space<vmem>>, %arg22: memref<1x1x32xf32, #tpu.memory_space<vmem>>, %arg23: memref<1x32x4xbf16, #tpu.memory_space<vmem>>, %arg24: memref<1x1x4xf32, #tpu.memory_space<vmem>>, %arg25: memref<1x32x64xbf16, #tpu.memory_space<vmem>>, %arg26: memref<1x1x64xf32, #tpu.memory_space<vmem>>, %arg27: memref<1x64x32xbf16, #tpu.memory_space<vmem>>, %arg28: memref<1x1x32xf32, #tpu.memory_space<vmem>>, %arg29: memref<1x1x32xf32, #tpu.memory_space<vmem>>, %arg30: memref<1x1x32xf32, #tpu.memory_space<vmem>>, %arg31: memref<1x1x32xf32, #tpu.memory_space<vmem>>, %arg32: memref<1x1x32xf32, #tpu.memory_space<vmem>>, %arg33: memref<2x64xf32, #tpu.memory_space<vmem>>, %arg34: memref<16x3xf32, #tpu.memory_space<vmem>>, %arg35: memref<16x32xf32, #tpu.memory_space<vmem>>, %arg36: memref<16x3xf32, #tpu.memory_space<vmem>>, %arg37: memref<2x1xf32, #tpu.memory_space<vmem>>, %arg38: memref<28x16xf32, #tpu.memory_space<vmem>>) attributes {dimension_semantics = [#tpu.dimension_semantics<arbitrary>], iteration_bounds = array<i64: 3>, scalar_prefetch = 0 : i64, scratch_operands = 4 : i64, tpu.core_type = #tpu.core_type<tc>, window_params = [{pipeline_mode = #tpu.pipeline_mode<synchronous>, transform_indices = @transform_0, window_bounds = array<i64: 16, 32>}, {pipeline_mode = #tpu.pipeline_mode<synchronous>, transform_indices = @transform_1, window_bounds = array<i64: 16, 3>}, {pipeline_mode = #tpu.pipeline_mode<synchronous>, transform_indices = @transform_2, window_bounds = array<i64: 16, 2>}, {pipeline_mode = #tpu.pipeline_mode<synchronous>, transform_indices = @transform_3, window_bounds = array<i64: 2, 1>}, {pipeline_mode = #tpu.pipeline_mode<synchronous>, transform_indices = @transform_4, window_bounds = array<i64: 64, 16>}, {pipeline_mode = #tpu.pipeline_mode<synchronous>, transform_indices = @transform_5, window_bounds = array<i64: 28, 16>}, {pipeline_mode = #tpu.pipeline_mode<synchronous>, transform_indices = @transform_6, window_bounds = array<i64: 28, 16>}, {pipeline_mode = #tpu.pipeline_mode<synchronous>, transform_indices = @transform_7, window_bounds = array<i64: 28, 64>}, {pipeline_mode = #tpu.pipeline_mode<synchronous>, transform_indices = @transform_8, window_bounds = array<i64: 64, 32>}, {pipeline_mode = #tpu.pipeline_mode<synchronous>, transform_indices = @transform_9, window_bounds = array<i64: 4, 64>}, {pipeline_mode = #tpu.pipeline_mode<synchronous>, transform_indices = @transform_10, window_bounds = array<i64: 1, 16>}, {pipeline_mode = #tpu.pipeline_mode<synchronous>, transform_indices = @transform_11, window_bounds = array<i64: 28, 8>}, {pipeline_mode = #tpu.pipeline_mode<synchronous>, transform_indices = @transform_12, window_bounds = array<i64: 1, 8>}, {pipeline_mode = #tpu.pipeline_mode<synchronous>, transform_indices = @transform_13, window_bounds = array<i64: 1, 8>}, {pipeline_mode = #tpu.pipeline_mode<synchronous>, transform_indices = @transform_14, window_bounds = array<i64: 8, 16>}, {pipeline_mode = #tpu.pipeline_mode<synchronous>, transform_indices = @transform_15, window_bounds = array<i64: 1, 16>}, {pipeline_mode = #tpu.pipeline_mode<synchronous>, transform_indices = @transform_16, window_bounds = array<i64: 1, 32>}, {pipeline_mode = #tpu.pipeline_mode<synchronous>, transform_indices = @transform_17, window_bounds = array<i64: 1, 32>}, {transform_indices = @transform_18, window_bounds = array<i64: 1, 32, 96>}, {transform_indices = @transform_19, window_bounds = array<i64: 1, 1, 96>}, {transform_indices = @transform_20, window_bounds = array<i64: 1, 32, 32>}, {transform_indices = @transform_21, window_bounds = array<i64: 1, 1, 32>}, {transform_indices = @transform_22, window_bounds = array<i64: 1, 32, 4>}, {transform_indices = @transform_23, window_bounds = array<i64: 1, 1, 4>}, {transform_indices = @transform_24, window_bounds = array<i64: 1, 32, 64>}, {transform_indices = @transform_25, window_bounds = array<i64: 1, 1, 64>}, {transform_indices = @transform_26, window_bounds = array<i64: 1, 64, 32>}, {transform_indices = @transform_27, window_bounds = array<i64: 1, 1, 32>}, {transform_indices = @transform_28, window_bounds = array<i64: 1, 1, 32>}, {transform_indices = @transform_29, window_bounds = array<i64: 1, 1, 32>}, {transform_indices = @transform_30, window_bounds = array<i64: 1, 1, 32>}, {transform_indices = @transform_31, window_bounds = array<i64: 1, 1, 32>}, {pipeline_mode = #tpu.pipeline_mode<synchronous>, transform_indices = @transform_32, window_bounds = array<i64: 2, 64>}, {pipeline_mode = #tpu.pipeline_mode<synchronous>, transform_indices = @transform_33, window_bounds = array<i64: 16, 3>}]} {
    %c0 = arith.constant 0 : index
    %c0_0 = arith.constant 0 : index
    %0 = vector.load %arg3[%c0, %c0_0] : memref<16x2xf32, #tpu.memory_space<vmem>>, vector<16x2xf32>
    %c0_1 = arith.constant 0 : index
    %c0_2 = arith.constant 0 : index
    %1 = vector.load %arg4[%c0_1, %c0_2] : memref<2x1xf32, #tpu.memory_space<vmem>>, vector<2x1xf32>
    %c0_i32 = arith.constant 0 : i32
    %2 = arith.cmpi eq, %arg0, %c0_i32 : i32
    %3 = arith.extui %2 : i1 to i32
    %c0_i32_3 = arith.constant 0 : i32
    %4 = arith.cmpi ne, %3, %c0_i32_3 : i32
    scf.if %4 {
      %c0_127 = arith.constant 0 : index
      %c0_128 = arith.constant 0 : index
      %313 = vector.load %arg12[%c0_127, %c0_128] : memref<28x8xf32, #tpu.memory_space<vmem>>, vector<28x8xf32>
      %cst_129 = arith.constant dense<0.000000e+00> : vector<28xf32>
      %314 = vector.multi_reduction <add>, %313, %cst_129 [1] : vector<28x8xf32> to vector<28xf32>
      %315 = vector.shape_cast %314 : vector<28xf32> to vector<28x1xf32>
      %cst_130 = arith.constant 8.000000e+00 : f32
      %316 = vector.broadcast %cst_130 : f32 to vector<28x1xf32>
      %317 = arith.divf %315, %316 : vector<28x1xf32>
      %318 = vector.broadcast %317 : vector<28x1xf32> to vector<28x8xf32>
      %319 = arith.subf %313, %318 : vector<28x8xf32>
      %320 = arith.mulf %319, %319 : vector<28x8xf32>
      %cst_131 = arith.constant dense<0.000000e+00> : vector<28xf32>
      %321 = vector.multi_reduction <add>, %320, %cst_131 [1] : vector<28x8xf32> to vector<28xf32>
      %322 = vector.shape_cast %321 : vector<28xf32> to vector<28x1xf32>
      %cst_132 = arith.constant 8.000000e+00 : f32
      %323 = vector.broadcast %cst_132 : f32 to vector<28x1xf32>
      %324 = arith.divf %322, %323 : vector<28x1xf32>
      %cst_133 = arith.constant 9.99999974E-6 : f32
      %325 = vector.broadcast %cst_133 : f32 to vector<28x1xf32>
      %326 = arith.addf %324, %325 : vector<28x1xf32>
      %327 = math.rsqrt %326 : vector<28x1xf32>
      %328 = vector.broadcast %327 : vector<28x1xf32> to vector<28x8xf32>
      %329 = arith.mulf %319, %328 : vector<28x8xf32>
      %c0_134 = arith.constant 0 : index
      %c0_135 = arith.constant 0 : index
      %330 = vector.load %arg13[%c0_134, %c0_135] : memref<1x8xf32, #tpu.memory_space<vmem>>, vector<1x8xf32>
      %331 = vector.broadcast %330 : vector<1x8xf32> to vector<28x8xf32>
      %332 = arith.mulf %329, %331 : vector<28x8xf32>
      %c0_136 = arith.constant 0 : index
      %c0_137 = arith.constant 0 : index
      %333 = vector.load %arg14[%c0_136, %c0_137] : memref<1x8xf32, #tpu.memory_space<vmem>>, vector<1x8xf32>
      %334 = vector.broadcast %333 : vector<1x8xf32> to vector<28x8xf32>
      %335 = arith.addf %332, %334 : vector<28x8xf32>
      %c0_138 = arith.constant 0 : index
      %c0_139 = arith.constant 0 : index
      %336 = vector.load %arg15[%c0_138, %c0_139] : memref<8x16xbf16, #tpu.memory_space<vmem>>, vector<8x16xbf16>
      %337 = arith.truncf %335 : vector<28x8xf32> to vector<28x8xbf16>
      %cst_140 = arith.constant dense<0.000000e+00> : vector<28x16xf32>
      %338 = tpu.matmul %337, %336, %cst_140 {dimension_numbers = #tpu.dot_dimension_numbers<[1], [0], [0], [1], [0, 0, 1, 1], [], []>} : vector<28x8xbf16>, vector<8x16xbf16>, vector<28x16xf32> -> vector<28x16xf32>
      %c0_141 = arith.constant 0 : index
      %c0_142 = arith.constant 0 : index
      %339 = vector.load %arg16[%c0_141, %c0_142] : memref<1x16xf32, #tpu.memory_space<vmem>>, vector<1x16xf32>
      %340 = vector.broadcast %339 : vector<1x16xf32> to vector<28x16xf32>
      %341 = arith.addf %338, %340 : vector<28x16xf32>
      %c0_143 = arith.constant 0 : index
      %c0_144 = arith.constant 0 : index
      %342 = vector.load %arg38[%c0_143, %c0_144] : memref<28x16xf32, #tpu.memory_space<vmem>>, vector<28x16xf32>
      tpu.vector_store %arg38[%c0_143, %c0_144], %341 {strides = array<i32>} : memref<28x16xf32, #tpu.memory_space<vmem>>, vector<28x16xf32>,
      %c0_145 = arith.constant 0 : index
      %c0_146 = arith.constant 0 : index
      %343 = vector.load %arg1[%c0_145, %c0_146] : memref<16x32xf32, #tpu.memory_space<vmem>>, vector<16x32xf32>
      %c0_147 = arith.constant 0 : index
      %c0_148 = arith.constant 0 : index
      %344 = vector.load %arg17[%c0_147, %c0_148] : memref<1x32xf32, #tpu.memory_space<vmem>>, vector<1x32xf32>
      %c0_149 = arith.constant 0 : index
      %c0_150 = arith.constant 0 : index
      %345 = vector.load %arg18[%c0_149, %c0_150] : memref<1x32xf32, #tpu.memory_space<vmem>>, vector<1x32xf32>
      %cst_151 = arith.constant dense<0.000000e+00> : vector<16xf32>
      %346 = vector.multi_reduction <add>, %343, %cst_151 [1] : vector<16x32xf32> to vector<16xf32>
      %347 = vector.shape_cast %346 : vector<16xf32> to vector<16x1xf32>
      %cst_152 = arith.constant 3.200000e+01 : f32
      %348 = vector.broadcast %cst_152 : f32 to vector<16x1xf32>
      %349 = arith.divf %347, %348 : vector<16x1xf32>
      %350 = vector.broadcast %349 : vector<16x1xf32> to vector<16x32xf32>
      %351 = arith.subf %343, %350 : vector<16x32xf32>
      %352 = arith.mulf %351, %351 : vector<16x32xf32>
      %cst_153 = arith.constant dense<0.000000e+00> : vector<16xf32>
      %353 = vector.multi_reduction <add>, %352, %cst_153 [1] : vector<16x32xf32> to vector<16xf32>
      %354 = vector.shape_cast %353 : vector<16xf32> to vector<16x1xf32>
      %cst_154 = arith.constant 3.200000e+01 : f32
      %355 = vector.broadcast %cst_154 : f32 to vector<16x1xf32>
      %356 = arith.divf %354, %355 : vector<16x1xf32>
      %cst_155 = arith.constant 9.99999974E-6 : f32
      %357 = vector.broadcast %cst_155 : f32 to vector<16x1xf32>
      %358 = arith.addf %356, %357 : vector<16x1xf32>
      %359 = math.rsqrt %358 : vector<16x1xf32>
      %360 = vector.broadcast %359 : vector<16x1xf32> to vector<16x32xf32>
      %361 = arith.mulf %351, %360 : vector<16x32xf32>
      %362 = vector.broadcast %344 : vector<1x32xf32> to vector<16x32xf32>
      %363 = arith.mulf %361, %362 : vector<16x32xf32>
      %364 = vector.broadcast %345 : vector<1x32xf32> to vector<16x32xf32>
      %365 = arith.addf %363, %364 : vector<16x32xf32>
      %c0_156 = arith.constant 0 : index
      %c0_157 = arith.constant 0 : index
      %366 = vector.load %arg35[%c0_156, %c0_157] : memref<16x32xf32, #tpu.memory_space<vmem>>, vector<16x32xf32>
      tpu.vector_store %arg35[%c0_156, %c0_157], %365 {strides = array<i32>} : memref<16x32xf32, #tpu.memory_space<vmem>>, vector<16x32xf32>,
      %c0_158 = arith.constant 0 : index
      %c0_159 = arith.constant 0 : index
      %367 = vector.load %arg2[%c0_158, %c0_159] : memref<16x3xf32, #tpu.memory_space<vmem>>, vector<16x3xf32>
      %368 = vector.extract_strided_slice %0 {offsets = [0, 0], sizes = [16, 1], strides = [1, 1]} : vector<16x2xf32> to vector<16x1xf32>
      %369 = vector.broadcast %368 : vector<16x1xf32> to vector<16x3xf32>
      %370 = arith.mulf %367, %369 : vector<16x3xf32>
      %cst_160 = arith.constant dense<0.000000e+00> : vector<3xf32>
      %371 = vector.multi_reduction <add>, %370, %cst_160 [0] : vector<16x3xf32> to vector<3xf32>
      %372 = vector.shape_cast %371 : vector<3xf32> to vector<1x3xf32>
      %373 = vector.extract_strided_slice %0 {offsets = [0, 1], sizes = [16, 1], strides = [1, 1]} : vector<16x2xf32> to vector<16x1xf32>
      %374 = vector.broadcast %373 : vector<16x1xf32> to vector<16x3xf32>
      %375 = arith.mulf %367, %374 : vector<16x3xf32>
      %cst_161 = arith.constant dense<0.000000e+00> : vector<3xf32>
      %376 = vector.multi_reduction <add>, %375, %cst_161 [0] : vector<16x3xf32> to vector<3xf32>
      %377 = vector.shape_cast %376 : vector<3xf32> to vector<1x3xf32>
      %378 = tpu.concatenate %372, %377 in 0 : vector<1x3xf32>, vector<1x3xf32> -> vector<2x3xf32>
      %379 = vector.broadcast %1 : vector<2x1xf32> to vector<2x3xf32>
      %380 = arith.mulf %378, %379 : vector<2x3xf32>
      %381 = vector.extract_strided_slice %0 {offsets = [0, 0], sizes = [16, 1], strides = [1, 1]} : vector<16x2xf32> to vector<16x1xf32>
      %382 = vector.extract_strided_slice %380 {offsets = [0, 0], sizes = [1, 3], strides = [1, 1]} : vector<2x3xf32> to vector<1x3xf32>
      %383 = vector.broadcast %381 : vector<16x1xf32> to vector<16x3xf32>
      %384 = vector.broadcast %382 : vector<1x3xf32> to vector<16x3xf32>
      %385 = arith.mulf %383, %384 : vector<16x3xf32>
      %386 = vector.extract_strided_slice %0 {offsets = [0, 1], sizes = [16, 1], strides = [1, 1]} : vector<16x2xf32> to vector<16x1xf32>
      %387 = vector.extract_strided_slice %380 {offsets = [1, 0], sizes = [1, 3], strides = [1, 1]} : vector<2x3xf32> to vector<1x3xf32>
      %388 = vector.broadcast %386 : vector<16x1xf32> to vector<16x3xf32>
      %389 = vector.broadcast %387 : vector<1x3xf32> to vector<16x3xf32>
      %390 = arith.mulf %388, %389 : vector<16x3xf32>
      %391 = arith.addf %385, %390 : vector<16x3xf32>
      %392 = arith.subf %367, %391 : vector<16x3xf32>
      %393 = arith.mulf %392, %392 : vector<16x3xf32>
      %cst_162 = arith.constant dense<0.000000e+00> : vector<16xf32>
      %394 = vector.multi_reduction <add>, %393, %cst_162 [1] : vector<16x3xf32> to vector<16xf32>
      %395 = vector.shape_cast %394 : vector<16xf32> to vector<16x1xf32>
      %396 = vector.extract_strided_slice %0 {offsets = [0, 0], sizes = [16, 1], strides = [1, 1]} : vector<16x2xf32> to vector<16x1xf32>
      %397 = arith.mulf %395, %396 : vector<16x1xf32>
      %cst_163 = arith.constant dense<0.000000e+00> : vector<1xf32>
      %398 = vector.multi_reduction <add>, %397, %cst_163 [0] : vector<16x1xf32> to vector<1xf32>
      %399 = vector.shape_cast %398 : vector<1xf32> to vector<1x1xf32>
      %400 = vector.extract_strided_slice %0 {offsets = [0, 1], sizes = [16, 1], strides = [1, 1]} : vector<16x2xf32> to vector<16x1xf32>
      %401 = arith.mulf %395, %400 : vector<16x1xf32>
      %cst_164 = arith.constant dense<0.000000e+00> : vector<1xf32>
      %402 = vector.multi_reduction <add>, %401, %cst_164 [0] : vector<16x1xf32> to vector<1xf32>
      %403 = vector.shape_cast %402 : vector<1xf32> to vector<1x1xf32>
      %404 = tpu.concatenate %399, %403 in 0 : vector<1x1xf32>, vector<1x1xf32> -> vector<2x1xf32>
      %405 = arith.mulf %404, %1 : vector<2x1xf32>
      %cst_165 = arith.constant 3.000000e+00 : f32
      %406 = vector.broadcast %cst_165 : f32 to vector<2x1xf32>
      %407 = arith.divf %405, %406 : vector<2x1xf32>
      %cst_166 = arith.constant 9.99999997E-7 : f32
      %408 = vector.broadcast %cst_166 : f32 to vector<2x1xf32>
      %409 = arith.addf %407, %408 : vector<2x1xf32>
      %410 = math.sqrt %409 : vector<2x1xf32>
      %cst_167 = arith.constant 1.000000e+00 : f32
      %411 = vector.broadcast %cst_167 : f32 to vector<2x1xf32>
      %412 = arith.divf %411, %410 : vector<2x1xf32>
      %413 = vector.extract_strided_slice %0 {offsets = [0, 0], sizes = [16, 1], strides = [1, 1]} : vector<16x2xf32> to vector<16x1xf32>
      %414 = vector.extract_strided_slice %412 {offsets = [0, 0], sizes = [1, 1], strides = [1, 1]} : vector<2x1xf32> to vector<1x1xf32>
      %415 = vector.broadcast %414 : vector<1x1xf32> to vector<16x1xf32>
      %416 = arith.mulf %413, %415 : vector<16x1xf32>
      %417 = vector.extract_strided_slice %0 {offsets = [0, 1], sizes = [16, 1], strides = [1, 1]} : vector<16x2xf32> to vector<16x1xf32>
      %418 = vector.extract_strided_slice %412 {offsets = [1, 0], sizes = [1, 1], strides = [1, 1]} : vector<2x1xf32> to vector<1x1xf32>
      %419 = vector.broadcast %418 : vector<1x1xf32> to vector<16x1xf32>
      %420 = arith.mulf %417, %419 : vector<16x1xf32>
      %421 = arith.addf %416, %420 : vector<16x1xf32>
      %422 = vector.broadcast %421 : vector<16x1xf32> to vector<16x3xf32>
      %423 = arith.mulf %392, %422 : vector<16x3xf32>
      %424 = arith.addf %391, %423 : vector<16x3xf32>
      %c0_168 = arith.constant 0 : index
      %c0_169 = arith.constant 0 : index
      %425 = vector.load %arg36[%c0_168, %c0_169] : memref<16x3xf32, #tpu.memory_space<vmem>>, vector<16x3xf32>
      tpu.vector_store %arg36[%c0_168, %c0_169], %424 {strides = array<i32>} : memref<16x3xf32, #tpu.memory_space<vmem>>, vector<16x3xf32>,
      %c0_170 = arith.constant 0 : index
      %c0_171 = arith.constant 0 : index
      %426 = vector.load %arg37[%c0_170, %c0_171] : memref<2x1xf32, #tpu.memory_space<vmem>>, vector<2x1xf32>
      tpu.vector_store %arg37[%c0_170, %c0_171], %410 {strides = array<i32>} : memref<2x1xf32, #tpu.memory_space<vmem>>, vector<2x1xf32>,
    } else {
    }
    %c0_4 = arith.constant 0 : index
    %c0_5 = arith.constant 0 : index
    %5 = vector.load %arg35[%c0_4, %c0_5] : memref<16x32xf32, #tpu.memory_space<vmem>>, vector<16x32xf32>
    %c0_6 = arith.constant 0 : index
    %c0_7 = arith.constant 0 : index
    %6 = vector.load %arg36[%c0_6, %c0_7] : memref<16x3xf32, #tpu.memory_space<vmem>>, vector<16x3xf32>
    %c0_8 = arith.constant 0 : index
    %c0_9 = arith.constant 0 : index
    %7 = vector.load %arg38[%c0_8, %c0_9] : memref<28x16xf32, #tpu.memory_space<vmem>>, vector<28x16xf32>
    %c0_10 = arith.constant 0 : index
    %c0_11 = arith.constant 0 : index
    %8 = vector.load %arg37[%c0_10, %c0_11] : memref<2x1xf32, #tpu.memory_space<vmem>>, vector<2x1xf32>
    %c0_12 = arith.constant 0 : index
    %c0_13 = arith.constant 0 : index
    %9 = vector.load %arg9[%c0_12, %c0_13] : memref<64x32xf32, #tpu.memory_space<vmem>>, vector<64x32xf32>
    %c0_14 = arith.constant 0 : index
    %c0_15 = arith.constant 0 : index
    %10 = vector.load %arg6[%c0_14, %c0_15] : memref<28x16xf32, #tpu.memory_space<vmem>>, vector<28x16xf32>
    %c0_16 = arith.constant 0 : index
    %c0_17 = arith.constant 0 : index
    %c0_18 = arith.constant 0 : index
    %11 = vector.load %arg19[%c0_16, %c0_17, %c0_18] : memref<1x32x96xbf16, #tpu.memory_space<vmem>>, vector<1x32x96xbf16>
    %12 = vector.shape_cast %11 : vector<1x32x96xbf16> to vector<32x96xbf16>
    %13 = arith.truncf %5 : vector<16x32xf32> to vector<16x32xbf16>
    %cst = arith.constant dense<0.000000e+00> : vector<16x96xf32>
    %14 = tpu.matmul %13, %12, %cst {dimension_numbers = #tpu.dot_dimension_numbers<[1], [0], [0], [1], [0, 0, 1, 1], [], []>} : vector<16x32xbf16>, vector<32x96xbf16>, vector<16x96xf32> -> vector<16x96xf32>
    %c0_19 = arith.constant 0 : index
    %c0_20 = arith.constant 0 : index
    %c0_21 = arith.constant 0 : index
    %15 = vector.load %arg20[%c0_19, %c0_20, %c0_21] : memref<1x1x96xf32, #tpu.memory_space<vmem>>, vector<1x1x96xf32>
    %16 = vector.shape_cast %15 : vector<1x1x96xf32> to vector<1x96xf32>
    %17 = vector.broadcast %16 : vector<1x96xf32> to vector<16x96xf32>
    %18 = arith.addf %14, %17 : vector<16x96xf32>
    %19 = vector.extract_strided_slice %18 {offsets = [0, 0], sizes = [16, 32], strides = [1, 1]} : vector<16x96xf32> to vector<16x32xf32>
    %20 = vector.extract_strided_slice %18 {offsets = [0, 32], sizes = [16, 32], strides = [1, 1]} : vector<16x96xf32> to vector<16x32xf32>
    %21 = vector.extract_strided_slice %18 {offsets = [0, 64], sizes = [16, 32], strides = [1, 1]} : vector<16x96xf32> to vector<16x32xf32>
    %22 = tpu.concatenate %19, %19, %19, %19 in 0 : vector<16x32xf32>, vector<16x32xf32>, vector<16x32xf32>, vector<16x32xf32> -> vector<64x32xf32>
    %23 = arith.mulf %22, %9 : vector<64x32xf32>
    %24 = arith.truncf %23 : vector<64x32xf32> to vector<64x32xbf16>
    %25 = arith.truncf %20 : vector<16x32xf32> to vector<16x32xbf16>
    %cst_22 = arith.constant dense<0.000000e+00> : vector<64x16xf32>
    %26 = tpu.matmul %24, %25, %cst_22 {dimension_numbers = #tpu.dot_dimension_numbers<[1], [1], [0], [0], [0, 0, 1, 0], [], []>} : vector<64x32xbf16>, vector<16x32xbf16>, vector<64x16xf32> -> vector<64x16xf32>
    %cst_23 = arith.constant dense<0.000000e+00> : vector<16x16xf32>
    %27 = tpu.matmul %6, %6, %cst_23 {dimension_numbers = #tpu.dot_dimension_numbers<[1], [1], [0], [0], [0, 0, 1, 0], [], []>} : vector<16x3xf32>, vector<16x3xf32>, vector<16x16xf32> -> vector<16x16xf32>
    %28 = tpu.iota {dimensions = array<i32: 0>} : vector<16x16xi32>
    %29 = tpu.iota {dimensions = array<i32: 1>} : vector<16x16xi32>
    %30 = arith.cmpi eq, %28, %29 : vector<16x16xi32>
    %cst_24 = arith.constant 0.000000e+00 : f32
    %31 = vector.broadcast %cst_24 : f32 to vector<16x16xf32>
    %32 = arith.select %30, %27, %31 : vector<16x16xi1>, vector<16x16xf32>
    %cst_25 = arith.constant dense<0.000000e+00> : vector<16xf32>
    %33 = vector.multi_reduction <add>, %32, %cst_25 [1] : vector<16x16xf32> to vector<16xf32>
    %34 = vector.shape_cast %33 : vector<16xf32> to vector<16x1xf32>
    %cst_26 = arith.constant dense<0.000000e+00> : vector<16xf32>
    %35 = vector.multi_reduction <add>, %32, %cst_26 [0] : vector<16x16xf32> to vector<16xf32>
    %36 = vector.shape_cast %35 : vector<16xf32> to vector<1x16xf32>
    %37 = vector.broadcast %34 : vector<16x1xf32> to vector<16x16xf32>
    %38 = vector.broadcast %36 : vector<1x16xf32> to vector<16x16xf32>
    %39 = arith.addf %37, %38 : vector<16x16xf32>
    %cst_27 = arith.constant 2.000000e+00 : f32
    %40 = vector.broadcast %cst_27 : f32 to vector<16x16xf32>
    %41 = arith.mulf %40, %27 : vector<16x16xf32>
    %42 = arith.subf %39, %41 : vector<16x16xf32>
    %cst_28 = arith.constant 0.000000e+00 : f32
    %43 = vector.broadcast %cst_28 : f32 to vector<16x16xf32>
    %44 = arith.maximumf %42, %43 : vector<16x16xf32>
    %c0_29 = arith.constant 0 : index
    %c0_30 = arith.constant 0 : index
    %45 = vector.load %arg7[%c0_29, %c0_30] : memref<28x16xf32, #tpu.memory_space<vmem>>, vector<28x16xf32>
    %46 = arith.truncf %45 : vector<28x16xf32> to vector<28x16xbf16>
    %47 = arith.truncf %44 : vector<16x16xf32> to vector<16x16xbf16>
    %cst_31 = arith.constant dense<0.000000e+00> : vector<28x16xf32>
    %48 = tpu.matmul %46, %47, %cst_31 {dimension_numbers = #tpu.dot_dimension_numbers<[1], [0], [0], [1], [0, 0, 1, 1], [], []>} : vector<28x16xbf16>, vector<16x16xbf16>, vector<28x16xf32> -> vector<28x16xf32>
    %49 = arith.mulf %48, %10 : vector<28x16xf32>
    %cst_32 = arith.constant dense<0.000000e+00> : vector<28xf32>
    %50 = vector.multi_reduction <add>, %49, %cst_32 [1] : vector<28x16xf32> to vector<28xf32>
    %51 = vector.shape_cast %50 : vector<28xf32> to vector<28x1xf32>
    %cst_33 = arith.constant 9.99999996E-13 : f32
    %52 = vector.broadcast %cst_33 : f32 to vector<28x1xf32>
    %53 = arith.addf %51, %52 : vector<28x1xf32>
    %54 = math.sqrt %53 : vector<28x1xf32>
    %c0_34 = arith.constant 0 : index
    %c0_35 = arith.constant 0 : index
    %55 = vector.load %arg11[%c0_34, %c0_35] : memref<1x16xf32, #tpu.memory_space<vmem>>, vector<1x16xf32>
    %56 = vector.broadcast %54 : vector<28x1xf32> to vector<28x16xf32>
    %57 = vector.broadcast %55 : vector<1x16xf32> to vector<28x16xf32>
    %58 = arith.subf %56, %57 : vector<28x16xf32>
    %59 = arith.mulf %58, %58 : vector<28x16xf32>
    %cst_36 = arith.constant -2.28571439 : f32
    %60 = vector.broadcast %cst_36 : f32 to vector<28x16xf32>
    %61 = arith.mulf %60, %59 : vector<28x16xf32>
    %62 = math.exp %61 : vector<28x16xf32>
    %63 = tpu.concatenate %7, %62 in 1 : vector<28x16xf32>, vector<28x16xf32> -> vector<28x32xf32>
    %c0_37 = arith.constant 0 : index
    %c0_38 = arith.constant 0 : index
    %c0_39 = arith.constant 0 : index
    %64 = vector.load %arg23[%c0_37, %c0_38, %c0_39] : memref<1x32x4xbf16, #tpu.memory_space<vmem>>, vector<1x32x4xbf16>
    %65 = vector.shape_cast %64 : vector<1x32x4xbf16> to vector<32x4xbf16>
    %66 = arith.truncf %63 : vector<28x32xf32> to vector<28x32xbf16>
    %cst_40 = arith.constant dense<0.000000e+00> : vector<28x4xf32>
    %67 = tpu.matmul %66, %65, %cst_40 {dimension_numbers = #tpu.dot_dimension_numbers<[1], [0], [0], [1], [0, 0, 1, 1], [], []>} : vector<28x32xbf16>, vector<32x4xbf16>, vector<28x4xf32> -> vector<28x4xf32>
    %c0_41 = arith.constant 0 : index
    %c0_42 = arith.constant 0 : index
    %c0_43 = arith.constant 0 : index
    %68 = vector.load %arg24[%c0_41, %c0_42, %c0_43] : memref<1x1x4xf32, #tpu.memory_space<vmem>>, vector<1x1x4xf32>
    %69 = vector.shape_cast %68 : vector<1x1x4xf32> to vector<1x4xf32>
    %70 = vector.broadcast %69 : vector<1x4xf32> to vector<28x4xf32>
    %71 = arith.addf %67, %70 : vector<28x4xf32>
    %c0_44 = arith.constant 0 : index
    %c0_45 = arith.constant 0 : index
    %72 = vector.load %arg10[%c0_44, %c0_45] : memref<4x64xf32, #tpu.memory_space<vmem>>, vector<4x64xf32>
    %73 = arith.truncf %71 : vector<28x4xf32> to vector<28x4xbf16>
    %74 = arith.truncf %72 : vector<4x64xf32> to vector<4x64xbf16>
    %cst_46 = arith.constant dense<0.000000e+00> : vector<28x64xf32>
    %75 = tpu.matmul %73, %74, %cst_46 {dimension_numbers = #tpu.dot_dimension_numbers<[1], [0], [0], [1], [0, 0, 1, 1], [], []>} : vector<28x4xbf16>, vector<4x64xbf16>, vector<28x64xf32> -> vector<28x64xf32>
    %c0_47 = arith.constant 0 : index
    %c0_48 = arith.constant 0 : index
    %76 = vector.load %arg8[%c0_47, %c0_48] : memref<28x64xf32, #tpu.memory_space<vmem>>, vector<28x64xf32>
    %77 = arith.mulf %75, %76 : vector<28x64xf32>
    %78 = arith.truncf %77 : vector<28x64xf32> to vector<28x64xbf16>
    %79 = arith.truncf %10 : vector<28x16xf32> to vector<28x16xbf16>
    %cst_49 = arith.constant dense<0.000000e+00> : vector<64x16xf32>
    %80 = tpu.matmul %78, %79, %cst_49 {dimension_numbers = #tpu.dot_dimension_numbers<[0], [0], [1], [1], [0, 1, 1, 1], [], []>} : vector<28x64xbf16>, vector<28x16xbf16>, vector<64x16xf32> -> vector<64x16xf32>
    %81 = arith.addf %26, %80 : vector<64x16xf32>
    %c0_50 = arith.constant 0 : index
    %c0_51 = arith.constant 0 : index
    %82 = vector.load %arg5[%c0_50, %c0_51] : memref<64x16xf32, #tpu.memory_space<vmem>>, vector<64x16xf32>
    %83 = arith.addf %81, %82 : vector<64x16xf32>
    %cst_52 = arith.constant dense<0xFF800000> : vector<64xf32>
    %84 = vector.multi_reduction <maximumf>, %83, %cst_52 [1] : vector<64x16xf32> to vector<64xf32>
    %85 = vector.shape_cast %84 : vector<64xf32> to vector<64x1xf32>
    %86 = vector.broadcast %85 : vector<64x1xf32> to vector<64x16xf32>
    %87 = arith.subf %83, %86 : vector<64x16xf32>
    %88 = math.exp %87 : vector<64x16xf32>
    %cst_53 = arith.constant dense<0.000000e+00> : vector<64xf32>
    %89 = vector.multi_reduction <add>, %88, %cst_53 [1] : vector<64x16xf32> to vector<64xf32>
    %90 = vector.shape_cast %89 : vector<64xf32> to vector<64x1xf32>
    %91 = tpu.reciprocal %90 {approx = true} : vector<64x1xf32> -> vector<64x1xf32>
    %92 = vector.broadcast %91 : vector<64x1xf32> to vector<64x16xf32>
    %93 = arith.mulf %88, %92 : vector<64x16xf32>
    %94 = arith.truncf %93 : vector<64x16xf32> to vector<64x16xbf16>
    %95 = arith.truncf %21 : vector<16x32xf32> to vector<16x32xbf16>
    %cst_54 = arith.constant dense<0.000000e+00> : vector<64x32xf32>
    %96 = tpu.matmul %94, %95, %cst_54 {dimension_numbers = #tpu.dot_dimension_numbers<[1], [0], [0], [1], [0, 0, 1, 1], [], []>} : vector<64x16xbf16>, vector<16x32xbf16>, vector<64x32xf32> -> vector<64x32xf32>
    %97 = arith.mulf %96, %9 : vector<64x32xf32>
    %c0_55 = arith.constant 0 : index
    %c0_56 = arith.constant 0 : index
    %c0_57 = arith.constant 0 : index
    %98 = vector.load %arg21[%c0_55, %c0_56, %c0_57] : memref<1x32x32xbf16, #tpu.memory_space<vmem>>, vector<1x32x32xbf16>
    %99 = vector.shape_cast %98 : vector<1x32x32xbf16> to vector<32x32xbf16>
    %100 = arith.truncf %97 : vector<64x32xf32> to vector<64x32xbf16>
    %cst_58 = arith.constant dense<0.000000e+00> : vector<64x32xf32>
    %101 = tpu.matmul %100, %99, %cst_58 {dimension_numbers = #tpu.dot_dimension_numbers<[1], [0], [0], [1], [0, 0, 1, 1], [], []>} : vector<64x32xbf16>, vector<32x32xbf16>, vector<64x32xf32> -> vector<64x32xf32>
    %102 = vector.shape_cast %101 : vector<64x32xf32> to vector<4x16x32xf32>
    %cst_59 = arith.constant dense<0.000000e+00> : vector<16x32xf32>
    %103 = vector.multi_reduction <add>, %102, %cst_59 [0] : vector<4x16x32xf32> to vector<16x32xf32>
    %104 = arith.addf %5, %103 : vector<16x32xf32>
    %c0_60 = arith.constant 0 : index
    %c0_61 = arith.constant 0 : index
    %c0_62 = arith.constant 0 : index
    %105 = vector.load %arg22[%c0_60, %c0_61, %c0_62] : memref<1x1x32xf32, #tpu.memory_space<vmem>>, vector<1x1x32xf32>
    %106 = vector.shape_cast %105 : vector<1x1x32xf32> to vector<1x32xf32>
    %107 = vector.broadcast %106 : vector<1x32xf32> to vector<16x32xf32>
    %108 = arith.addf %104, %107 : vector<16x32xf32>
    %109 = vector.shape_cast %93 : vector<64x16xf32> to vector<4x16x16xf32>
    %cst_63 = arith.constant dense<0.000000e+00> : vector<16x16xf32>
    %110 = vector.multi_reduction <add>, %109, %cst_63 [0] : vector<4x16x16xf32> to vector<16x16xf32>
    %cst_64 = arith.constant 2.500000e-01 : f32
    %111 = vector.broadcast %cst_64 : f32 to vector<16x16xf32>
    %112 = arith.mulf %110, %111 : vector<16x16xf32>
    %cst_65 = arith.constant dense<0.000000e+00> : vector<16xf32>
    %113 = vector.multi_reduction <add>, %112, %cst_65 [1] : vector<16x16xf32> to vector<16xf32>
    %114 = vector.shape_cast %113 : vector<16xf32> to vector<16x1xf32>
    %115 = vector.broadcast %114 : vector<16x1xf32> to vector<16x3xf32>
    %116 = arith.mulf %6, %115 : vector<16x3xf32>
    %cst_66 = arith.constant dense<0.000000e+00> : vector<16x3xf32>
    %117 = tpu.matmul %112, %6, %cst_66 {dimension_numbers = #tpu.dot_dimension_numbers<[1], [0], [0], [1], [0, 0, 1, 1], [], []>} : vector<16x16xf32>, vector<16x3xf32>, vector<16x3xf32> -> vector<16x3xf32>
    %118 = arith.subf %116, %117 : vector<16x3xf32>
    %119 = arith.addf %6, %118 : vector<16x3xf32>
    %c0_67 = arith.constant 0 : index
    %c0_68 = arith.constant 0 : index
    %c0_69 = arith.constant 0 : index
    %120 = vector.load %arg29[%c0_67, %c0_68, %c0_69] : memref<1x1x32xf32, #tpu.memory_space<vmem>>, vector<1x1x32xf32>
    %121 = vector.shape_cast %120 : vector<1x1x32xf32> to vector<1x32xf32>
    %c0_70 = arith.constant 0 : index
    %c0_71 = arith.constant 0 : index
    %c0_72 = arith.constant 0 : index
    %122 = vector.load %arg30[%c0_70, %c0_71, %c0_72] : memref<1x1x32xf32, #tpu.memory_space<vmem>>, vector<1x1x32xf32>
    %123 = vector.shape_cast %122 : vector<1x1x32xf32> to vector<1x32xf32>
    %cst_73 = arith.constant dense<0.000000e+00> : vector<16xf32>
    %124 = vector.multi_reduction <add>, %108, %cst_73 [1] : vector<16x32xf32> to vector<16xf32>
    %125 = vector.shape_cast %124 : vector<16xf32> to vector<16x1xf32>
    %cst_74 = arith.constant 3.200000e+01 : f32
    %126 = vector.broadcast %cst_74 : f32 to vector<16x1xf32>
    %127 = arith.divf %125, %126 : vector<16x1xf32>
    %128 = vector.broadcast %127 : vector<16x1xf32> to vector<16x32xf32>
    %129 = arith.subf %108, %128 : vector<16x32xf32>
    %130 = arith.mulf %129, %129 : vector<16x32xf32>
    %cst_75 = arith.constant dense<0.000000e+00> : vector<16xf32>
    %131 = vector.multi_reduction <add>, %130, %cst_75 [1] : vector<16x32xf32> to vector<16xf32>
    %132 = vector.shape_cast %131 : vector<16xf32> to vector<16x1xf32>
    %cst_76 = arith.constant 3.200000e+01 : f32
    %133 = vector.broadcast %cst_76 : f32 to vector<16x1xf32>
    %134 = arith.divf %132, %133 : vector<16x1xf32>
    %cst_77 = arith.constant 9.99999974E-6 : f32
    %135 = vector.broadcast %cst_77 : f32 to vector<16x1xf32>
    %136 = arith.addf %134, %135 : vector<16x1xf32>
    %137 = math.rsqrt %136 : vector<16x1xf32>
    %138 = vector.broadcast %137 : vector<16x1xf32> to vector<16x32xf32>
    %139 = arith.mulf %129, %138 : vector<16x32xf32>
    %140 = vector.broadcast %121 : vector<1x32xf32> to vector<16x32xf32>
    %141 = arith.mulf %139, %140 : vector<16x32xf32>
    %142 = vector.broadcast %123 : vector<1x32xf32> to vector<16x32xf32>
    %143 = arith.addf %141, %142 : vector<16x32xf32>
    %144 = vector.extract_strided_slice %0 {offsets = [0, 0], sizes = [16, 1], strides = [1, 1]} : vector<16x2xf32> to vector<16x1xf32>
    %145 = vector.broadcast %144 : vector<16x1xf32> to vector<16x3xf32>
    %146 = arith.mulf %119, %145 : vector<16x3xf32>
    %cst_78 = arith.constant dense<0.000000e+00> : vector<3xf32>
    %147 = vector.multi_reduction <add>, %146, %cst_78 [0] : vector<16x3xf32> to vector<3xf32>
    %148 = vector.shape_cast %147 : vector<3xf32> to vector<1x3xf32>
    %149 = vector.extract_strided_slice %0 {offsets = [0, 1], sizes = [16, 1], strides = [1, 1]} : vector<16x2xf32> to vector<16x1xf32>
    %150 = vector.broadcast %149 : vector<16x1xf32> to vector<16x3xf32>
    %151 = arith.mulf %119, %150 : vector<16x3xf32>
    %cst_79 = arith.constant dense<0.000000e+00> : vector<3xf32>
    %152 = vector.multi_reduction <add>, %151, %cst_79 [0] : vector<16x3xf32> to vector<3xf32>
    %153 = vector.shape_cast %152 : vector<3xf32> to vector<1x3xf32>
    %154 = tpu.concatenate %148, %153 in 0 : vector<1x3xf32>, vector<1x3xf32> -> vector<2x3xf32>
    %155 = vector.broadcast %1 : vector<2x1xf32> to vector<2x3xf32>
    %156 = arith.mulf %154, %155 : vector<2x3xf32>
    %157 = vector.extract_strided_slice %0 {offsets = [0, 0], sizes = [16, 1], strides = [1, 1]} : vector<16x2xf32> to vector<16x1xf32>
    %158 = vector.extract_strided_slice %156 {offsets = [0, 0], sizes = [1, 3], strides = [1, 1]} : vector<2x3xf32> to vector<1x3xf32>
    %159 = vector.broadcast %157 : vector<16x1xf32> to vector<16x3xf32>
    %160 = vector.broadcast %158 : vector<1x3xf32> to vector<16x3xf32>
    %161 = arith.mulf %159, %160 : vector<16x3xf32>
    %162 = vector.extract_strided_slice %0 {offsets = [0, 1], sizes = [16, 1], strides = [1, 1]} : vector<16x2xf32> to vector<16x1xf32>
    %163 = vector.extract_strided_slice %156 {offsets = [1, 0], sizes = [1, 3], strides = [1, 1]} : vector<2x3xf32> to vector<1x3xf32>
    %164 = vector.broadcast %162 : vector<16x1xf32> to vector<16x3xf32>
    %165 = vector.broadcast %163 : vector<1x3xf32> to vector<16x3xf32>
    %166 = arith.mulf %164, %165 : vector<16x3xf32>
    %167 = arith.addf %161, %166 : vector<16x3xf32>
    %168 = arith.subf %119, %167 : vector<16x3xf32>
    %169 = arith.mulf %168, %168 : vector<16x3xf32>
    %cst_80 = arith.constant dense<0.000000e+00> : vector<16xf32>
    %170 = vector.multi_reduction <add>, %169, %cst_80 [1] : vector<16x3xf32> to vector<16xf32>
    %171 = vector.shape_cast %170 : vector<16xf32> to vector<16x1xf32>
    %172 = vector.extract_strided_slice %0 {offsets = [0, 0], sizes = [16, 1], strides = [1, 1]} : vector<16x2xf32> to vector<16x1xf32>
    %173 = arith.mulf %171, %172 : vector<16x1xf32>
    %cst_81 = arith.constant dense<0.000000e+00> : vector<1xf32>
    %174 = vector.multi_reduction <add>, %173, %cst_81 [0] : vector<16x1xf32> to vector<1xf32>
    %175 = vector.shape_cast %174 : vector<1xf32> to vector<1x1xf32>
    %176 = vector.extract_strided_slice %0 {offsets = [0, 1], sizes = [16, 1], strides = [1, 1]} : vector<16x2xf32> to vector<16x1xf32>
    %177 = arith.mulf %171, %176 : vector<16x1xf32>
    %cst_82 = arith.constant dense<0.000000e+00> : vector<1xf32>
    %178 = vector.multi_reduction <add>, %177, %cst_82 [0] : vector<16x1xf32> to vector<1xf32>
    %179 = vector.shape_cast %178 : vector<1xf32> to vector<1x1xf32>
    %180 = tpu.concatenate %175, %179 in 0 : vector<1x1xf32>, vector<1x1xf32> -> vector<2x1xf32>
    %181 = arith.mulf %180, %1 : vector<2x1xf32>
    %cst_83 = arith.constant 3.000000e+00 : f32
    %182 = vector.broadcast %cst_83 : f32 to vector<2x1xf32>
    %183 = arith.divf %181, %182 : vector<2x1xf32>
    %cst_84 = arith.constant 9.99999997E-7 : f32
    %184 = vector.broadcast %cst_84 : f32 to vector<2x1xf32>
    %185 = arith.addf %183, %184 : vector<2x1xf32>
    %186 = math.sqrt %185 : vector<2x1xf32>
    %cst_85 = arith.constant 1.000000e+00 : f32
    %187 = vector.broadcast %cst_85 : f32 to vector<2x1xf32>
    %188 = arith.divf %187, %186 : vector<2x1xf32>
    %189 = vector.extract_strided_slice %0 {offsets = [0, 0], sizes = [16, 1], strides = [1, 1]} : vector<16x2xf32> to vector<16x1xf32>
    %190 = vector.extract_strided_slice %188 {offsets = [0, 0], sizes = [1, 1], strides = [1, 1]} : vector<2x1xf32> to vector<1x1xf32>
    %191 = vector.broadcast %190 : vector<1x1xf32> to vector<16x1xf32>
    %192 = arith.mulf %189, %191 : vector<16x1xf32>
    %193 = vector.extract_strided_slice %0 {offsets = [0, 1], sizes = [16, 1], strides = [1, 1]} : vector<16x2xf32> to vector<16x1xf32>
    %194 = vector.extract_strided_slice %188 {offsets = [1, 0], sizes = [1, 1], strides = [1, 1]} : vector<2x1xf32> to vector<1x1xf32>
    %195 = vector.broadcast %194 : vector<1x1xf32> to vector<16x1xf32>
    %196 = arith.mulf %193, %195 : vector<16x1xf32>
    %197 = arith.addf %192, %196 : vector<16x1xf32>
    %198 = vector.broadcast %197 : vector<16x1xf32> to vector<16x3xf32>
    %199 = arith.mulf %168, %198 : vector<16x3xf32>
    %200 = arith.addf %167, %199 : vector<16x3xf32>
    %c0_86 = arith.constant 0 : index
    %c0_87 = arith.constant 0 : index
    %c0_88 = arith.constant 0 : index
    %201 = vector.load %arg25[%c0_86, %c0_87, %c0_88] : memref<1x32x64xbf16, #tpu.memory_space<vmem>>, vector<1x32x64xbf16>
    %202 = vector.shape_cast %201 : vector<1x32x64xbf16> to vector<32x64xbf16>
    %203 = arith.truncf %143 : vector<16x32xf32> to vector<16x32xbf16>
    %cst_89 = arith.constant dense<0.000000e+00> : vector<16x64xf32>
    %204 = tpu.matmul %203, %202, %cst_89 {dimension_numbers = #tpu.dot_dimension_numbers<[1], [0], [0], [1], [0, 0, 1, 1], [], []>} : vector<16x32xbf16>, vector<32x64xbf16>, vector<16x64xf32> -> vector<16x64xf32>
    %c0_90 = arith.constant 0 : index
    %c0_91 = arith.constant 0 : index
    %c0_92 = arith.constant 0 : index
    %205 = vector.load %arg26[%c0_90, %c0_91, %c0_92] : memref<1x1x64xf32, #tpu.memory_space<vmem>>, vector<1x1x64xf32>
    %206 = vector.shape_cast %205 : vector<1x1x64xf32> to vector<1x64xf32>
    %207 = vector.broadcast %206 : vector<1x64xf32> to vector<16x64xf32>
    %208 = arith.addf %204, %207 : vector<16x64xf32>
    %209 = arith.negf %208 : vector<16x64xf32>
    %210 = math.exp %209 : vector<16x64xf32>
    %cst_93 = arith.constant 1.000000e+00 : f32
    %211 = vector.broadcast %cst_93 : f32 to vector<16x64xf32>
    %212 = arith.addf %211, %210 : vector<16x64xf32>
    %213 = arith.divf %211, %212 : vector<16x64xf32>
    %214 = arith.mulf %208, %213 : vector<16x64xf32>
    %c0_94 = arith.constant 0 : index
    %c0_95 = arith.constant 0 : index
    %c0_96 = arith.constant 0 : index
    %215 = vector.load %arg27[%c0_94, %c0_95, %c0_96] : memref<1x64x32xbf16, #tpu.memory_space<vmem>>, vector<1x64x32xbf16>
    %216 = vector.shape_cast %215 : vector<1x64x32xbf16> to vector<64x32xbf16>
    %217 = arith.truncf %214 : vector<16x64xf32> to vector<16x64xbf16>
    %cst_97 = arith.constant dense<0.000000e+00> : vector<16x32xf32>
    %218 = tpu.matmul %217, %216, %cst_97 {dimension_numbers = #tpu.dot_dimension_numbers<[1], [0], [0], [1], [0, 0, 1, 1], [], []>} : vector<16x64xbf16>, vector<64x32xbf16>, vector<16x32xf32> -> vector<16x32xf32>
    %219 = arith.addf %143, %218 : vector<16x32xf32>
    %c0_98 = arith.constant 0 : index
    %c0_99 = arith.constant 0 : index
    %c0_100 = arith.constant 0 : index
    %220 = vector.load %arg28[%c0_98, %c0_99, %c0_100] : memref<1x1x32xf32, #tpu.memory_space<vmem>>, vector<1x1x32xf32>
    %221 = vector.shape_cast %220 : vector<1x1x32xf32> to vector<1x32xf32>
    %222 = vector.broadcast %221 : vector<1x32xf32> to vector<16x32xf32>
    %223 = arith.addf %219, %222 : vector<16x32xf32>
    %c0_101 = arith.constant 0 : index
    %c0_102 = arith.constant 0 : index
    %c0_103 = arith.constant 0 : index
    %224 = vector.load %arg31[%c0_101, %c0_102, %c0_103] : memref<1x1x32xf32, #tpu.memory_space<vmem>>, vector<1x1x32xf32>
    %225 = vector.shape_cast %224 : vector<1x1x32xf32> to vector<1x32xf32>
    %c0_104 = arith.constant 0 : index
    %c0_105 = arith.constant 0 : index
    %c0_106 = arith.constant 0 : index
    %226 = vector.load %arg32[%c0_104, %c0_105, %c0_106] : memref<1x1x32xf32, #tpu.memory_space<vmem>>, vector<1x1x32xf32>
    %227 = vector.shape_cast %226 : vector<1x1x32xf32> to vector<1x32xf32>
    %cst_107 = arith.constant dense<0.000000e+00> : vector<16xf32>
    %228 = vector.multi_reduction <add>, %223, %cst_107 [1] : vector<16x32xf32> to vector<16xf32>
    %229 = vector.shape_cast %228 : vector<16xf32> to vector<16x1xf32>
    %cst_108 = arith.constant 3.200000e+01 : f32
    %230 = vector.broadcast %cst_108 : f32 to vector<16x1xf32>
    %231 = arith.divf %229, %230 : vector<16x1xf32>
    %232 = vector.broadcast %231 : vector<16x1xf32> to vector<16x32xf32>
    %233 = arith.subf %223, %232 : vector<16x32xf32>
    %234 = arith.mulf %233, %233 : vector<16x32xf32>
    %cst_109 = arith.constant dense<0.000000e+00> : vector<16xf32>
    %235 = vector.multi_reduction <add>, %234, %cst_109 [1] : vector<16x32xf32> to vector<16xf32>
    %236 = vector.shape_cast %235 : vector<16xf32> to vector<16x1xf32>
    %cst_110 = arith.constant 3.200000e+01 : f32
    %237 = vector.broadcast %cst_110 : f32 to vector<16x1xf32>
    %238 = arith.divf %236, %237 : vector<16x1xf32>
    %cst_111 = arith.constant 9.99999974E-6 : f32
    %239 = vector.broadcast %cst_111 : f32 to vector<16x1xf32>
    %240 = arith.addf %238, %239 : vector<16x1xf32>
    %241 = math.rsqrt %240 : vector<16x1xf32>
    %242 = vector.broadcast %241 : vector<16x1xf32> to vector<16x32xf32>
    %243 = arith.mulf %233, %242 : vector<16x32xf32>
    %244 = vector.broadcast %225 : vector<1x32xf32> to vector<16x32xf32>
    %245 = arith.mulf %243, %244 : vector<16x32xf32>
    %246 = vector.broadcast %227 : vector<1x32xf32> to vector<16x32xf32>
    %247 = arith.addf %245, %246 : vector<16x32xf32>
    %248 = vector.extract_strided_slice %0 {offsets = [0, 0], sizes = [16, 1], strides = [1, 1]} : vector<16x2xf32> to vector<16x1xf32>
    %249 = vector.broadcast %248 : vector<16x1xf32> to vector<16x3xf32>
    %250 = arith.mulf %200, %249 : vector<16x3xf32>
    %cst_112 = arith.constant dense<0.000000e+00> : vector<3xf32>
    %251 = vector.multi_reduction <add>, %250, %cst_112 [0] : vector<16x3xf32> to vector<3xf32>
    %252 = vector.shape_cast %251 : vector<3xf32> to vector<1x3xf32>
    %253 = vector.extract_strided_slice %0 {offsets = [0, 1], sizes = [16, 1], strides = [1, 1]} : vector<16x2xf32> to vector<16x1xf32>
    %254 = vector.broadcast %253 : vector<16x1xf32> to vector<16x3xf32>
    %255 = arith.mulf %200, %254 : vector<16x3xf32>
    %cst_113 = arith.constant dense<0.000000e+00> : vector<3xf32>
    %256 = vector.multi_reduction <add>, %255, %cst_113 [0] : vector<16x3xf32> to vector<3xf32>
    %257 = vector.shape_cast %256 : vector<3xf32> to vector<1x3xf32>
    %258 = tpu.concatenate %252, %257 in 0 : vector<1x3xf32>, vector<1x3xf32> -> vector<2x3xf32>
    %259 = vector.broadcast %1 : vector<2x1xf32> to vector<2x3xf32>
    %260 = arith.mulf %258, %259 : vector<2x3xf32>
    %261 = vector.extract_strided_slice %0 {offsets = [0, 0], sizes = [16, 1], strides = [1, 1]} : vector<16x2xf32> to vector<16x1xf32>
    %262 = vector.extract_strided_slice %260 {offsets = [0, 0], sizes = [1, 3], strides = [1, 1]} : vector<2x3xf32> to vector<1x3xf32>
    %263 = vector.broadcast %261 : vector<16x1xf32> to vector<16x3xf32>
    %264 = vector.broadcast %262 : vector<1x3xf32> to vector<16x3xf32>
    %265 = arith.mulf %263, %264 : vector<16x3xf32>
    %266 = vector.extract_strided_slice %0 {offsets = [0, 1], sizes = [16, 1], strides = [1, 1]} : vector<16x2xf32> to vector<16x1xf32>
    %267 = vector.extract_strided_slice %260 {offsets = [1, 0], sizes = [1, 3], strides = [1, 1]} : vector<2x3xf32> to vector<1x3xf32>
    %268 = vector.broadcast %266 : vector<16x1xf32> to vector<16x3xf32>
    %269 = vector.broadcast %267 : vector<1x3xf32> to vector<16x3xf32>
    %270 = arith.mulf %268, %269 : vector<16x3xf32>
    %271 = arith.addf %265, %270 : vector<16x3xf32>
    %272 = arith.subf %200, %271 : vector<16x3xf32>
    %273 = arith.mulf %272, %272 : vector<16x3xf32>
    %cst_114 = arith.constant dense<0.000000e+00> : vector<16xf32>
    %274 = vector.multi_reduction <add>, %273, %cst_114 [1] : vector<16x3xf32> to vector<16xf32>
    %275 = vector.shape_cast %274 : vector<16xf32> to vector<16x1xf32>
    %276 = vector.extract_strided_slice %0 {offsets = [0, 0], sizes = [16, 1], strides = [1, 1]} : vector<16x2xf32> to vector<16x1xf32>
    %277 = arith.mulf %275, %276 : vector<16x1xf32>
    %cst_115 = arith.constant dense<0.000000e+00> : vector<1xf32>
    %278 = vector.multi_reduction <add>, %277, %cst_115 [0] : vector<16x1xf32> to vector<1xf32>
    %279 = vector.shape_cast %278 : vector<1xf32> to vector<1x1xf32>
    %280 = vector.extract_strided_slice %0 {offsets = [0, 1], sizes = [16, 1], strides = [1, 1]} : vector<16x2xf32> to vector<16x1xf32>
    %281 = arith.mulf %275, %280 : vector<16x1xf32>
    %cst_116 = arith.constant dense<0.000000e+00> : vector<1xf32>
    %282 = vector.multi_reduction <add>, %281, %cst_116 [0] : vector<16x1xf32> to vector<1xf32>
    %283 = vector.shape_cast %282 : vector<1xf32> to vector<1x1xf32>
    %284 = tpu.concatenate %279, %283 in 0 : vector<1x1xf32>, vector<1x1xf32> -> vector<2x1xf32>
    %285 = arith.mulf %284, %1 : vector<2x1xf32>
    %cst_117 = arith.constant 3.000000e+00 : f32
    %286 = vector.broadcast %cst_117 : f32 to vector<2x1xf32>
    %287 = arith.divf %285, %286 : vector<2x1xf32>
    %cst_118 = arith.constant 9.99999997E-7 : f32
    %288 = vector.broadcast %cst_118 : f32 to vector<2x1xf32>
    %289 = arith.addf %287, %288 : vector<2x1xf32>
    %290 = math.sqrt %289 : vector<2x1xf32>
    %cst_119 = arith.constant 1.000000e+00 : f32
    %291 = vector.broadcast %cst_119 : f32 to vector<2x1xf32>
    %292 = arith.divf %291, %290 : vector<2x1xf32>
    %293 = vector.extract_strided_slice %0 {offsets = [0, 0], sizes = [16, 1], strides = [1, 1]} : vector<16x2xf32> to vector<16x1xf32>
    %294 = vector.extract_strided_slice %292 {offsets = [0, 0], sizes = [1, 1], strides = [1, 1]} : vector<2x1xf32> to vector<1x1xf32>
    %295 = vector.broadcast %294 : vector<1x1xf32> to vector<16x1xf32>
    %296 = arith.mulf %293, %295 : vector<16x1xf32>
    %297 = vector.extract_strided_slice %0 {offsets = [0, 1], sizes = [16, 1], strides = [1, 1]} : vector<16x2xf32> to vector<16x1xf32>
    %298 = vector.extract_strided_slice %292 {offsets = [1, 0], sizes = [1, 1], strides = [1, 1]} : vector<2x1xf32> to vector<1x1xf32>
    %299 = vector.broadcast %298 : vector<1x1xf32> to vector<16x1xf32>
    %300 = arith.mulf %297, %299 : vector<16x1xf32>
    %301 = arith.addf %296, %300 : vector<16x1xf32>
    %302 = vector.broadcast %301 : vector<16x1xf32> to vector<16x3xf32>
    %303 = arith.mulf %272, %302 : vector<16x3xf32>
    %304 = arith.addf %271, %303 : vector<16x3xf32>
    %305 = arith.mulf %8, %186 : vector<2x1xf32>
    %306 = arith.mulf %305, %290 : vector<2x1xf32>
    %c0_120 = arith.constant 0 : index
    %c0_121 = arith.constant 0 : index
    %307 = vector.load %arg35[%c0_120, %c0_121] : memref<16x32xf32, #tpu.memory_space<vmem>>, vector<16x32xf32>
    tpu.vector_store %arg35[%c0_120, %c0_121], %247 {strides = array<i32>} : memref<16x32xf32, #tpu.memory_space<vmem>>, vector<16x32xf32>,
    %c0_122 = arith.constant 0 : index
    %c0_123 = arith.constant 0 : index
    %308 = vector.load %arg36[%c0_122, %c0_123] : memref<16x3xf32, #tpu.memory_space<vmem>>, vector<16x3xf32>
    tpu.vector_store %arg36[%c0_122, %c0_123], %304 {strides = array<i32>} : memref<16x3xf32, #tpu.memory_space<vmem>>, vector<16x3xf32>,
    %c0_124 = arith.constant 0 : index
    %c0_125 = arith.constant 0 : index
    %309 = vector.load %arg37[%c0_124, %c0_125] : memref<2x1xf32, #tpu.memory_space<vmem>>, vector<2x1xf32>
    tpu.vector_store %arg37[%c0_124, %c0_125], %306 {strides = array<i32>} : memref<2x1xf32, #tpu.memory_space<vmem>>, vector<2x1xf32>,
    %c2_i32 = arith.constant 2 : i32
    %310 = arith.cmpi eq, %arg0, %c2_i32 : i32
    %311 = arith.extui %310 : i1 to i32
    %c0_i32_126 = arith.constant 0 : i32
    %312 = arith.cmpi ne, %311, %c0_i32_126 : i32
    scf.if %312 {
      %313 = vector.extract_strided_slice %0 {offsets = [0, 0], sizes = [16, 1], strides = [1, 1]} : vector<16x2xf32> to vector<16x1xf32>
      %314 = vector.broadcast %313 : vector<16x1xf32> to vector<16x3xf32>
      %315 = arith.mulf %304, %314 : vector<16x3xf32>
      %cst_127 = arith.constant dense<0.000000e+00> : vector<3xf32>
      %316 = vector.multi_reduction <add>, %315, %cst_127 [0] : vector<16x3xf32> to vector<3xf32>
      %317 = vector.shape_cast %316 : vector<3xf32> to vector<1x3xf32>
      %318 = vector.extract_strided_slice %0 {offsets = [0, 1], sizes = [16, 1], strides = [1, 1]} : vector<16x2xf32> to vector<16x1xf32>
      %319 = vector.broadcast %318 : vector<16x1xf32> to vector<16x3xf32>
      %320 = arith.mulf %304, %319 : vector<16x3xf32>
      %cst_128 = arith.constant dense<0.000000e+00> : vector<3xf32>
      %321 = vector.multi_reduction <add>, %320, %cst_128 [0] : vector<16x3xf32> to vector<3xf32>
      %322 = vector.shape_cast %321 : vector<3xf32> to vector<1x3xf32>
      %323 = tpu.concatenate %317, %322 in 0 : vector<1x3xf32>, vector<1x3xf32> -> vector<2x3xf32>
      %324 = vector.broadcast %1 : vector<2x1xf32> to vector<2x3xf32>
      %325 = arith.mulf %323, %324 : vector<2x3xf32>
      %326 = vector.extract_strided_slice %0 {offsets = [0, 0], sizes = [16, 1], strides = [1, 1]} : vector<16x2xf32> to vector<16x1xf32>
      %327 = vector.extract_strided_slice %325 {offsets = [0, 0], sizes = [1, 3], strides = [1, 1]} : vector<2x3xf32> to vector<1x3xf32>
      %328 = vector.broadcast %326 : vector<16x1xf32> to vector<16x3xf32>
      %329 = vector.broadcast %327 : vector<1x3xf32> to vector<16x3xf32>
      %330 = arith.mulf %328, %329 : vector<16x3xf32>
      %331 = vector.extract_strided_slice %0 {offsets = [0, 1], sizes = [16, 1], strides = [1, 1]} : vector<16x2xf32> to vector<16x1xf32>
      %332 = vector.extract_strided_slice %325 {offsets = [1, 0], sizes = [1, 3], strides = [1, 1]} : vector<2x3xf32> to vector<1x3xf32>
      %333 = vector.broadcast %331 : vector<16x1xf32> to vector<16x3xf32>
      %334 = vector.broadcast %332 : vector<1x3xf32> to vector<16x3xf32>
      %335 = arith.mulf %333, %334 : vector<16x3xf32>
      %336 = arith.addf %330, %335 : vector<16x3xf32>
      %337 = arith.subf %304, %336 : vector<16x3xf32>
      %cst_129 = arith.constant 1.000000e+00 : f32
      %338 = vector.broadcast %cst_129 : f32 to vector<2x1xf32>
      %339 = arith.divf %338, %306 : vector<2x1xf32>
      %340 = vector.extract_strided_slice %0 {offsets = [0, 0], sizes = [16, 1], strides = [1, 1]} : vector<16x2xf32> to vector<16x1xf32>
      %341 = vector.extract_strided_slice %339 {offsets = [0, 0], sizes = [1, 1], strides = [1, 1]} : vector<2x1xf32> to vector<1x1xf32>
      %342 = vector.broadcast %341 : vector<1x1xf32> to vector<16x1xf32>
      %343 = arith.mulf %340, %342 : vector<16x1xf32>
      %344 = vector.extract_strided_slice %0 {offsets = [0, 1], sizes = [16, 1], strides = [1, 1]} : vector<16x2xf32> to vector<16x1xf32>
      %345 = vector.extract_strided_slice %339 {offsets = [1, 0], sizes = [1, 1], strides = [1, 1]} : vector<2x1xf32> to vector<1x1xf32>
      %346 = vector.broadcast %345 : vector<1x1xf32> to vector<16x1xf32>
      %347 = arith.mulf %344, %346 : vector<16x1xf32>
      %348 = arith.addf %343, %347 : vector<16x1xf32>
      %349 = vector.broadcast %348 : vector<16x1xf32> to vector<16x3xf32>
      %350 = arith.mulf %337, %349 : vector<16x3xf32>
      %351 = arith.addf %336, %350 : vector<16x3xf32>
      %c0_130 = arith.constant 0 : index
      %c0_131 = arith.constant 0 : index
      %352 = vector.load %arg34[%c0_130, %c0_131] : memref<16x3xf32, #tpu.memory_space<vmem>>, vector<16x3xf32>
      tpu.vector_store %arg34[%c0_130, %c0_131], %351 {strides = array<i32>} : memref<16x3xf32, #tpu.memory_space<vmem>>, vector<16x3xf32>,
      %353 = vector.extract_strided_slice %0 {offsets = [0, 0], sizes = [16, 1], strides = [1, 1]} : vector<16x2xf32> to vector<16x1xf32>
      %354 = vector.broadcast %353 : vector<16x1xf32> to vector<16x32xf32>
      %355 = arith.mulf %247, %354 : vector<16x32xf32>
      %cst_132 = arith.constant dense<0.000000e+00> : vector<32xf32>
      %356 = vector.multi_reduction <add>, %355, %cst_132 [0] : vector<16x32xf32> to vector<32xf32>
      %357 = vector.shape_cast %356 : vector<32xf32> to vector<1x32xf32>
      %358 = vector.extract_strided_slice %0 {offsets = [0, 1], sizes = [16, 1], strides = [1, 1]} : vector<16x2xf32> to vector<16x1xf32>
      %359 = vector.broadcast %358 : vector<16x1xf32> to vector<16x32xf32>
      %360 = arith.mulf %247, %359 : vector<16x32xf32>
      %cst_133 = arith.constant dense<0.000000e+00> : vector<32xf32>
      %361 = vector.multi_reduction <add>, %360, %cst_133 [0] : vector<16x32xf32> to vector<32xf32>
      %362 = vector.shape_cast %361 : vector<32xf32> to vector<1x32xf32>
      %363 = tpu.concatenate %357, %362 in 0 : vector<1x32xf32>, vector<1x32xf32> -> vector<2x32xf32>
      %364 = vector.broadcast %1 : vector<2x1xf32> to vector<2x32xf32>
      %365 = arith.mulf %363, %364 : vector<2x32xf32>
      %366 = vector.extract_strided_slice %0 {offsets = [0, 0], sizes = [16, 1], strides = [1, 1]} : vector<16x2xf32> to vector<16x1xf32>
      %cst_134 = arith.constant 1.000000e+00 : f32
      %367 = vector.broadcast %cst_134 : f32 to vector<16x1xf32>
      %368 = arith.subf %367, %366 : vector<16x1xf32>
      %cst_135 = arith.constant -1.000000e+30 : f32
      %369 = vector.broadcast %cst_135 : f32 to vector<16x1xf32>
      %370 = arith.mulf %368, %369 : vector<16x1xf32>
      %371 = vector.broadcast %370 : vector<16x1xf32> to vector<16x32xf32>
      %372 = arith.addf %247, %371 : vector<16x32xf32>
      %cst_136 = arith.constant dense<0xFF800000> : vector<32xf32>
      %373 = vector.multi_reduction <maximumf>, %372, %cst_136 [0] : vector<16x32xf32> to vector<32xf32>
      %374 = vector.shape_cast %373 : vector<32xf32> to vector<1x32xf32>
      %375 = vector.extract_strided_slice %0 {offsets = [0, 1], sizes = [16, 1], strides = [1, 1]} : vector<16x2xf32> to vector<16x1xf32>
      %cst_137 = arith.constant 1.000000e+00 : f32
      %376 = vector.broadcast %cst_137 : f32 to vector<16x1xf32>
      %377 = arith.subf %376, %375 : vector<16x1xf32>
      %cst_138 = arith.constant -1.000000e+30 : f32
      %378 = vector.broadcast %cst_138 : f32 to vector<16x1xf32>
      %379 = arith.mulf %377, %378 : vector<16x1xf32>
      %380 = vector.broadcast %379 : vector<16x1xf32> to vector<16x32xf32>
      %381 = arith.addf %247, %380 : vector<16x32xf32>
      %cst_139 = arith.constant dense<0xFF800000> : vector<32xf32>
      %382 = vector.multi_reduction <maximumf>, %381, %cst_139 [0] : vector<16x32xf32> to vector<32xf32>
      %383 = vector.shape_cast %382 : vector<32xf32> to vector<1x32xf32>
      %384 = tpu.concatenate %374, %383 in 0 : vector<1x32xf32>, vector<1x32xf32> -> vector<2x32xf32>
      %385 = tpu.concatenate %384, %365 in 1 : vector<2x32xf32>, vector<2x32xf32> -> vector<2x64xf32>
      %c0_140 = arith.constant 0 : index
      %c0_141 = arith.constant 0 : index
      %386 = vector.load %arg33[%c0_140, %c0_141] : memref<2x64xf32, #tpu.memory_space<vmem>>, vector<2x64xf32>
      tpu.vector_store %arg33[%c0_140, %c0_141], %385 {strides = array<i32>} : memref<2x64xf32, #tpu.memory_space<vmem>>, vector<2x64xf32>,
    } else {
    }
    return
  }
  func.func @transform_0(%arg0: i32) -> (i32, i32) {
    %c0_i32 = arith.constant 0 : i32
    %c0_i32_0 = arith.constant 0 : i32
    %c0_i32_1 = arith.constant 0 : i32
    return %c0_i32, %c0_i32_0 : i32, i32
  }
  func.func @transform_1(%arg0: i32) -> (i32, i32) {
    %c0_i32 = arith.constant 0 : i32
    %c0_i32_0 = arith.constant 0 : i32
    %c0_i32_1 = arith.constant 0 : i32
    return %c0_i32, %c0_i32_0 : i32, i32
  }
  func.func @transform_2(%arg0: i32) -> (i32, i32) {
    %c0_i32 = arith.constant 0 : i32
    %c0_i32_0 = arith.constant 0 : i32
    %c0_i32_1 = arith.constant 0 : i32
    return %c0_i32, %c0_i32_0 : i32, i32
  }
  func.func @transform_3(%arg0: i32) -> (i32, i32) {
    %c0_i32 = arith.constant 0 : i32
    %c0_i32_0 = arith.constant 0 : i32
    %c0_i32_1 = arith.constant 0 : i32
    return %c0_i32, %c0_i32_0 : i32, i32
  }
  func.func @transform_4(%arg0: i32) -> (i32, i32) {
    %c0_i32 = arith.constant 0 : i32
    %c0_i32_0 = arith.constant 0 : i32
    %c0_i32_1 = arith.constant 0 : i32
    return %c0_i32, %c0_i32_0 : i32, i32
  }
  func.func @transform_5(%arg0: i32) -> (i32, i32) {
    %c0_i32 = arith.constant 0 : i32
    %c0_i32_0 = arith.constant 0 : i32
    %c0_i32_1 = arith.constant 0 : i32
    return %c0_i32, %c0_i32_0 : i32, i32
  }
  func.func @transform_6(%arg0: i32) -> (i32, i32) {
    %c0_i32 = arith.constant 0 : i32
    %c0_i32_0 = arith.constant 0 : i32
    %c0_i32_1 = arith.constant 0 : i32
    return %c0_i32, %c0_i32_0 : i32, i32
  }
  func.func @transform_7(%arg0: i32) -> (i32, i32) {
    %c0_i32 = arith.constant 0 : i32
    %c0_i32_0 = arith.constant 0 : i32
    %c0_i32_1 = arith.constant 0 : i32
    return %c0_i32, %c0_i32_0 : i32, i32
  }
  func.func @transform_8(%arg0: i32) -> (i32, i32) {
    %c0_i32 = arith.constant 0 : i32
    %c0_i32_0 = arith.constant 0 : i32
    %c0_i32_1 = arith.constant 0 : i32
    return %c0_i32, %c0_i32_0 : i32, i32
  }
  func.func @transform_9(%arg0: i32) -> (i32, i32) {
    %c0_i32 = arith.constant 0 : i32
    %c0_i32_0 = arith.constant 0 : i32
    %c0_i32_1 = arith.constant 0 : i32
    return %c0_i32, %c0_i32_0 : i32, i32
  }
  func.func @transform_10(%arg0: i32) -> (i32, i32) {
    %c0_i32 = arith.constant 0 : i32
    %c0_i32_0 = arith.constant 0 : i32
    %c0_i32_1 = arith.constant 0 : i32
    return %c0_i32, %c0_i32_0 : i32, i32
  }
  func.func @transform_11(%arg0: i32) -> (i32, i32) {
    %c0_i32 = arith.constant 0 : i32
    %c0_i32_0 = arith.constant 0 : i32
    %c0_i32_1 = arith.constant 0 : i32
    return %c0_i32, %c0_i32_0 : i32, i32
  }
  func.func @transform_12(%arg0: i32) -> (i32, i32) {
    %c0_i32 = arith.constant 0 : i32
    %c0_i32_0 = arith.constant 0 : i32
    %c0_i32_1 = arith.constant 0 : i32
    return %c0_i32, %c0_i32_0 : i32, i32
  }
  func.func @transform_13(%arg0: i32) -> (i32, i32) {
    %c0_i32 = arith.constant 0 : i32
    %c0_i32_0 = arith.constant 0 : i32
    %c0_i32_1 = arith.constant 0 : i32
    return %c0_i32, %c0_i32_0 : i32, i32
  }
  func.func @transform_14(%arg0: i32) -> (i32, i32) {
    %c0_i32 = arith.constant 0 : i32
    %c0_i32_0 = arith.constant 0 : i32
    %c0_i32_1 = arith.constant 0 : i32
    return %c0_i32, %c0_i32_0 : i32, i32
  }
  func.func @transform_15(%arg0: i32) -> (i32, i32) {
    %c0_i32 = arith.constant 0 : i32
    %c0_i32_0 = arith.constant 0 : i32
    %c0_i32_1 = arith.constant 0 : i32
    return %c0_i32, %c0_i32_0 : i32, i32
  }
  func.func @transform_16(%arg0: i32) -> (i32, i32) {
    %c0_i32 = arith.constant 0 : i32
    %c0_i32_0 = arith.constant 0 : i32
    %c0_i32_1 = arith.constant 0 : i32
    return %c0_i32, %c0_i32_0 : i32, i32
  }
  func.func @transform_17(%arg0: i32) -> (i32, i32) {
    %c0_i32 = arith.constant 0 : i32
    %c0_i32_0 = arith.constant 0 : i32
    %c0_i32_1 = arith.constant 0 : i32
    return %c0_i32, %c0_i32_0 : i32, i32
  }
  func.func @transform_18(%arg0: i32) -> (i32, i32, i32) {
    %c0_i32 = arith.constant 0 : i32
    %c0_i32_0 = arith.constant 0 : i32
    %c0_i32_1 = arith.constant 0 : i32
    return %arg0, %c0_i32, %c0_i32_0 : i32, i32, i32
  }
  func.func @transform_19(%arg0: i32) -> (i32, i32, i32) {
    %c0_i32 = arith.constant 0 : i32
    %c0_i32_0 = arith.constant 0 : i32
    %c0_i32_1 = arith.constant 0 : i32
    return %arg0, %c0_i32, %c0_i32_0 : i32, i32, i32
  }
  func.func @transform_20(%arg0: i32) -> (i32, i32, i32) {
    %c0_i32 = arith.constant 0 : i32
    %c0_i32_0 = arith.constant 0 : i32
    %c0_i32_1 = arith.constant 0 : i32
    return %arg0, %c0_i32, %c0_i32_0 : i32, i32, i32
  }
  func.func @transform_21(%arg0: i32) -> (i32, i32, i32) {
    %c0_i32 = arith.constant 0 : i32
    %c0_i32_0 = arith.constant 0 : i32
    %c0_i32_1 = arith.constant 0 : i32
    return %arg0, %c0_i32, %c0_i32_0 : i32, i32, i32
  }
  func.func @transform_22(%arg0: i32) -> (i32, i32, i32) {
    %c0_i32 = arith.constant 0 : i32
    %c0_i32_0 = arith.constant 0 : i32
    %c0_i32_1 = arith.constant 0 : i32
    return %arg0, %c0_i32, %c0_i32_0 : i32, i32, i32
  }
  func.func @transform_23(%arg0: i32) -> (i32, i32, i32) {
    %c0_i32 = arith.constant 0 : i32
    %c0_i32_0 = arith.constant 0 : i32
    %c0_i32_1 = arith.constant 0 : i32
    return %arg0, %c0_i32, %c0_i32_0 : i32, i32, i32
  }
  func.func @transform_24(%arg0: i32) -> (i32, i32, i32) {
    %c0_i32 = arith.constant 0 : i32
    %c0_i32_0 = arith.constant 0 : i32
    %c0_i32_1 = arith.constant 0 : i32
    return %arg0, %c0_i32, %c0_i32_0 : i32, i32, i32
  }
  func.func @transform_25(%arg0: i32) -> (i32, i32, i32) {
    %c0_i32 = arith.constant 0 : i32
    %c0_i32_0 = arith.constant 0 : i32
    %c0_i32_1 = arith.constant 0 : i32
    return %arg0, %c0_i32, %c0_i32_0 : i32, i32, i32
  }
  func.func @transform_26(%arg0: i32) -> (i32, i32, i32) {
    %c0_i32 = arith.constant 0 : i32
    %c0_i32_0 = arith.constant 0 : i32
    %c0_i32_1 = arith.constant 0 : i32
    return %arg0, %c0_i32, %c0_i32_0 : i32, i32, i32
  }
  func.func @transform_27(%arg0: i32) -> (i32, i32, i32) {
    %c0_i32 = arith.constant 0 : i32
    %c0_i32_0 = arith.constant 0 : i32
    %c0_i32_1 = arith.constant 0 : i32
    return %arg0, %c0_i32, %c0_i32_0 : i32, i32, i32
  }
  func.func @transform_28(%arg0: i32) -> (i32, i32, i32) {
    %c0_i32 = arith.constant 0 : i32
    %c0_i32_0 = arith.constant 0 : i32
    %c0_i32_1 = arith.constant 0 : i32
    return %arg0, %c0_i32, %c0_i32_0 : i32, i32, i32
  }
  func.func @transform_29(%arg0: i32) -> (i32, i32, i32) {
    %c0_i32 = arith.constant 0 : i32
    %c0_i32_0 = arith.constant 0 : i32
    %c0_i32_1 = arith.constant 0 : i32
    return %arg0, %c0_i32, %c0_i32_0 : i32, i32, i32
  }
  func.func @transform_30(%arg0: i32) -> (i32, i32, i32) {
    %c0_i32 = arith.constant 0 : i32
    %c0_i32_0 = arith.constant 0 : i32
    %c0_i32_1 = arith.constant 0 : i32
    return %arg0, %c0_i32, %c0_i32_0 : i32, i32, i32
  }
  func.func @transform_31(%arg0: i32) -> (i32, i32, i32) {
    %c0_i32 = arith.constant 0 : i32
    %c0_i32_0 = arith.constant 0 : i32
    %c0_i32_1 = arith.constant 0 : i32
    return %arg0, %c0_i32, %c0_i32_0 : i32, i32, i32
  }
  func.func @transform_32(%arg0: i32) -> (i32, i32) {
    %c0_i32 = arith.constant 0 : i32
    %c0_i32_0 = arith.constant 0 : i32
    %c0_i32_1 = arith.constant 0 : i32
    return %c0_i32, %c0_i32_0 : i32, i32
  }
  func.func @transform_33(%arg0: i32) -> (i32, i32) {
    %c0_i32 = arith.constant 0 : i32
    %c0_i32_0 = arith.constant 0 : i32
    %c0_i32_1 = arith.constant 0 : i32
    return %c0_i32, %c0_i32_0 : i32, i32
  }
}

</mosaic_0001>

<bundles_post_ra>
// kernel: get_forward.1
= control target key start
LH: loop header
LB: loop body
LE: loop exit
PB: predicated region body
PF: predicated region fallthrough
CT: control target
= control target key end

     0   :  { %s4144_s6 = smov 1   ;;  %s4145_s10 = smov 2   ;;  %s5081_s0 = inlined_call_operand.smem [shape: u32[34], index: -1, kind: input, shape index: {}] }
   0x1   :  { %s4204_s5 = sld [smem:[%s5081_s0]]   ;;  %s4146_s14 = smov 3  }
   0x2   :  { %s4209_s9 = sld [smem:[%s5081_s0 + %s4144_s6]]   ;;  %s4147_s18 = smov 4  }
   0x3   :  { %s4214_s13 = sld [smem:[%s5081_s0 + %s4145_s10]]   ;;  %s4148_s22 = smov 5  }
   0x4   :  { %s4219_s17 = sld [smem:[%s5081_s0 + %s4146_s14]]   ;;  %s4149_s26 = smov 6  }
   0x5   :  { %s4224_s21 = sld [smem:[%s5081_s0 + %s4147_s18]]   ;;  %s4150_s30 = smov 7  }
   0x6   :  { %s4229_s25 = sld [smem:[%s5081_s0 + %s4148_s22]]   ;;  %s4151_s4 = smov 8  }
   0x7   :  { %5096 = sst [smem:[#allocation9_spill]] %s4204_s5  ;;  %s4152_s10 = smov 9  }
   0x8   :  { %5097 = sst [smem:[#allocation10_spill]] %s4209_s9  ;;  %s4153_s15 = smov 10  }
   0x9   :  { %5098 = sst [smem:[#allocation11_spill]] %s4214_s13  ;;  %s4154_s20 = smov 11  }
   0xa   :  { %5099 = sst [smem:[#allocation12_spill]] %s4219_s17  ;;  %s4156_s1 = smov 13  }
   0xb   :  { %5100 = sst [smem:[#allocation13_spill]] %s4224_s21  ;;  %s4157_s7 = smov 14  }
   0xc   :  { %5101 = sst [smem:[#allocation14_spill]] %s4229_s25  ;;  %s4159_s22 = smov 16  }
   0xd   :  { %s4234_s29 = sld [smem:[%s5081_s0 + %s4149_s26]]   ;;  %s4155_s26 = smov 12  }
   0xe   :  { %s4239_s3 = sld [smem:[%s5081_s0 + %s4150_s30]]   ;;  %s4160_s28 = smov 17  }
   0xf   :  { %s4244_s8 = sld [smem:[%s5081_s0 + %s4151_s4]]  }
  0x10   :  { %s4249_s14 = sld [smem:[%s5081_s0 + %s4152_s10]]  }
  0x11   :  { %s4254_s19 = sld [smem:[%s5081_s0 + %s4153_s15]]   ;;  %s4158_s15 = smov 15  }
  0x12   :  { %s4259_s24 = sld [smem:[%s5081_s0 + %s4154_s20]]  }
  0x13   :  { %5102 = sst [smem:[#allocation15_spill]] %s4234_s29 }
  0x14   :  { %5103 = sst [smem:[#allocation16_spill]] %s4239_s3 }
  0x15   :  { %5104 = sst [smem:[#allocation17_spill]] %s4244_s8 }
  0x16   :  { %5105 = sst [smem:[#allocation18_spill]] %s4249_s14 }
  0x17   :  { %5106 = sst [smem:[#allocation19_spill]] %s4254_s19 }
  0x18   :  { %5107 = sst [smem:[#allocation20_spill]] %s4259_s24 }
  0x19   :  { %s4264_s30 = sld [smem:[%s5081_s0 + %s4155_s26]]  }
  0x1a   :  { %s4269_s6 = sld [smem:[%s5081_s0 + %s4156_s1]]  }
  0x1b   :  { %s4274_s12 = sld [smem:[%s5081_s0 + %s4157_s7]]   ;;  %s4161_s7 = smov 18  }
  0x1c   :  { %s4279_s20 = sld [smem:[%s5081_s0 + %s4158_s15]]   ;;  %s4162_s15 = smov 19  }
  0x1d   :  { %s4284_s27 = sld [smem:[%s5081_s0 + %s4159_s22]]   ;;  %s4163_s22 = smov 20  }
  0x1e   :  { %s4289_s4 = sld [smem:[%s5081_s0 + %s4160_s28]]   ;;  %s4164_s28 = smov 21  }
  0x1f   :  { %5108 = sst [smem:[#allocation21_spill]] %s4264_s30 }
  0x20   :  { %5109 = sst [smem:[#allocation22_spill]] %s4269_s6 }
  0x21   :  { %5110 = sst [smem:[#allocation23_spill]] %s4274_s12 }
  0x22   :  { %5111 = sst [smem:[#allocation24_spill]] %s4279_s20 }
  0x23   :  { %5112 = sst [smem:[#allocation25_spill]] %s4284_s27 }
  0x24   :  { %5113 = sst [smem:[#allocation26_spill]] %s4289_s4 }
  0x25   :  { %s4294_s21 = sld [smem:[%s5081_s0 + %s4161_s7]]   ;;  %s4165_s7 = smov 22  }
  0x26   :  { %s4299_s3 = sld [smem:[%s5081_s0 + %s4162_s15]]   ;;  %s4166_s15 = smov 23  }
  0x27   :  { %s4304_s14 = sld [smem:[%s5081_s0 + %s4163_s22]]   ;;  %s4167_s22 = smov 24  }
  0x28   :  { %s4309_s19 = sld [smem:[%s5081_s0 + %s4164_s28]]   ;;  %s4168_s28 = smov 25  }
  0x29   :  { %s4314_s25 = sld [smem:[%s5081_s0 + %s4165_s7]]   ;;  %s4169_s7 = smov 26  }
  0x2a   :  { %s4319_s29 = sld [smem:[%s5081_s0 + %s4166_s15]]   ;;  %s4170_s15 = smov 27  }
  0x2b   :  { %s4324_s8 = sld [smem:[%s5081_s0 + %s4167_s22]]   ;;  %s4171_s22 = smov 28  }
  0x2c   :  { %s4329_s4 = sld [smem:[%s5081_s0 + %s4168_s28]]   ;;  %s4172_s28 = smov 29  }
  0x2d   :  { %5114 = sst [smem:[#allocation27_spill]] %s4304_s14 }
  0x2e   :  { %s4334_s27 = sld [smem:[%s5081_s0 + %s4169_s7]]   ;;  %s4173_s7 = smov 30  }
  0x2f   :  { %s4339_s20 = sld [smem:[%s5081_s0 + %s4170_s15]]   ;;  %s4174_s15 = smov 31  }
  0x30   :  { %s4344_s5 = sld [smem:[%s5081_s0 + %s4171_s22]]   ;;  %s4175_s22 = smov 32  }
  0x31   :  { %s4349_s6 = sld [smem:[%s5081_s0 + %s4172_s28]]   ;;  %s4176_s28 = smov 33  }
  0x32   :  { %s4354_s30 = sld [smem:[%s5081_s0 + %s4173_s7]]  }
  0x33   :  { %s4359_s12 = sld [smem:[%s5081_s0 + %s4174_s15]]  }
  0x34   :  { %s4364_s9 = sld [smem:[%s5081_s0 + %s4175_s22]]  }
  0x35   :  { %s4369_s24 = sld [smem:[%s5081_s0 + %s4176_s28]]  }
  0x3a   :  { %5115 = sst [smem:[#allocation28_spill]] %s4364_s9 }
  0x3b   :  { %5116 = sst [smem:[#allocation29_spill]] %s4369_s24 }
  0x3c   :  { %73 = vsyncpa [#allocation7], 0  ;;  %s4371_s7 = smov 0  }
  0x3d LB: > { %s5117_s13 = sld [smem:[#allocation11_spill]]  ;;  %5118 = sst [smem:[#allocation30_spill]] %s4142_s7  ;;  %s4142_s7 = sphi %s4371_s7, %s79_s7  }
  0x3e   : > { %s4377_s10 = sadd.s32 4294967295, %s4142_s7   ;;  %p3642_p0 = scmp.ge.s32.totalorder %s4142_s7, 1 }
  0x3f   : > { %5119 = sst [smem:[#allocation31_spill]] %s4377_s10  ;;  %p1027_p1 = scmp.lt.s32.totalorder %s4142_s7, 4 }
  0x41   : > { %p1028_p2 = pnand %p3642_p0, %p1027_p1 }
  0x42   : > { %s5120_s17 = sld [smem:[#allocation12_spill]] (!%p1028_p2)  ;;  %s5121_s14 = sld [smem:[#allocation27_spill]] (!%p1028_p2) }
  0x43   : > { %1031 = sbr.rel (%p1028_p2) target bundleno = 5207 (0x1457), region = 148  ;;  %p1153_p3 = scmp.lt.s32.totalorder (!%p1028_p2), %s4377_s10, 2  ;;  %v4383_v0 = vld [vmem:[%s5117_s13] sm:$0xff] (!%p1028_p2)  ;;  %v4386_v1 = vld [vmem:[%s5117_s13 + $0x8] sm:$0xff] (!%p1028_p2) }
  0x44   : > { %s5122_s15 = sld [smem:[#allocation31_spill]] (!%p1028_p2) }
  0x48   : > { %v4389_v2 = vld [vmem:[%s5120_s17] sm:$0x3] (!%p1028_p2) }
  0x4a   : > { %s4392_s0 = scalar_select %p1153_p3, %s4377_s10, 2 }
  0x4b   : > { %p3653_p4 = scmp.ne.s32.totalorder %s5122_s15, 0 }
  0x4c   : > { %s3721_s11 = sshll.u32 %s4392_s0, 4  ;;  %s1168_s22 = scalar_lea.vmem %s4309_s19, %s4392_s0  ;;  %v4177_v3 = vmov (!%p3653_p4), 1   ;;  %v4178_v4 = vmov (!%p3653_p4), 0   ;;  %vm1217_vm0 = vcmask (!%p3653_p4), 64512   ;;  %vm1227_vm1 = vcmask (!%p3653_p4), 60416  }
  0x4d   : > { %s4398_s16 = scalar_lea.vmem %s4294_s21, %s3721_s11  ;;  %s4401_s18 = scalar_lea.vmem %s5121_s14, %s3721_s11  ;;  %3981 = vset.pattern.permute.xlu1 (!%p3653_p4), %v4177_v3  ;;  %3980 = vset.pattern.permute.xlu0 (!%p3653_p4), %v4178_v4  ;;  %vm1433_vm2 = vcmask (!%p3653_p4), 23552   ;;  %v1470_v33 = vlaneseq (!%p3653_p4)  ;;  %vm1462_vm3 = vcmask (!%p3653_p4), 1040384   ;;  %vm1310_vm4 = vcmask (!%p3653_p4), 1043456  }
  0x4e   : > { %s4406_s23 = scalar_lea.vmem %s4314_s25, %s3721_s11  ;;  %s1176_s26 = scalar_lea.vmem %s4319_s29, %s4392_s0  ;;  %1444 = vperm.xlu1 (!%p3653_p4), %3981, %v4383_v0   ;;  %1423 = vperm.xlu0 (!%p3653_p4), %3980, %v4383_v0   ;;  %vm1496_vm5 = vcmask (!%p3653_p4), 7168   ;;  %vm1506_vm6 = vcmask (!%p3653_p4), 15368   ;;  %vm1373_vm7 = vcmask (!%p3653_p4), 261120   ;;  %vm1576_vm9 = vcmask (!%p3653_p4), 1024  }
  0x4f   : > { %s4411_s28 = scalar_lea.vmem %s4324_s8, %s3721_s11  ;;  %s1184_s1 = scalar_lea.vmem %s4329_s4, %s4392_s0  ;;  %v4461_v38 = vshrl.u32 (!%p3653_p4), %v1470_v33, 7  ;;  %vm1363_vm11 = vcmask (!%p3653_p4), 130048   ;;  %vm1367_vm12 = vcmask (!%p3653_p4), 125952  }
  0x50   : > { %s3725_s2 = sshll.u32 %s4392_s0, 5  ;;  %s1195_s7 = scalar_lea.vmem %s4344_s5, %s4392_s0 }
  0x51   : > { %s4417_s13 = scalar_lea.vmem %s4334_s27, %s3725_s2  ;;  %s1198_s9 = scalar_lea.vmem %s4349_s6, %s4392_s0  ;;  %v1472_v43 = vsub.s32 (!%p3653_p4), 0, %v4461_v38  ;;  %v1478_v44 = vsub.s32 (!%p3653_p4), 1, %v4461_v38 }
  0x52   : > { %1212 = sbr.rel (%p3653_p4) target bundleno = 917 (0x395), region = 152  ;;  %s5123_s14 = sld [smem:[#allocation20_spill]] (!%p3653_p4)  ;;  %1448 = vperm.xlu1 (!%p3653_p4), %3981, %v4386_v1   ;;  %1428 = vperm.xlu0 (!%p3653_p4), %3980, %v4386_v1  }
  0x53   : > { %s5124_s11 = sld [smem:[#allocation10_spill]] (!%p3653_p4)  ;;  %s5125_s15 = sld [smem:[#allocation23_spill]] (!%p3653_p4) }
  0x54   : > { %s4179_s2 = smov (!%p3653_p4), 127   ;;  %s5127_s10 = sld [smem:[#allocation22_spill]] (!%p3653_p4) }
  0x55   : > { %s5128_s24 = sld [smem:[#allocation9_spill]] (!%p3653_p4) }
  0x56   : > { %1466 = vperm.xlu0 (!%p3653_p4), %3980, %v4389_v2   ;;  %3982 = vset.pattern.permute.xlu1 (!%p3653_p4), %v4178_v4 }
  0x58   : > { %v4436_v5 = vld [vmem:[%s5123_s14 + $0x8] sm:$0xff] (!%p3653_p4)  ;;  %v4439_v6 = vld [vmem:[%s5123_s14] sm:$0xff] (!%p3653_p4)  ;;  %v4446_v9 = vld [vmem:[%s5123_s14 + $0x10] sm:$0xff] (!%p3653_p4) }
  0x59   : > { %v1221_v7 = vsel %vm1217_vm0, %v4436_v5, 0.0  ;;  %v1218_v8 = vsel %vm1217_vm0, %v4439_v6, 0.0  ;;  %v4449_v10 = vld [vmem:[%s5123_s14 + $0x18] sm:$0xf]  ;;  %v1224_v11 = vsel %vm1217_vm0, %v4446_v9, 0.0  ;;  %v1419_v14 = vld [vmem:[%s5124_s11] sm:$0xff] }
  0x5a   : > { %v1228_v12 = vsel %vm1227_vm1, %v4449_v10, 0.0  ;;  %v1420_v16 = vld [vmem:[%s5124_s11 + $0x8] sm:$0xff] }
  0x75   : > { %1222 = vadd.xlane.f32.xlu0 %v1221_v7 }
  0x76   : > { %1219 = vadd.xlane.f32.xlu1 %v1218_v8 }
  0x79   : > { %1225 = vadd.xlane.f32.xlu0 %v1224_v11 }
  0x7a   : > { %1229 = vadd.xlane.f32.xlu1 %v1228_v12 }
  0xcd   : > { %v1445_v13 = vpop.permute.xlu1 %1444  ;;  %v1424_v15 = vpop.permute.xlu0 %1423 }
  0xce   : > { %v1451_v17 = vmul.f32 %v1445_v13, %v1419_v14  ;;  %v1431_v18 = vmul.f32 %v1424_v15, %v1419_v14 }
  0xd0   : > { %v1453_v23 = vsel %vm1433_vm2, %v1451_v17, 0.0  ;;  %v1434_v24 = vsel %vm1433_vm2, %v1431_v18, 0.0 }
  0xd1   : > { %v1449_v19 = vpop.permute.xlu1 %1448  ;;  %v1429_v20 = vpop.permute.xlu0 %1428 }
  0xd2   : > { %v1452_v21 = vmul.f32 %v1449_v19, %v1420_v16  ;;  %v1432_v22 = vmul.f32 %v1429_v20, %v1420_v16 }
  0xd4   : > { %v1454_v25 = vsel %vm1433_vm2, %v1452_v21, 0.0  ;;  %v1435_v26 = vsel %vm1433_vm2, %v1432_v22, 0.0  ;;  %v1294_v22 = vld [vmem:[%s5125_s15] sm:$0xf]  ;;  %s5126_s15 = sld [smem:[#allocation21_spill]] }
  0xd5   : > { %v1455_v27 = vadd.f32 %v1454_v25, %v1453_v23  ;;  %v1436_v28 = vadd.f32 %v1435_v26, %v1434_v24  ;;  %v1467_v45 = vpop.permute.xlu0 %1466  ;;  %3910 = vmatprep.subr.msk.bf16.mxu0 %vm1310_vm4, %v1294_v22 }
  0xd7   : > { %v1456_v29 = vrot.slane %v1455_v27, 4  ;;  %v1437_v30 = vrot.slane %v1436_v28, 4 }
  0xd9   : > { %v1457_v31 = vadd.f32 %v1456_v29, %v1455_v27  ;;  %v1438_v32 = vadd.f32 %v1437_v30, %v1436_v28 }
  0xdb   : > { %v1458_v34 = vrot.slane %v1457_v31, 2  ;;  %v1439_v35 = vrot.slane %v1438_v32, 2 }
  0xdd   : > { %v1440_v36 = vadd.f32 %v1439_v35, %v1438_v32  ;;  %v1459_v37 = vadd.f32 %v1458_v34, %v1457_v31 }
  0xdf   : > { %v1441_v39 = vrot.slane %v1440_v36, 1  ;;  %v1460_v40 = vrot.slane %v1459_v37, 1 }
  0xe1   : > { %v1442_v41 = vadd.f32 %v1441_v39, %v1440_v36  ;;  %v1461_v42 = vadd.f32 %v1460_v40, %v1459_v37 }
  0xe3   : > { %v1463_v46 = vsel %vm1462_vm3, %v1442_v41, %v1461_v42 }
  0xe4   : > { %v1469_v47 = vmul.f32 %v1467_v45, %v1463_v46 }
  0xe6   : > { %v1473_v48 = vrot.slane %v1469_v47, %v1472_v43  ;;  %v1479_v49 = vrot.slane %v1469_v47, %v1478_v44 }
  0xe8   : > { %v1474_v50 = vmul.f32 %v1473_v48, %v1424_v15  ;;  %v1475_v51 = vmul.f32 %v1473_v48, %v1429_v20  ;;  %v1480_v52 = vmul.f32 %v1479_v49, %v1445_v13  ;;  %v1481_v53 = vmul.f32 %v1479_v49, %v1449_v19 }
  0xea   : > { %v4470_v54 = vadd.f32 %v1480_v52, %v1474_v50  ;;  %v4472_v55 = vadd.f32 %v1481_v53, %v1475_v51 }
  0xec   : > { %v4475_v56 = vsub.f32 %v1419_v14, %v4470_v54  ;;  %v4478_v57 = vsub.f32 %v1420_v16, %v4472_v55 }
  0xee   : > { %v1486_v58 = vmul.f32 %v4475_v56, %v4475_v56  ;;  %v1487_v59 = vmul.f32 %v4478_v57, %v4478_v57 }
  0xf0   : > { %v1488_v60 = vsel %vm1433_vm2, %v1486_v58, 0.0  ;;  %v1491_v61 = vsel %vm1433_vm2, %v1487_v59, 0.0  ;;  %v3654_v59 = vld [vmem:[%s5126_s15] ss:$0 sm:$0xff]  ;;  %s4180_s15 = smov 1  }
  0xf1   : > { %1489 = vadd.xlane.f32.xlu0 %v1488_v60  ;;  %1492 = vadd.xlane.f32.xlu1 %v1491_v61 }
 0x102   : > { %v1223_v62 = vpop.xlane.xlu0 %1222 }
 0x103   : > { %v1233_v63 = vmul.f32 0.125, %v1223_v62  ;;  %v1220_v3 = vpop.xlane.xlu1 %1219 }
 0x104   : > { %v1232_v4 = vmul.f32 0.125, %v1220_v3 }
 0x105   : > { %v4487_v7 = vsub.f32 %v4436_v5, %v1233_v63  ;;  %v3655_v63 = vld [vmem:[%s5127_s10] ss:$0 sm:$0xff]  ;;  %s5129_s10 = sld [smem:[#allocation24_spill]] }
 0x106   : > { %v4490_v8 = vsub.f32 %v4439_v6, %v1232_v4  ;;  %v1226_v11 = vpop.xlane.xlu0 %1225  ;;  %v4519_v4 = vld [vmem:[%s5128_s24 + $0x8] sm:$0xff] }
 0x107   : > { %v1234_v12 = vmul.f32 0.125, %v1226_v11  ;;  %v1230_v13 = vpop.xlane.xlu1 %1229  ;;  %v1241_v14 = vmul.f32 %v4487_v7, %v4487_v7 }
 0x108   : > { %v1235_v15 = vmul.f32 0.125, %v1230_v13  ;;  %v1240_v16 = vmul.f32 %v4490_v8, %v4490_v8 }
 0x109   : > { %v4497_v17 = vsub.f32 %v4446_v9, %v1234_v12  ;;  %v1247_v5 = vsel %vm1217_vm0, %v1241_v14, 0.0 }
 0x10a   : > { %v4501_v18 = vsub.f32 %v4449_v10, %v1235_v15  ;;  %1248 = vadd.xlane.f32.xlu1 %v1247_v5  ;;  %v1244_v6 = vsel %vm1217_vm0, %v1240_v16, 0.0  ;;  %v1312_v10 = vsel %vm1310_vm4, %v1294_v22, 0  ;;  %v1377_v5 = vsel %vm1373_vm7, %v4519_v4, 0.0 }
 0x10b   : > { %1245 = vadd.xlane.f32.xlu0 %v1244_v6  ;;  %v1242_v19 = vmul.f32 %v4497_v17, %v4497_v17  ;;  %3781 = vmatpush3.bf16.msra.mxu0 %v1312_v10 }
 0x10c   : > { %v1243_v20 = vmul.f32 %v4501_v18, %v4501_v18 }
 0x10d   : > { %v1250_v21 = vsel %vm1217_vm0, %v1242_v19, 0.0 }
 0x10e   : > { %v1253_v9 = vsel %vm1227_vm1, %v1243_v20, 0.0 }
 0x10f   : > { %1251 = vadd.xlane.f32.xlu0 %v1250_v21  ;;  %1254 = vadd.xlane.f32.xlu1 %v1253_v9 }
 0x17e   : > { %v1490_v23 = vpop.xlane.xlu0 %1489  ;;  %v1493_v24 = vpop.xlane.xlu1 %1492 }
 0x17f   : > { %v1494_v25 = vmul.f32 %v1490_v23, %v4383_v0  ;;  %v1495_v26 = vmul.f32 %v1493_v24, %v4386_v1 }
 0x181   : > { %v1497_v27 = vsel %vm1496_vm5, %v1494_v25, 0.0  ;;  %v1507_v28 = vsel %vm1506_vm6, %v1494_v25, 0.0  ;;  %v1498_v29 = vsel %vm1496_vm5, %v1495_v26, 0.0  ;;  %v1508_v30 = vsel %vm1506_vm6, %v1495_v26, 0.0 }
 0x182   : > { %v1499_v31 = vadd.f32 %v1498_v29, %v1497_v27  ;;  %v1509_v32 = vadd.f32 %v1508_v30, %v1507_v28 }
 0x184   : > { %v1510_v33 = vrot.slane %v1509_v32, 4  ;;  %v1500_v22 = vrot.slane %v1499_v31, 4 }
 0x186   : > { %v1511_v34 = vadd.f32 %v1510_v33, %v1509_v32  ;;  %v1501_v10 = vadd.f32 %v1500_v22, %v1499_v31 }
 0x188   : > { %v1512_v35 = vrot.slane %v1511_v34, 2 }
 0x18a   : > { %v1513_v36 = vadd.f32 %v1512_v35, %v1511_v34 }
 0x18c   : > { %v1514_v37 = vrot.slane %v1513_v36, 1 }
 0x18e   : > { %v1515_v39 = vadd.f32 %v1514_v37, %v1513_v36  ;;  %v1369_v37 = vld [vmem:[%s5128_s24] sm:$0xff] }
 0x190   : > { %1517 = vrot.lane.b32.xlu0 %v1515_v39, %s4179_s2  ;;  %v1374_v39 = vsel %vm1373_vm7, %v1369_v37, 0.0 }
 0x197   : > { %v1249_v40 = vpop.xlane.xlu1 %1248 }
 0x198   : > { %v1257_v41 = vmul.f32 0.125, %v1249_v40  ;;  %v1246_v42 = vpop.xlane.xlu0 %1245  ;;  %v3656_v40 = vld [vmem:[%s5129_s10] ss:$0 sm:$0xff]  ;;  %s5130_s10 = sld [smem:[#allocation25_spill]] }
 0x199   : > { %v1256_v45 = vmul.f32 0.125, %v1246_v42 }
 0x19a   : > { %v1261_v46 = vadd.f32 1e-05, %v1257_v41 }
 0x19b   : > { %v1260_v47 = vadd.f32 1e-05, %v1256_v45 }
 0x19c   : > { %3983 = vrsqrt.f32 %v1261_v46  ;;  %v1252_v48 = vpop.xlane.xlu0 %1251  ;;  %v1255_v49 = vpop.xlane.xlu1 %1254 }
 0x19d   : > { %3985 = vrsqrt.f32 %v1260_v47  ;;  %v1258_v50 = vmul.f32 0.125, %v1252_v48  ;;  %v1259_v51 = vmul.f32 0.125, %v1255_v49 }
 0x19f   : > { %v1262_v52 = vadd.f32 1e-05, %v1258_v50  ;;  %v1263_v53 = vadd.f32 1e-05, %v1259_v51 }
 0x1a1   : > { %3987 = vrsqrt.f32 %v1262_v52 }
 0x1a2   : > { %3989 = vrsqrt.f32 %v1263_v53 }
 0x1a6   : > { %v3984_v58 = vpop.eup %3983 }
 0x1a7   : > { %v3986_v60 = vpop.eup %3985  ;;  %v1269_v61 = vmul.f32 %v3984_v58, %v4487_v7 }
 0x1a8   : > { %v1268_v62 = vmul.f32 %v3986_v60, %v4490_v8 }
 0x1a9   : > { %v1280_v3 = vmul.f32 %v3654_v59, %v1269_v61 }
 0x1aa   : > { %v1279_v11 = vmul.f32 %v3654_v59, %v1268_v62 }
 0x1ab   : > { %v3988_v12 = vpop.eup %3987  ;;  %v1291_v13 = vadd.f32 %v3655_v63, %v1280_v3 }
 0x1ac   : > { %v3990_v14 = vpop.eup %3989  ;;  %v1270_v15 = vmul.f32 %v3988_v12, %v4497_v17  ;;  %v1290_v16 = vadd.f32 %v3655_v63, %v1279_v11  ;;  %v1502_v17 = vrot.slane %v1501_v10, 2 }
 0x1ad   : > { %v1271_v6 = vmul.f32 %v3990_v14, %v4501_v18 }
 0x1ae   : > { %v1295_v7 = vpack.c.bf16 %v1291_v13, %v1290_v16  ;;  %v1281_v19 = vmul.f32 %v3654_v59, %v1270_v15  ;;  %v1503_v23 = vadd.f32 %v1502_v17, %v1501_v10 }
 0x1af   : > { %v1282_v8 = vmul.f32 %v3654_v59, %v1271_v6  ;;  %1378 = vadd.xlane.f32.xlu0 %v1377_v5 }
 0x1b0   : > { %3782 = vmatprep.mubr.msk.bf16.mxu0 %vm1217_vm0, %v1295_v7  ;;  %v1292_v20 = vadd.f32 %v3655_v63, %v1281_v19  ;;  %v1504_v24 = vrot.slane %v1503_v23, 1 }
 0x1b1   : > { %v1293_v21 = vadd.f32 %v3655_v63, %v1282_v8 }
 0x1b2   : > { %v1505_v25 = vadd.f32 %v1504_v24, %v1503_v23 }
 0x1b3   : > { %v1296_v9 = vpack.c.bf16 %v1293_v21, %v1292_v20  ;;  %v3659_v21 = vld [vmem:[%s5130_s10] ss:$0 sm:$0xff] }
 0x1b5   : > { %3783 = vmatmul.mubr.msk.bf16.vlgmr.msra.gmra.mrb[0].mxu0 %vm1217_vm0, %v1296_v9 }
 0x202   : > { %v1518_v26 = vpop.permute.xlu0 %1517 }
 0x203   : > { %v1520_v18 = vsel %vm1462_vm3, %v1505_v25, %v1518_v26 }
 0x204   : > { %v1521_v27 = vmul.f32 %v1520_v18, %v4389_v2 }
 0x206   : > { %v1523_v28 = vmul.f32 0.33333334, %v1521_v27 }
 0x208   : > { %v1524_v29 = vadd.f32 1e-06, %v1523_v28 }
 0x20a   : > { %3991 = vrsqrt.f32 %v1524_v29  ;;  %vm1527_vm8 = vcmp.eq.f32.partialorder %v1524_v29, inf  ;;  %v1530_v33 = vand.u32 2147483648, %v1524_v29  ;;  %vm1529_vm10 = vcmp.eq.f32.partialorder %v1524_v29, 0.0 }
 0x214   : > { %v3992_v30 = vpop.eup %3991 }
 0x215   : > { %v1526_v32 = vmul.f32 %v3992_v30, %v1524_v29 }
 0x217   : > { %v1528_v31 = vsel %vm1527_vm8, %v1524_v29, %v1526_v32 }
 0x218   : > { %v1531_v34 = vsel %vm1529_vm10, %v1530_v33, %v1528_v31 }
 0x219   : > { %3993 = vrcp.f32 %v1531_v34  ;;  %1577 = vst.msk [vmem:[#allocation4] sm:$0x3] %vm1576_vm9, %v1531_v34 }
 0x223   : > { %v3994_v35 = vpop.eup %3993 }
 0x224   : > { %v1543_v36 = vrot.slane %v3994_v35, %v1478_v44  ;;  %v1537_v13 = vrot.slane %v3994_v35, %v1472_v43 }
 0x226   : > { %1545 = vrot.lane.b32.xlu1 %v1543_v36, %s4180_s15  ;;  %v1538_v14 = vmul.f32 %v1537_v13, %v4383_v0 }
 0x23c   : > { %v1379_v53 = vpop.xlane.xlu0 %1378 }
 0x23d   : > { %v1382_v58 = vmul.f32 0.03125, %v1379_v53 }
 0x23f   : > { %v1384_v59 = vsub.f32 %v4519_v4, %v1382_v58  ;;  %v1539_v4 = vmul.f32 %v1537_v13, %v4386_v1 }
 0x241   : > { %v1386_v60 = vmul.f32 %v1384_v59, %v1384_v59 }
 0x243   : > { %v1390_v61 = vsel %vm1373_vm7, %v1386_v60, 0.0 }
 0x24a   : > { %1375 = vadd.xlane.f32.xlu1 %v1374_v39 }
 0x288   : > { %v3784_v41 = vpop.f32.mrb[0].mxu0 }
 0x289   : > { %v1357_v42 = vadd.f32 %v3784_v41, %v3656_v40  ;;  %v1348_v45 = vpop.f32.mrb[1].mxu0 }
 0x28a   : > { %v1349_v46 = vadd.f32 %v3656_v40, %v1348_v45  ;;  %v3785_v47 = vpop.f32.mrb[2].mxu0 }
 0x28b   : > { %1366 = vst.msk [vmem:[#allocation5 + $0x10] sm:$0xff] %vm1363_vm11, %v1357_v42  ;;  %v1360_v48 = vadd.f32 %v3785_v47, %v3656_v40  ;;  %v1351_v49 = vpop.f32.mrb[3].mxu0 }
 0x28c   : > { %1364 = vst.msk [vmem:[#allocation5] sm:$0xff] %vm1363_vm11, %v1349_v46  ;;  %v1352_v50 = vadd.f32 %v3656_v40, %v1351_v49 }
 0x28d   : > { %1368 = vst.msk [vmem:[#allocation5 + $0x18] sm:$0xf] %vm1367_vm12, %v1360_v48 }
 0x28e   : > { %1365 = vst.msk [vmem:[#allocation5 + $0x8] sm:$0xff] %vm1363_vm11, %v1352_v50 }
 0x298   : > { %v1546_v44 = vpop.permute.xlu1 %1545 }
 0x299   : > { %v1548_v51 = vmul.f32 %v1546_v44, %v4383_v0  ;;  %v1549_v52 = vmul.f32 %v1546_v44, %v4386_v1 }
 0x29b   : > { %1554 = vrot.lane.b32.xlu1 %v1549_v52, %s4179_s2  ;;  %1552 = vrot.lane.b32.xlu0 %v1548_v51, %s4179_s2  ;;  %s5131_s2 = sld [smem:[#allocation26_spill]] }
 0x2a1   : > { %v3660_v38 = vld [vmem:[%s5131_s2] ss:$0 sm:$0xff] }
 0x2ba   : > { %1391 = vadd.xlane.f32.xlu0 %v1390_v61 }
 0x2d7   : > { %v1376_v62 = vpop.xlane.xlu1 %1375 }
 0x2d8   : > { %v1381_v63 = vmul.f32 0.03125, %v1376_v62 }
 0x2da   : > { %v1383_v3 = vsub.f32 %v1369_v37, %v1381_v63 }
 0x2dc   : > { %v1385_v11 = vmul.f32 %v1383_v3, %v1383_v3 }
 0x2de   : > { %v1387_v12 = vsel %vm1373_vm7, %v1385_v11, 0.0 }
 0x2df   : > { %1388 = vadd.xlane.f32.xlu1 %v1387_v12 }
 0x30d   : > { %v1553_v15 = vpop.permute.xlu0 %1552  ;;  %v1555_v16 = vpop.permute.xlu1 %1554 }
 0x30e   : > { %v1558_v5 = vadd.f32 %v1553_v15, %v1538_v14  ;;  %v1559_v6 = vadd.f32 %v1555_v16, %v1539_v4 }
 0x310   : > { %1562 = vperm.xlu0 %3980, %v1558_v5   ;;  %1567 = vperm.xlu1 %3982, %v1559_v6  }
 0x347   : > { %v1392_v7 = vpop.xlane.xlu0 %1391 }
 0x348   : > { %v1394_v19 = vmul.f32 0.03125, %v1392_v7 }
 0x34a   : > { %v1396_v8 = vadd.f32 1e-05, %v1394_v19 }
 0x34c   : > { %3995 = vrsqrt.f32 %v1396_v8 }
 0x356   : > { %v3996_v20 = vpop.eup %3995 }
 0x357   : > { %v1400_v9 = vmul.f32 %v3996_v20, %v1384_v59 }
 0x359   : > { %v1408_v43 = vmul.f32 %v3659_v21, %v1400_v9 }
 0x35b   : > { %v1416_v22 = vadd.f32 %v3660_v38, %v1408_v43 }
 0x35d   : > { %1418 = vst.msk [vmem:[#allocation2 + $0x8] sm:$0xff] %vm1373_vm7, %v1416_v22 }
 0x36c   : > { %v1389_v10 = vpop.xlane.xlu1 %1388 }
 0x36d   : > { %v1393_v17 = vmul.f32 0.03125, %v1389_v10 }
 0x36f   : > { %v1395_v23 = vadd.f32 1e-05, %v1393_v17 }
 0x371   : > { %3997 = vrsqrt.f32 %v1395_v23 }
 0x37b   : > { %v3998_v24 = vpop.eup %3997 }
 0x37c   : > { %v1399_v25 = vmul.f32 %v3998_v24, %v1383_v3 }
 0x37e   : > { %v1407_v26 = vmul.f32 %v3659_v21, %v1399_v25 }
 0x380   : > { %v1415_v18 = vadd.f32 %v3660_v38, %v1407_v26 }
 0x382   : > { %1417 = vst.msk [vmem:[#allocation2] sm:$0xff] %vm1373_vm7, %v1415_v18 }
 0x38f   : > { %v1563_v27 = vpop.permute.xlu0 %1562  ;;  %v1568_v28 = vpop.permute.xlu1 %1567 }
 0x390   : > { %v1570_v29 = vmul.f32 %v1563_v27, %v4475_v56  ;;  %v1571_v30 = vmul.f32 %v1568_v28, %v4478_v57 }
 0x392   : > { %v1572_v32 = vadd.f32 %v1570_v29, %v4470_v54  ;;  %v1573_v33 = vadd.f32 %v1571_v30, %v4472_v55 }
 0x394   : > { %1574 = vst.msk [vmem:[#allocation3] sm:$0xff] %vm1433_vm2, %v1572_v32  ;;  %1575 = vst.msk [vmem:[#allocation3 + $0x8] sm:$0xff] %vm1433_vm2, %v1573_v33 }
 0x395 PF: > { %v4013_v31 = vld [vmem:[%s4398_s16] sm:$0xff]   ;;  %v4181_v34 = vmov 0.0   ;;  %v4014_v35 = vld [vmem:[%s4398_s16 + $0x8] sm:$0xff]   ;;  %vm4182_vm13 = vmmov 0   ;;  %s5132_s15 = sld [smem:[#allocation17_spill]]  ;;  %vm1681_vm14 = vcmask 23552   ;;  %s5133_s16 = scalar_lea.vmem %s4299_s3, %s4392_s0  ;;  %v1763_v40 = vlaneseq }
 0x396   : > { %3786 = vmatprep.subr.bf16.mxu1 %v4181_v34  ;;  %3790 = vmatprep.mubr.msk.bf16.mxu1 %vm4182_vm13, %v4181_v34  ;;  %v1578_v54 = vld [vmem:[#allocation2] sm:$0xff]  ;;  %v1579_v55 = vld [vmem:[#allocation2 + $0x8] sm:$0xff]  ;;  %vm1623_vm15 = vcmask 261120   ;;  %vm3893_vm0 = vmpackc.low %vm1681_vm14, %vm1681_vm14  ;;  %s5134_s10 = sld [smem:[#allocation15_spill]]  ;;  %vm1772_vm3 = vcmask 130048   ;;  %s5135_s2 = sld [smem:[#allocation14_spill]] }
 0x397   : > { %3787 = vmatpush3.bf16.msra.mxu1 %v4013_v31  ;;  %v1603_v37 = vpack.c.bf16 %v1579_v55, %v1578_v54  ;;  %v3661_v39 = vld [vmem:[%s5133_s16] ss:$0 sm:$0xff]  ;;  %v4596_v51 = vshrl.u32 %v1763_v40, 7  ;;  %v1767_v4 = vand.u32 127, %v1763_v40  ;;  %vm1869_vm4 = vcmask 125952   ;;  %s5136_s16 = sld [smem:[#allocation19_spill]] }
 0x398   : > { %3788 = vmatprep.subr.bf16.mxu1 %v4181_v34  ;;  %s4184_s17 = smov 96  }
 0x399   : > { %v1765_v5 = vadd.s32 8, %v4596_v51  ;;  %vm1768_vm2 = vcmp.eq.s32.totalorder %v4596_v51, %v1767_v4 }
 0x39b   : > { %v4560_v56 = vld [vmem:[#allocation3] sm:$0xff]  ;;  %v4563_v57 = vld [vmem:[#allocation3 + $0x8] sm:$0xff]  ;;  %3789 = vmatpush3.bf16.msra.mxu1 %v4014_v35  ;;  %v4585_v45 = vld [vmem:[%s5132_s15] sm:$0xff]  ;;  %vm1769_vm1 = vcmp.eq.s32.totalorder %v1765_v5, %v1767_v4 }
 0x39c   : > { %v4567_v36 = vpack.c.bf16 %v4563_v57, %v4560_v56  ;;  %v4582_v41 = vld [vmem:[%s5132_s15 + $0x10] sm:$0xff]  ;;  %v4588_v46 = vld [vmem:[%s5132_s15 + $0x20] sm:$0xff]  ;;  %v4594_v50 = vld [vmem:[%s5132_s15 + $0x18] sm:$0xff] }
 0x39d   : > { %v4591_v49 = vld [vmem:[%s5132_s15 + $0x30] sm:$0xff]  ;;  %v4599_v52 = vld [vmem:[%s5132_s15 + $0x8] sm:$0xff]  ;;  %v4614_v63 = vld [vmem:[%s5132_s15 + $0x38] sm:$0xff] }
 0x39e   : > { %3894 = vmatprep.subr.msk.bf16.mxu1 %vm3893_vm0, %v4567_v36  ;;  %3791 = vmatmul.mubr.msk.bf16.vlgmr.msra.gmra.mrb[0].mxu1 %vm1623_vm15, %v1603_v37  ;;  %v4602_v53 = vld [vmem:[%s5132_s15 + $0x28] sm:$0xff]  ;;  %v1794_v10 = vld [vmem:[%s5134_s10] sm:$0xff]  ;;  %v1796_v40 = vld [vmem:[%s5134_s10 + $0x10] sm:$0xff] }
 0x39f   : > { %3798 = vmatprep.mubr.msk.f32.mxu1 %vm1681_vm14, %v4560_v56  ;;  %v1795_v17 = vld [vmem:[%s5134_s10 + $0x8] sm:$0xff] }
 0x3a0   : > { %v1798_v23 = vpack.c.bf16 %v1795_v17, %v1794_v10  ;;  %v4666_v10 = vld [vmem:[%s5135_s2 + $0x18] sm:$0xf] }
 0x3a4   : > { %3897 = vmatpush3.bf16.xpose.msk.msra.mxu1 %vm3893_vm0, %v4567_v36  ;;  %vm2137_vm0 = vcmask 1045504  }
 0x3ab   : > { %3799 = vmatmul.mubr.msk.f32.vlgmr.msra.gmra.mrb[4].mxu1 %vm1681_vm14, %v4563_v57 }
 0x3ac   : > { %3803 = vmatprep.mubr.msk.bf16.mxu1 %vm1772_vm3, %v1798_v23 }
 0x471   : > { %v1661_v42 = vpop.f32.mrb[0].mxu1 }
 0x472   : > { %v1662_v47 = vadd.f32 %v3661_v39, %v1661_v42  ;;  %v3792_v48 = vpop.f32.mrb[1].mxu1  ;;  %v1797_v42 = vld [vmem:[%s5134_s10 + $0x18] sm:$0xf] }
 0x473   : > { %v1664_v44 = vpop.f32.mrb[2].mxu1  ;;  %v1799_v48 = vpack.c.bf16 %v1797_v42, %v1796_v40 }
 0x474   : > { %v4605_v58 = vmul.f32 %v1662_v47, %v4582_v41  ;;  %v1665_v59 = vadd.f32 %v3661_v39, %v1664_v44  ;;  %v3793_v60 = vpop.f32.mrb[3].mxu1  ;;  %v4608_v61 = vmul.f32 %v1662_v47, %v4585_v45  ;;  %v4611_v62 = vmul.f32 %v1662_v47, %v4588_v46  ;;  %v4652_v44 = vld [vmem:[%s5135_s2 + $0x10] sm:$0xff] }
 0x475   : > { %v4617_v3 = vmul.f32 %v1662_v47, %v4591_v49 }
 0x476   : > { %v4620_v11 = vmul.f32 %v1665_v59, %v4594_v50  ;;  %v4622_v12 = vpack.c.bf16 %v1665_v59, %v1662_v47  ;;  %v4625_v13 = vmul.f32 %v1665_v59, %v4599_v52  ;;  %v4628_v14 = vmul.f32 %v1665_v59, %v4602_v53 }
 0x477   : > { %v4631_v15 = vmul.f32 %v1665_v59, %v4614_v63  ;;  %v4655_v59 = vld [vmem:[%s5135_s2] sm:$0xff] }
 0x478   : > { %v1677_v16 = vpack.c.bf16 %v4620_v11, %v4605_v58  ;;  %v1676_v6 = vpack.c.bf16 %v4625_v13, %v4608_v61  ;;  %v1678_v7 = vpack.c.bf16 %v4628_v14, %v4611_v62 }
 0x479   : > { %v1679_v19 = vpack.c.bf16 %v4631_v15, %v4617_v3 }
 0x47e   : > { %v3800_v8 = vpop.f32.mrb[4].mxu1 }
 0x47f   : > { %v1754_v20 = vpop.f32.mrb[5].mxu1  ;;  %v1771_v21 = vsel %vm1769_vm1, %v3800_v8, 0.0  ;;  %v1789_v35 = vmul.f32 2.0, %v3800_v8  ;;  %v4659_v8 = vld [vmem:[%s5135_s2 + $0x8] sm:$0xff]  ;;  %vm2043_vm1 = vcmask 1041408  }
 0x480   : > { %v1770_v9 = vsel %vm1768_vm2, %v1754_v20, 0.0  ;;  %v1776_v38 = vsel %vm1772_vm3, %v1771_v21, 0.0  ;;  %v1788_v30 = vmul.f32 2.0, %v1754_v20  ;;  %vm2036_vm2 = vcmask 31744  }
 0x481   : > { %v1773_v43 = vsel %vm1772_vm3, %v1770_v9, 0.0 }
 0x482   : > { %1774 = vadd.xlane.f32.xlu0 %v1773_v43  ;;  %v1779_v22 = vadd.f32 %v1776_v38, %v1773_v43 }
 0x484   : > { %v1780_v24 = vrot.slane %v1779_v22, 4 }
 0x486   : > { %1777 = vadd.xlane.f32.xlu0 %v1776_v38  ;;  %v1781_v25 = vadd.f32 %v1780_v24, %v1779_v22 }
 0x488   : > { %v1782_v26 = vrot.slane %v1781_v25, 2 }
 0x48a   : > { %v1783_v18 = vadd.f32 %v1782_v26, %v1781_v25 }
 0x48c   : > { %v1784_v27 = vrot.slane %v1783_v18, 1 }
 0x48e   : > { %v1785_v28 = vadd.f32 %v1784_v27, %v1783_v18 }
 0x50f   : > { %v1775_v29 = vpop.xlane.xlu0 %1774 }
 0x510   : > { %v1786_v32 = vadd.f32 %v1785_v28, %v1775_v29 }
 0x512   : > { %v1790_v33 = vsub.f32 %v1786_v32, %v1788_v30 }
 0x513   : > { %v1778_v31 = vpop.xlane.xlu0 %1777 }
 0x514   : > { %v1787_v54 = vadd.f32 %v1785_v28, %v1778_v31  ;;  %v1792_v37 = vmax.f32 %v1790_v33, 0.0 }
 0x516   : > { %v1791_v55 = vsub.f32 %v1787_v54, %v1789_v35 }
 0x518   : > { %v1793_v39 = vmax.f32 %v1791_v55, 0.0 }
 0x51a   : > { %v1800_v47 = vpack.c.bf16 %v1793_v39, %v1792_v37  ;;  %v3671_v37 = vld [vmem:[%s5136_s16] ss:$0 sm:$0xff]  ;;  %s4183_s16 = smov 16  }
 0x51c   : > { %3801 = vmatprep.subr.bf16.mxu1 %v1800_v47 }
 0x51d   : > { %3802 = vmatpush3.bf16.msra.mxu1 %v1800_v47 }
 0x520   : > { %3804 = vmatmul.mubr.msk.bf16.vlgmr.msra.gmra.mrb[8].mxu1 %vm1772_vm3, %v1799_v48 }
 0x5f3   : > { %v3805_v60 = vpop.f32.mrb[8].mxu1 }
 0x5f4   : > { %v1858_v4 = vmul.f32 %v3805_v60, %v4652_v44  ;;  %v1841_v5 = vpop.f32.mrb[9].mxu1 }
 0x5f5   : > { %v1856_v20 = vmul.f32 %v1841_v5, %v4655_v59  ;;  %v3806_v21 = vpop.f32.mrb[10].mxu1 }
 0x5f6   : > { %v1844_v9 = vpop.f32.mrb[11].mxu1  ;;  %v1866_v38 = vsel %vm1772_vm3, %v1858_v4, 0.0  ;;  %v1859_v17 = vmul.f32 %v3806_v21, %v4666_v10 }
 0x5f7   : > { %v1857_v43 = vmul.f32 %v1844_v9, %v4659_v8  ;;  %1867 = vadd.xlane.f32.xlu0 %v1866_v38  ;;  %v1860_v22 = vsel %vm1772_vm3, %v1856_v20, 0.0 }
 0x5f8   : > { %1861 = vadd.xlane.f32.xlu1 %v1860_v22  ;;  %v1870_v24 = vsel %vm1869_vm4, %v1859_v17, 0.0  ;;  %vm2124_vm4 = vcmask 228352  }
 0x5f9   : > { %v1863_v23 = vsel %vm1772_vm3, %v1857_v43, 0.0 }
 0x5fc   : > { %1864 = vadd.xlane.f32.xlu1 %v1863_v23 }
 0x600   : > { %1871 = vadd.xlane.f32.xlu1 %v1870_v24 }
 0x684   : > { %v1868_v25 = vpop.xlane.xlu0 %1867 }
 0x685   : > { %v1875_v26 = vadd.f32 1e-12, %v1868_v25  ;;  %v1862_v18 = vpop.xlane.xlu1 %1861 }
 0x686   : > { %v1873_v27 = vadd.f32 1e-12, %v1862_v18 }
 0x687   : > { %4025 = vrsqrt.f32 %v1875_v26  ;;  %vm1893_vm5 = vcmp.eq.f32.partialorder %v1875_v26, inf  ;;  %v1896_v54 = vand.u32 2147483648, %v1875_v26  ;;  %vm1895_vm6 = vcmp.eq.f32.partialorder %v1875_v26, 0.0 }
 0x688   : > { %4027 = vrsqrt.f32 %v1873_v27  ;;  %vm1879_vm7 = vcmp.eq.f32.partialorder %v1873_v27, inf  ;;  %v1882_v40 = vand.u32 2147483648, %v1873_v27  ;;  %vm1881_vm8 = vcmp.eq.f32.partialorder %v1873_v27, 0.0 }
 0x689   : > { %v1865_v28 = vpop.xlane.xlu1 %1864 }
 0x68a   : > { %v1874_v29 = vadd.f32 1e-12, %v1865_v28 }
 0x68c   : > { %4029 = vrsqrt.f32 %v1874_v29  ;;  %vm1886_vm9 = vcmp.eq.f32.partialorder %v1874_v29, inf  ;;  %v1889_v21 = vand.u32 2147483648, %v1874_v29  ;;  %vm1888_vm10 = vcmp.eq.f32.partialorder %v1874_v29, 0.0 }
 0x68d   : > { %v1872_v30 = vpop.xlane.xlu1 %1871 }
 0x68e   : > { %v1876_v32 = vadd.f32 1e-12, %v1872_v30 }
 0x690   : > { %4031 = vrsqrt.f32 %v1876_v32  ;;  %vm1900_vm11 = vcmp.eq.f32.partialorder %v1876_v32, inf  ;;  %vm1902_vm12 = vcmp.eq.f32.partialorder %v1876_v32, 0.0 }
 0x691   : > { %v4026_v33 = vpop.eup %4025 }
 0x692   : > { %v4028_v31 = vpop.eup %4027  ;;  %v1892_v35 = vmul.f32 %v4026_v33, %v1875_v26 }
 0x693   : > { %v1878_v55 = vmul.f32 %v4028_v31, %v1873_v27 }
 0x694   : > { %v1894_v39 = vsel %vm1893_vm5, %v1875_v26, %v1892_v35  ;;  %v1903_v26 = vand.u32 2147483648, %v1876_v32  ;;  %vm2845_vm5 = vcmask 15368  }
 0x695   : > { %v1880_v42 = vsel %vm1879_vm7, %v1873_v27, %v1878_v55  ;;  %v1897_v47 = vsel %vm1895_vm6, %v1896_v54, %v1894_v39  ;;  %v4015_v55 = vld [vmem:[%s4406_s23] sm:$0xff]  }
 0x696   : > { %v4030_v48 = vpop.eup %4029  ;;  %v1883_v60 = vsel %vm1881_vm8, %v1882_v40, %v1880_v42  ;;  %v1914_v4 = vsub.f32 %v1897_v47, %v3671_v37  ;;  %3807 = vmatprep.subr.bf16.mxu0 %v4015_v55  ;;  %v2106_v42 = vpack.c.bf16 %v4659_v8, %v4655_v59  ;;  %v4016_v47 = vld [vmem:[%s4406_s23 + $0x8] sm:$0xff]   ;;  %s5137_s23 = sld [smem:[#allocation18_spill]]  ;;  %vm3028_vm8 = vcmask 523264  }
 0x697   : > { %v1885_v5 = vmul.f32 %v4030_v48, %v1874_v29  ;;  %v1912_v20 = vsub.f32 %v1883_v60, %v3671_v37  ;;  %3808 = vmatpush3.bf16.msra.mxu0 %v4015_v55  ;;  %v1582_v8 = vld [vmem:[#allocation5] sm:$0xff] }
 0x698   : > { %v1918_v17 = vmul.f32 %v1914_v4, %v1914_v4  ;;  %3809 = vmatprep.subr.bf16.mxu0 %v4016_v47 }
 0x699   : > { %v1887_v9 = vsel %vm1886_vm9, %v1874_v29, %v1885_v5  ;;  %v1916_v38 = vmul.f32 %v1912_v20, %v1912_v20 }
 0x69a   : > { %v4032_v43 = vpop.eup %4031  ;;  %v1890_v22 = vsel %vm1888_vm10, %v1889_v21, %v1887_v9  ;;  %v1922_v33 = vmul.f32 -2.2857144, %v1918_v17  ;;  %v1583_v21 = vld [vmem:[#allocation5 + $0x8] sm:$0xff]  ;;  %v1584_v17 = vld [vmem:[#allocation5 + $0x10] sm:$0xff] }
 0x69b   : > { %v1899_v23 = vmul.f32 %v4032_v43, %v1876_v32  ;;  %v1913_v24 = vsub.f32 %v1890_v22, %v3671_v37  ;;  %v1920_v25 = vmul.f32 -2.2857144, %v1916_v38  ;;  %3810 = vmatpush3.bf16.msra.mxu0 %v4016_v47 }
 0x69c   : > { %v1928_v39 = vmul.f32 1.442695, %v1922_v33  ;;  %3821 = vmatprep.subr.bf16.mxu0 %v2106_v42 }
 0x69d   : > { %v1901_v18 = vsel %vm1900_vm11, %v1876_v32, %v1899_v23  ;;  %v1917_v27 = vmul.f32 %v1913_v24, %v1913_v24  ;;  %v1924_v28 = vmul.f32 1.442695, %v1920_v25  ;;  %v1585_v23 = vld [vmem:[#allocation5 + $0x18] sm:$0xf]  ;;  %vm3259_vm11 = vcmask 1024  }
 0x69e   : > { %v1904_v30 = vsel %vm1902_vm12, %v1903_v26, %v1901_v18 }
 0x69f   : > { %v1921_v31 = vmul.f32 -2.2857144, %v1917_v27  ;;  %v1915_v35 = vsub.f32 %v1904_v30, %v3671_v37  ;;  %4033 = vpow2.f32 %v1924_v28  ;;  %v2107_v30 = vpack.c.bf16 %v4666_v10, %v4652_v44  ;;  %v3672_v10 = vld [vmem:[%s1176_s26] ss:$0 sm:$0xff]  ;;  %s5139_s26 = sld [smem:[#allocation13_spill]] }
 0x6a1   : > { %v1926_v29 = vmul.f32 1.442695, %v1921_v31  ;;  %v1919_v54 = vmul.f32 %v1915_v35, %v1915_v35  ;;  %v2139_v31 = vsel %vm2137_vm0, %v2107_v30, 0 }
 0x6a3   : > { %4035 = vpow2.f32 %v1926_v29  ;;  %v1923_v40 = vmul.f32 -2.2857144, %v1919_v54  ;;  %v2032_v29 = vld [vmem:[%s5137_s23] sm:$0xf] }
 0x6a4   : > { %4037 = vpow2.f32 %v1928_v39  ;;  %v2035_v54 = vpack.c.bf16 %v2032_v29, %v2032_v29 }
 0x6a5   : > { %v1930_v32 = vmul.f32 1.442695, %v1923_v40  ;;  %v2291_v61 = vld [vmem:[%s5139_s26 + $0x10] sm:$0xff]  ;;  %v2289_v58 = vld [vmem:[%s5139_s26] sm:$0xff]  ;;  %v2292_v11 = vld [vmem:[%s5139_s26 + $0x18] sm:$0xff] }
 0x6a6   : > { %3911 = vmatprep.subr.msk.bf16.mxu1 %vm2043_vm1, %v2035_v54  ;;  %v2045_v55 = vsel %vm2043_vm1, %v2035_v54, 0  ;;  %v2295_v54 = vld [vmem:[%s5139_s26 + $0x30] sm:$0xff] }
 0x6a7   : > { %4039 = vpow2.f32 %v1930_v32  ;;  %3816 = vmatpush3.bf16.msra.mxu1 %v2045_v55 }
 0x6a9   : > { %v4034_v37 = vpop.eup %4033 }
 0x6ad   : > { %v4036_v48 = vpop.eup %4035 }
 0x6ae   : > { %v3999_v60 = vpack.i.bf16 %v4036_v48, %v4034_v37  ;;  %v4038_v4 = vpop.eup %4037 }
 0x6b0   : > { %4000 = vrot.lane.b32.xlu0 %v3999_v60, %s4183_s16 }
 0x6b1   : > { %v4040_v5 = vpop.eup %4039 }
 0x6b2   : > { %v4004_v20 = vpack.i.bf16 %v4040_v5, %v4038_v4 }
 0x6b4   : > { %4005 = vrot.lane.b32.xlu1 %v4004_v20, %s4183_s16  ;;  %s4185_s16 = smov 64  }
 0x6b8   : > { %2207 = vrot.lane.b32.xlu1 %v4622_v12, %s4184_s17  ;;  %s5138_s17 = sld [smem:[#allocation16_spill]] }
 0x6be   : > { %v2098_v20 = vld [vmem:[%s5138_s17 + $0x10] sm:$0xff] }
 0x722   : > { %v4001_v59 = vpop.permute.xlu0 %4000 }
 0x723   : > { %v4003_v9 = vunpack.i.h.bf16 %v4001_v59  ;;  %v4002_v38 = vunpack.i.l.bf16 %v4001_v59  ;;  %v2099_v59 = vld [vmem:[%s5138_s17 + $0x18] sm:$0xf] }
 0x725   : > { %v1948_v43 = vsel %vm1772_vm3, %v1582_v8, %v4002_v38  ;;  %v1949_v22 = vsel %vm1772_vm3, %v1583_v21, %v4003_v9  ;;  %v2096_v21 = vld [vmem:[%s5138_s17] sm:$0xff]  ;;  %v2097_v9 = vld [vmem:[%s5138_s17 + $0x8] sm:$0xff] }
 0x726   : > { %v4006_v24 = vpop.permute.xlu1 %4005  ;;  %v1956_v25 = vpack.c.bf16 %v1949_v22, %v1948_v43 }
 0x727   : > { %v4008_v26 = vunpack.i.h.bf16 %v4006_v24  ;;  %v4007_v18 = vunpack.i.l.bf16 %v4006_v24 }
 0x728   : > { %3811 = vmatprep.mubr.msk.bf16.mxu0 %vm1623_vm15, %v1956_v25 }
 0x729   : > { %v1951_v27 = vsel %vm1772_vm3, %v1585_v23, %v4008_v26  ;;  %v1950_v28 = vsel %vm1772_vm3, %v1584_v17, %v4007_v18 }
 0x72a   : > { %v1957_v33 = vpack.c.bf16 %v1951_v27, %v1950_v28  ;;  %v2208_v35 = vpop.permute.xlu1 %2207 }
 0x72b   : > { %v2222_v28 = vsel %vm1623_vm15, %v2208_v35, 0 }
 0x72c   : > { %3812 = vmatmul.mubr.msk.bf16.vlgmr.msra.gmra.mrb[0].mxu0 %vm1623_vm15, %v1957_v33 }
 0x72d   : > { %3822 = vmatpush3.bf16.msra.mxu0 %v2106_v42 }
 0x72e   : > { %3912 = vmatprep.subr.msk.bf16.mxu0 %vm2137_vm0, %v2107_v30 }
 0x731   : > { %3824 = vmatpush3.bf16.msra.mxu0 %v2139_v31 }
 0x732   : > { %3913 = vmatprep.subr.msk.bf16.mxu0 %vm1623_vm15, %v2208_v35  ;;  %v2290_v35 = vld [vmem:[%s5139_s26 + $0x8] sm:$0xff] }
 0x7ff   : > { %v3813_v44 = vpop.f32.mrb[0].mxu0 }
 0x800   : > { %v2017_v39 = vpop.f32.mrb[1].mxu0  ;;  %v2026_v42 = vadd.f32 %v3813_v44, %v3672_v10 }
 0x801   : > { %v3814_v40 = vpop.f32.mrb[2].mxu0  ;;  %v2018_v37 = vadd.f32 %v3672_v10, %v2017_v39 }
 0x802   : > { %v2029_v32 = vadd.f32 %v3814_v40, %v3672_v10  ;;  %v2020_v47 = vpop.f32.mrb[3].mxu0 }
 0x803   : > { %v2021_v48 = vadd.f32 %v3672_v10, %v2020_v47 }
 0x804   : > { %v2034_v60 = vpack.c.bf16 %v2029_v32, %v2026_v42  ;;  %v2293_v42 = vld [vmem:[%s5139_s26 + $0x20] sm:$0xff] }
 0x805   : > { %v2033_v4 = vpack.c.bf16 %v2021_v48, %v2018_v37  ;;  %v2294_v37 = vld [vmem:[%s5139_s26 + $0x28] sm:$0xff] }
 0x807   : > { %3817 = vmatprep.mubr.msk.bf16.mxu1 %vm2036_vm2, %v2033_v4  ;;  %v2296_v4 = vld [vmem:[%s5139_s26 + $0x38] sm:$0xff] }
 0x808   : > { %3818 = vmatmul.mubr.msk.bf16.vlgmr.msra.gmra.mrb[12].mxu1 %vm2036_vm2, %v2034_v60 }
 0x8db   : > { %v3819_v5 = vpop.f32.mrb[12].mxu1 }
 0x8dc   : > { %v2081_v8 = vpop.f32.mrb[13].mxu1  ;;  %v2102_v43 = vmul.f32 %v3819_v5, %v2098_v20 }
 0x8dd   : > { %v3820_v38 = vpop.f32.mrb[14].mxu1  ;;  %v2100_v23 = vmul.f32 %v2096_v21, %v2081_v8 }
 0x8de   : > { %v2103_v22 = vmul.f32 %v3820_v38, %v2099_v59  ;;  %v2084_v17 = vpop.f32.mrb[15].mxu1 }
 0x8df   : > { %v2101_v24 = vmul.f32 %v2097_v9, %v2084_v17 }
 0x8e0   : > { %v2105_v25 = vpack.c.bf16 %v2103_v22, %v2102_v43 }
 0x8e1   : > { %v2104_v26 = vpack.c.bf16 %v2101_v24, %v2100_v23 }
 0x8e3   : > { %2108 = vxpose.xlu1.c.b16.start [1/2] (short) (narrow) %v2104_v26, 64 }
 0x8e7   : > { %2109 = vxpose.xlu1.c.b16.end [2/2] (short) (narrow) %v2105_v25, 64 }
 0x949   : > { %v2116_v18 = vpop.trf.xlu1 }
 0x94a   : > { %3825 = vmatprep.mubr.msk.bf16.mxu0 %vm2124_vm4, %v2116_v18 }
 0x94d   : > { %v2117_v27 = vpop.trf.xlu1 }
 0x94e   : > { %3826 = vmatmul.mubr.msk.bf16.vlgmr.msra.gmra.mrb[4].mxu0 %vm2124_vm4, %v2117_v27 }
 0x94f   : > { %3834 = vmatpush3.bf16.xpose.msra.mxu0 %v2222_v28 }
 0x950   : > { %3899 = vmatprep.subr.bf16.mxu0 %v4567_v36 }
 0x951   : > { %v2118_v30 = vpop.trf.xlu1 }
 0x952   : > { %3829 = vmatprep.mubr.msk.bf16.mxu0 %vm2124_vm4, %v2118_v30 }
 0x955   : > { %v2119_v33 = vpop.trf.xlu1 }
 0x956   : > { %3830 = vmatmul.mubr.msk.bf16.gmra.mrb[8].mxu0 %vm2124_vm4, %v2119_v33 }
 0x957   : > { %3835 = vmatprep.mubr.msk.bf16.mxu0 %vm1623_vm15, %v1676_v6 }
 0x95e   : > { %3836 = vmatmul.mubr.msk.bf16.vlgmr.msra.gmra.mrb[4].mxu0 %vm1623_vm15, %v1677_v16 }
 0x95f   : > { %3839 = vmatprep.mubr.msk.bf16.mxu0 %vm1623_vm15, %v1678_v7  ;;  %3901 = vmatpush3.bf16.msra.mxu0 %v4567_v36 }
 0x960   : > { %3880 = vmatprep.subr.bf16.mxu0 %v4181_v34 }
 0x966   : > { %3840 = vmatmul.mubr.msk.bf16.gmra.mrb[8].mxu0 %vm1623_vm15, %v1679_v19 }
 0xa31   : > { %v3837_v13 = vpop.f32.mrb[4].mxu0 }
 0xa32   : > { %v2299_v16 = vadd.f32 %v3837_v13, %v2291_v61  ;;  %v2258_v6 = vpop.f32.mrb[5].mxu0 }
 0xa33   : > { %v3838_v62 = vpop.f32.mrb[6].mxu0  ;;  %v2297_v14 = vadd.f32 %v2289_v58, %v2258_v6 }
 0xa34   : > { %v2300_v31 = vadd.f32 %v3838_v62, %v2292_v11  ;;  %v2261_v7 = vpop.f32.mrb[7].mxu0  ;;  %v2311_v36 = vsel %vm1772_vm3, %v2299_v16, -inf }
 0xa35   : > { %2312 = vmax.xlane.f32.xlu0 %v2311_v36  ;;  %v2298_v15 = vadd.f32 %v2290_v35, %v2261_v7  ;;  %v2305_v19 = vsel %vm1772_vm3, %v2297_v14, -inf }
 0xa36   : > { %v2314_v3 = vsel %vm1772_vm3, %v2300_v31, -inf }
 0xa37   : > { %2315 = vmax.xlane.f32.xlu1 %v2314_v3  ;;  %v2308_v40 = vsel %vm1772_vm3, %v2298_v15, -inf }
 0xa39   : > { %2306 = vmax.xlane.f32.xlu0 %v2305_v19  ;;  %v3841_v29 = vpop.f32.mrb[8].mxu0 }
 0xa3a   : > { %v2274_v55 = vpop.f32.mrb[9].mxu0  ;;  %v2303_v10 = vadd.f32 %v3841_v29, %v2295_v54 }
 0xa3b   : > { %v3842_v44 = vpop.f32.mrb[10].mxu0  ;;  %v2301_v32 = vadd.f32 %v2293_v42, %v2274_v55 }
 0xa3c   : > { %v2277_v39 = vpop.f32.mrb[11].mxu0  ;;  %v2323_v47 = vsel %vm1772_vm3, %v2303_v10, -inf  ;;  %v2304_v5 = vadd.f32 %v3842_v44, %v2296_v4 }
 0xa3d   : > { %2309 = vmax.xlane.f32.xlu0 %v2308_v40  ;;  %v2302_v48 = vadd.f32 %v2294_v37, %v2277_v39  ;;  %v2317_v60 = vsel %vm1772_vm3, %v2301_v32, -inf  ;;  %v4187_v37 = vmov 1  }
 0xa3e   : > { %v2326_v59 = vsel %vm1772_vm3, %v2304_v5, -inf }
 0xa3f   : > { %v2320_v20 = vsel %vm1772_vm3, %v2302_v48, -inf }
 0xa41   : > { %2324 = vmax.xlane.f32.xlu0 %v2323_v47  ;;  %v4186_v47 = vmov 0  }
 0xa42   : > { %4010 = vset.pattern.permute.xlu1 %v4186_v47  ;;  %4009 = vset.pattern.permute.xlu0 %v4186_v47 }
 0xa45   : > { %2318 = vmax.xlane.f32.xlu0 %v2317_v60 }
 0xa49   : > { %2321 = vmax.xlane.f32.xlu0 %v2320_v20 }
 0xa4d   : > { %2327 = vmax.xlane.f32.xlu0 %v2326_v59 }
 0xac2   : > { %v2313_v8 = vpop.xlane.xlu0 %2312 }
 0xac3   : > { %v2331_v21 = vsub.f32 %v2299_v16, %v2313_v8 }
 0xac4   : > { %v2316_v38 = vpop.xlane.xlu1 %2315 }
 0xac5   : > { %v2341_v9 = vmul.f32 1.442695, %v2331_v21  ;;  %v2332_v17 = vsub.f32 %v2300_v31, %v2316_v38 }
 0xac6   : > { %v2307_v43 = vpop.xlane.xlu0 %2306 }
 0xac7   : > { %4041 = vpow2.f32 %v2341_v9  ;;  %v2329_v22 = vsub.f32 %v2297_v14, %v2307_v43  ;;  %v2343_v26 = vmul.f32 1.442695, %v2332_v17 }
 0xac9   : > { %v2337_v23 = vmul.f32 1.442695, %v2329_v22 }
 0xaca   : > { %v2310_v24 = vpop.xlane.xlu0 %2309 }
 0xacb   : > { %4043 = vpow2.f32 %v2337_v23  ;;  %v2330_v25 = vsub.f32 %v2298_v15, %v2310_v24 }
 0xacd   : > { %v2339_v18 = vmul.f32 1.442695, %v2330_v25 }
 0xace   : > { %v2325_v27 = vpop.xlane.xlu0 %2324 }
 0xacf   : > { %4045 = vpow2.f32 %v2339_v18  ;;  %v2335_v28 = vsub.f32 %v2303_v10, %v2325_v27 }
 0xad0   : > { %4047 = vpow2.f32 %v2343_v26 }
 0xad1   : > { %v4729_v30 = vpop.eup %4041  ;;  %v2349_v33 = vmul.f32 1.442695, %v2335_v28 }
 0xad2   : > { %v2319_v61 = vpop.xlane.xlu0 %2318  ;;  %v2359_v13 = vsel %vm1772_vm3, %v4729_v30, 0.0 }
 0xad3   : > { %4049 = vpow2.f32 %v2349_v33  ;;  %v2333_v58 = vsub.f32 %v2301_v32, %v2319_v61  ;;  %2360 = vadd.xlane.f32.xlu1 %v2359_v13 }
 0xad5   : > { %v4044_v11 = vpop.eup %4043  ;;  %v2345_v16 = vmul.f32 1.442695, %v2333_v58 }
 0xad6   : > { %v2322_v6 = vpop.xlane.xlu0 %2321  ;;  %v2353_v62 = vsel %vm1772_vm3, %v4044_v11, 0.0 }
 0xad7   : > { %4051 = vpow2.f32 %v2345_v16  ;;  %v2334_v14 = vsub.f32 %v2302_v48, %v2322_v6  ;;  %2354 = vadd.xlane.f32.xlu0 %v2353_v62 }
 0xad9   : > { %v4046_v31 = vpop.eup %4045  ;;  %v2347_v7 = vmul.f32 1.442695, %v2334_v14 }
 0xada   : > { %v2328_v36 = vpop.xlane.xlu0 %2327  ;;  %v2356_v35 = vsel %vm1772_vm3, %v4046_v31, 0.0  ;;  %v4048_v3 = vpop.eup %4047 }
 0xadb   : > { %4053 = vpow2.f32 %v2347_v7  ;;  %v2336_v15 = vsub.f32 %v2304_v5, %v2328_v36  ;;  %2357 = vadd.xlane.f32.xlu0 %v2356_v35  ;;  %v2362_v55 = vsel %vm1772_vm3, %v4048_v3, 0.0 }
 0xadd   : > { %v4050_v19 = vpop.eup %4049  ;;  %v2351_v29 = vmul.f32 1.442695, %v2336_v15 }
 0xade   : > { %v2371_v54 = vsel %vm1772_vm3, %v4050_v19, 0.0 }
 0xadf   : > { %4055 = vpow2.f32 %v2351_v29  ;;  %2372 = vadd.xlane.f32.xlu1 %v2371_v54  ;;  %2363 = vadd.xlane.f32.xlu0 %v2362_v55 }
 0xae1   : > { %v4052_v44 = vpop.eup %4051 }
 0xae2   : > { %v2365_v10 = vsel %vm1772_vm3, %v4052_v44, 0.0 }
 0xae3   : > { %2366 = vadd.xlane.f32.xlu1 %v2365_v10 }
 0xae5   : > { %v4054_v39 = vpop.eup %4053 }
 0xae6   : > { %v2368_v40 = vsel %vm1772_vm3, %v4054_v39, 0.0 }
 0xae7   : > { %2369 = vadd.xlane.f32.xlu0 %v2368_v40 }
 0xae9   : > { %v4739_v42 = vpop.eup %4055 }
 0xaea   : > { %v2374_v32 = vsel %vm1772_vm3, %v4739_v42, 0.0 }
 0xaeb   : > { %2375 = vadd.xlane.f32.xlu0 %v2374_v32 }
 0xaf4   : > { %2397 = vrot.lane.b32.xlu1 %v4622_v12, %s4185_s16 }
 0xaf8   : > { %2768 = vperm.xlu1 %4010, %v4386_v1  }
 0xafc   : > { %4011 = vset.pattern.permute.xlu1 %v4187_v37  ;;  %v4018_v37 = vld [vmem:[%s4401_s18 + $0x8] sm:$0xff]  }
 0xafd   : > { %2783 = vperm.xlu1 %4011, %v4383_v0  }
 0xb01   : > { %2787 = vperm.xlu1 %4011, %v4386_v1  }
 0xb05   : > { %4012 = vset.pattern.permute.xlu1 %v4186_v47 }
 0xb06   : > { %2805 = vperm.xlu1 %4012, %v4389_v2  }
 0xb60   : > { %v2361_v60 = vpop.xlane.xlu1 %2360 }
 0xb64   : > { %v2355_v48 = vpop.xlane.xlu0 %2354 }
 0xb65   : > { %4057 = vrcp.f32 %v2355_v48 }
 0xb68   : > { %v2358_v4 = vpop.xlane.xlu0 %2357 }
 0xb69   : > { %4059 = vrcp.f32 %v2358_v4 }
 0xb6a   : > { %4061 = vrcp.f32 %v2361_v60 }
 0xb6c   : > { %v2373_v12 = vpop.xlane.xlu1 %2372  ;;  %v2364_v5 = vpop.xlane.xlu0 %2363 }
 0xb6d   : > { %4063 = vrcp.f32 %v2364_v5 }
 0xb6e   : > { %4065 = vrcp.f32 %v2373_v12 }
 0xb6f   : > { %v4058_v59 = vpop.eup %4057 }
 0xb70   : > { %v2367_v20 = vpop.xlane.xlu1 %2366  ;;  %v2385_v38 = vmul.f32 %v4058_v59, %v4044_v11 }
 0xb71   : > { %4067 = vrcp.f32 %v2367_v20 }
 0xb72   : > { %v2607_v27 = vsel %vm1772_vm3, %v2385_v38, 0.0 }
 0xb73   : > { %v4060_v8 = vpop.eup %4059 }
 0xb74   : > { %v2398_v21 = vpop.permute.xlu1 %2397  ;;  %v2370_v9 = vpop.xlane.xlu0 %2369  ;;  %v2386_v43 = vmul.f32 %v4060_v8, %v4046_v31 }
 0xb75   : > { %v4062_v22 = vpop.eup %4061  ;;  %4069 = vrcp.f32 %v2370_v9  ;;  %3843 = vmatprep.subr.bf16.mxu1 %v2398_v21 }
 0xb76   : > { %3844 = vmatpush3.bf16.msra.mxu1 %v2398_v21  ;;  %v2393_v17 = vpack.c.bf16 %v2386_v43, %v2385_v38  ;;  %v2387_v24 = vmul.f32 %v4062_v22, %v4729_v30  ;;  %v2614_v36 = vsel %vm1772_vm3, %v2386_v43, 0.0 }
 0xb77   : > { %v4064_v23 = vpop.eup %4063 }
 0xb78   : > { %3845 = vmatprep.mubr.msk.bf16.mxu1 %vm1772_vm3, %v2393_v17  ;;  %v2376_v25 = vpop.xlane.xlu0 %2375  ;;  %v4066_v26 = vpop.eup %4065  ;;  %v2388_v18 = vmul.f32 %v4064_v23, %v4048_v3  ;;  %v2608_v58 = vsel %vm1772_vm3, %v2387_v24, 0.0 }
 0xb79   : > { %4071 = vrcp.f32 %v2376_v25  ;;  %v2391_v13 = vmul.f32 %v4066_v26, %v4050_v19  ;;  %v2609_v11 = vadd.f32 %v2608_v58, %v2607_v27  ;;  %v4776_v21 = vpop.permute.xlu1 %2768 }
 0xb7a   : > { %v2394_v33 = vpack.c.bf16 %v2388_v18, %v2387_v24  ;;  %v2615_v62 = vsel %vm1772_vm3, %v2388_v18, 0.0 }
 0xb7b   : > { %v4068_v28 = vpop.eup %4067  ;;  %v2612_v31 = vsel %vm1772_vm3, %v2391_v13, 0.0  ;;  %v2616_v19 = vadd.f32 %v2615_v62, %v2614_v36 }
 0xb7c   : > { %v2389_v61 = vmul.f32 %v4068_v28, %v4052_v44  ;;  %3846 = vmatmul.mubr.msk.bf16.vlgmr.msra.gmra.mrb[16].mxu1 %vm1772_vm3, %v2394_v33 }
 0xb7d   : > { %v4780_v17 = vpop.permute.xlu1 %2783 }
 0xb7e   : > { %v2610_v16 = vsel %vm1772_vm3, %v2389_v61, 0.0 }
 0xb7f   : > { %v4070_v30 = vpop.eup %4069  ;;  %v2611_v6 = vadd.f32 %v2610_v16, %v2609_v11 }
 0xb80   : > { %v2390_v14 = vmul.f32 %v4070_v30, %v4054_v39 }
 0xb81   : > { %v2613_v7 = vadd.f32 %v2612_v31, %v2611_v6  ;;  %v4788_v11 = vpop.permute.xlu1 %2787 }
 0xb82   : > { %v2395_v35 = vpack.c.bf16 %v2390_v14, %v2389_v61  ;;  %v2617_v3 = vsel %vm1772_vm3, %v2390_v14, 0.0 }
 0xb83   : > { %v4072_v15 = vpop.eup %4071  ;;  %v2621_v29 = vmul.f32 0.25, %v2613_v7  ;;  %v2618_v55 = vadd.f32 %v2617_v3, %v2616_v19 }
 0xb84   : > { %3849 = vmatprep.mubr.msk.bf16.mxu1 %vm1772_vm3, %v2395_v35  ;;  %v2392_v54 = vmul.f32 %v4072_v15, %v4739_v42  ;;  %v4017_v42 = vld [vmem:[%s4401_s18] sm:$0xff]   ;;  %s4188_s18 = smov 127  }
 0xb85   : > { %3869 = vmatprep.mubr.msk.f32.mxu0 %vm1772_vm3, %v2621_v29  ;;  %v2623_v44 = vsel %vm1772_vm3, %v2621_v29, 0.0  ;;  %3853 = vmatprep.subr.bf16.mxu1 %v4017_v42 }
 0xb86   : > { %2624 = vadd.xlane.f32.xlu0 %v2623_v44  ;;  %v2396_v10 = vpack.c.bf16 %v2392_v54, %v2391_v13  ;;  %v2619_v39 = vsel %vm1772_vm3, %v2392_v54, 0.0  ;;  %3854 = vmatpush3.bf16.msra.mxu1 %v4017_v42  ;;  %v4815_v42 = vpop.permute.xlu1 %2805 }
 0xb87   : > { %v2620_v40 = vadd.f32 %v2619_v39, %v2618_v55  ;;  %3855 = vmatprep.subr.bf16.mxu1 %v4018_v37 }
 0xb88   : > { %3850 = vmatmul.mubr.msk.bf16.gmra.mrb[20].mxu1 %vm1772_vm3, %v2396_v10 }
 0xb89   : > { %v2622_v32 = vmul.f32 0.25, %v2620_v40 }
 0xb8a   : > { %3856 = vmatpush3.bf16.msra.mxu1 %v4018_v37 }
 0xb8b   : > { %3870 = vmatmul.mubr.msk.f32.vlgmr.msra.gmra.mrb[12].mxu0 %vm1772_vm3, %v2622_v32  ;;  %v2626_v47 = vsel %vm1772_vm3, %v2622_v32, 0.0  ;;  %3872 = vmatprep.subr.bf16.mxu1 %v4181_v34  ;;  %vm2801_vm3 = vcmask 1040384  }
 0xb8c   : > { %2627 = vadd.xlane.f32.xlu0 %v2626_v47  ;;  %3888 = vmatprep.mubr.msk.bf16.mxu0 %vm4182_vm13, %v4181_v34 }
 0xba2   : > { %2763 = vperm.xlu0 %4009, %v4383_v0  }
 0xc13   : > { %v2625_v38 = vpop.xlane.xlu0 %2624 }
 0xc19   : > { %v2628_v22 = vpop.xlane.xlu0 %2627 }
 0xc21   : > { %v4793_v6 = vpop.permute.xlu0 %2763 }
 0xc4f   : > { %v3847_v48 = vpop.f32.mrb[16].mxu1 }
 0xc50   : > { %v2446_v60 = vpop.f32.mrb[17].mxu1  ;;  %v2479_v12 = vmul.f32 %v3847_v48, %v4582_v41 }
 0xc51   : > { %v3848_v4 = vpop.f32.mrb[18].mxu1  ;;  %v2477_v59 = vmul.f32 %v2446_v60, %v4585_v45  ;;  %v2629_v45 = vmul.f32 %v2625_v38, %v4560_v56 }
 0xc52   : > { %v2480_v5 = vmul.f32 %v3848_v4, %v4594_v50  ;;  %v2449_v20 = vpop.f32.mrb[19].mxu1  ;;  %v2630_v50 = vmul.f32 %v2628_v22, %v4563_v57  ;;  %v4819_v4 = vsub.s32 0, %v4596_v51 }
 0xc53   : > { %v2478_v8 = vmul.f32 %v2449_v20, %v4599_v52 }
 0xc54   : > { %v2490_v9 = vpack.c.bf16 %v2480_v5, %v2479_v12  ;;  %v4822_v12 = vsub.s32 1, %v4596_v51 }
 0xc55   : > { %v2489_v43 = vpack.c.bf16 %v2478_v8, %v2477_v59 }
 0xc57   : > { %3857 = vmatprep.mubr.msk.bf16.mxu1 %vm1623_vm15, %v2489_v43 }
 0xc58   : > { %3858 = vmatmul.mubr.msk.bf16.vlgmr.msra.gmra.mrb[24].mxu1 %vm1623_vm15, %v2490_v9 }
 0xc5b   : > { %v3851_v41 = vpop.f32.mrb[20].mxu1 }
 0xc5c   : > { %v2462_v23 = vpop.f32.mrb[21].mxu1  ;;  %v2483_v52 = vmul.f32 %v3851_v41, %v4591_v49 }
 0xc5d   : > { %v3852_v24 = vpop.f32.mrb[22].mxu1  ;;  %v2481_v27 = vmul.f32 %v2462_v23, %v4588_v46 }
 0xc5e   : > { %v2484_v25 = vmul.f32 %v3852_v24, %v4614_v63  ;;  %v2465_v26 = vpop.f32.mrb[23].mxu1  ;;  %v3871_v18 = vpop.f32.mrb[12].mxu0 }
 0xc5f   : > { %v2482_v28 = vmul.f32 %v2465_v26, %v4602_v53  ;;  %v2713_v33 = vsub.f32 %v2630_v50, %v3871_v18  ;;  %v2703_v61 = vpop.f32.mrb[13].mxu0 }
 0xc60   : > { %v2492_v13 = vpack.c.bf16 %v2484_v25, %v2483_v52  ;;  %v2712_v58 = vsub.f32 %v2629_v45, %v2703_v61 }
 0xc61   : > { %v2491_v16 = vpack.c.bf16 %v2482_v28, %v2481_v27  ;;  %v4791_v30 = vadd.f32 %v2713_v33, %v4563_v57 }
 0xc62   : > { %v4796_v49 = vadd.f32 %v2712_v58, %v4560_v56 }
 0xc63   : > { %v2772_v46 = vmul.f32 %v4776_v21, %v4791_v30  ;;  %v2791_v53 = vmul.f32 %v4788_v11, %v4791_v30  ;;  %3861 = vmatprep.mubr.msk.bf16.mxu1 %vm1623_vm15, %v2491_v16 }
 0xc64   : > { %v2790_v63 = vmul.f32 %v4780_v17, %v4796_v49  ;;  %v2771_v57 = vmul.f32 %v4793_v6, %v4796_v49  ;;  %3862 = vmatmul.mubr.msk.bf16.gmra.mrb[28].mxu1 %vm1623_vm15, %v2492_v13 }
 0xc65   : > { %v2774_v62 = vsel %vm1681_vm14, %v2772_v46, 0.0  ;;  %v2793_v56 = vsel %vm1681_vm14, %v2791_v53, 0.0  ;;  %3876 = vmatprep.mubr.msk.bf16.mxu1 %vm4182_vm13, %v4181_v34  ;;  %v3697_v53 = vld [vmem:[%s1168_s22] ss:$0 sm:$0xff]  ;;  %vm2835_vm13 = vcmask 7168   ;;  %s5142_s22 = scalar_lea.vmem %s4359_s12, %s4392_s0 }
 0xc66   : > { %v2792_v14 = vsel %vm1681_vm14, %v2790_v63, 0.0  ;;  %v2773_v31 = vsel %vm1681_vm14, %v2771_v57, 0.0  ;;  %v4097_v57 = vld [vmem:[#allocation2] sm:$0xff] }
 0xc67   : > { %v2794_v7 = vadd.f32 %v2793_v56, %v2792_v14  ;;  %v2775_v36 = vadd.f32 %v2774_v62, %v2773_v31 }
 0xc69   : > { %v2795_v35 = vrot.slane %v2794_v7, 4  ;;  %v2776_v3 = vrot.slane %v2775_v36, 4 }
 0xc6b   : > { %v2796_v15 = vadd.f32 %v2795_v35, %v2794_v7  ;;  %v2777_v19 = vadd.f32 %v2776_v3, %v2775_v36  ;;  %v4098_v7 = vld [vmem:[#allocation2 + $0x8] sm:$0xff] }
 0xc6d   : > { %v2778_v29 = vrot.slane %v2777_v19, 2  ;;  %v2797_v54 = vrot.slane %v2796_v15, 2 }
 0xc6f   : > { %v2779_v55 = vadd.f32 %v2778_v29, %v2777_v19  ;;  %v2798_v44 = vadd.f32 %v2797_v54, %v2796_v15 }
 0xc71   : > { %v2780_v10 = vrot.slane %v2779_v55, 1  ;;  %v2799_v39 = vrot.slane %v2798_v44, 1 }
 0xc73   : > { %v2781_v40 = vadd.f32 %v2780_v10, %v2779_v55  ;;  %v2800_v32 = vadd.f32 %v2799_v39, %v2798_v44 }
 0xc75   : > { %v2802_v47 = vsel %vm2801_vm3, %v2781_v40, %v2800_v32 }
 0xc76   : > { %v2808_v5 = vmul.f32 %v4815_v42, %v2802_v47 }
 0xc78   : > { %v2812_v41 = vrot.slane %v2808_v5, %v4819_v4  ;;  %v2818_v23 = vrot.slane %v2808_v5, %v4822_v12 }
 0xc7a   : > { %v2813_v50 = vmul.f32 %v2812_v41, %v4793_v6  ;;  %v2819_v51 = vmul.f32 %v2818_v23, %v4780_v17  ;;  %v2814_v26 = vmul.f32 %v2812_v41, %v4776_v21  ;;  %v2820_v18 = vmul.f32 %v2818_v23, %v4788_v11 }
 0xc7c   : > { %v4835_v33 = vadd.f32 %v2819_v51, %v2813_v50  ;;  %v4847_v14 = vadd.f32 %v2820_v18, %v2814_v26  ;;  %v4019_v26 = vld [vmem:[%s4411_s28] sm:$0xff]   ;;  %v4020_v18 = vld [vmem:[%s4411_s28 + $0x8] sm:$0xff]  }
 0xc7d   : > { %3873 = vmatpush3.bf16.msra.mxu1 %v4019_v26 }
 0xc7e   : > { %v4845_v56 = vsub.f32 %v4796_v49, %v4835_v33  ;;  %v4854_v19 = vsub.f32 %v4791_v30, %v4847_v14  ;;  %3874 = vmatprep.subr.bf16.mxu1 %v4181_v34 }
 0xc80   : > { %v2825_v15 = vmul.f32 %v4845_v56, %v4845_v56  ;;  %v2826_v54 = vmul.f32 %v4854_v19, %v4854_v19 }
 0xc81   : > { %3875 = vmatpush3.bf16.msra.mxu1 %v4020_v18 }
 0xc82   : > { %v2827_v49 = vsel %vm1681_vm14, %v2825_v15, 0.0  ;;  %v2830_v55 = vsel %vm1681_vm14, %v2826_v54, 0.0  ;;  %v3700_v54 = vld [vmem:[%s1195_s7] ss:$0 sm:$0xff]  ;;  %s5141_s7 = scalar_lea.vmem %s4354_s30, %s4392_s0 }
 0xd2b   : > { %v3859_v37 = vpop.f32.mrb[24].mxu1 }
 0xd2c   : > { %v2583_v48 = vsel %vm1623_vm15, %v3859_v37, 0.0  ;;  %v2551_v60 = vpop.f32.mrb[25].mxu1 }
 0xd2d   : > { %v2582_v20 = vsel %vm1623_vm15, %v2551_v60, 0.0  ;;  %v3860_v59 = vpop.f32.mrb[26].mxu1 }
 0xd2e   : > { %v2584_v8 = vadd.f32 %v2583_v48, %v2582_v20  ;;  %v2590_v9 = vsel %vm1623_vm15, %v3860_v59, 0.0  ;;  %v2554_v38 = vpop.f32.mrb[27].mxu1 }
 0xd2f   : > { %v2589_v43 = vsel %vm1623_vm15, %v2554_v38, 0.0 }
 0xd30   : > { %v2591_v22 = vadd.f32 %v2590_v9, %v2589_v43 }
 0xd37   : > { %v3863_v24 = vpop.f32.mrb[28].mxu1 }
 0xd38   : > { %v2567_v45 = vpop.f32.mrb[29].mxu1  ;;  %v2587_v61 = vsel %vm1623_vm15, %v3863_v24, 0.0 }
 0xd39   : > { %v2585_v52 = vsel %vm1623_vm15, %v2567_v45, 0.0  ;;  %v3864_v25 = vpop.f32.mrb[30].mxu1 }
 0xd3a   : > { %v2586_v27 = vadd.f32 %v2585_v52, %v2584_v8  ;;  %v2570_v28 = vpop.f32.mrb[31].mxu1  ;;  %v2594_v46 = vsel %vm1623_vm15, %v3864_v25, 0.0 }
 0xd3b   : > { %v2592_v13 = vsel %vm1623_vm15, %v2570_v28, 0.0 }
 0xd3c   : > { %v2588_v58 = vadd.f32 %v2587_v61, %v2586_v27  ;;  %v2593_v16 = vadd.f32 %v2592_v13, %v2591_v22 }
 0xd3e   : > { %v2595_v63 = vadd.f32 %v2594_v46, %v2593_v16  ;;  %v2596_v62 = vadd.f32 %v4097_v57, %v2588_v58 }
 0xd40   : > { %v2605_v31 = vadd.f32 %v3697_v53, %v2596_v62  ;;  %v2597_v36 = vadd.f32 %v4098_v7, %v2595_v63 }
 0xd42   : > { %v2718_v35 = vsel %vm1623_vm15, %v2605_v31, 0.0  ;;  %v2606_v3 = vadd.f32 %v3697_v53, %v2597_v36 }
 0xd43   : > { %2719 = vadd.xlane.f32.xlu1 %v2718_v35 }
 0xd44   : > { %v2721_v29 = vsel %vm1623_vm15, %v2606_v3, 0.0 }
 0xd45   : > { %2722 = vadd.xlane.f32.xlu0 %v2721_v29 }
 0xd47   : > { %2828 = vadd.xlane.f32.xlu1 %v2827_v49 }
 0xd4b   : > { %2831 = vadd.xlane.f32.xlu1 %v2830_v55 }
 0xdd0   : > { %v2720_v44 = vpop.xlane.xlu1 %2719 }
 0xdd1   : > { %v2725_v10 = vmul.f32 0.03125, %v2720_v44 }
 0xdd2   : > { %v2723_v39 = vpop.xlane.xlu0 %2722 }
 0xdd3   : > { %v2727_v40 = vsub.f32 %v2605_v31, %v2725_v10  ;;  %v2726_v32 = vmul.f32 0.03125, %v2723_v39  ;;  %v3701_v39 = vld [vmem:[%s1198_s9] ss:$0 sm:$0xff]  ;;  %s4189_s9 = smov 1  }
 0xdd4   : > { %v2829_v30 = vpop.xlane.xlu1 %2828 }
 0xdd5   : > { %v2728_v47 = vsub.f32 %v2606_v3, %v2726_v32  ;;  %v2729_v37 = vmul.f32 %v2727_v40, %v2727_v40  ;;  %v2833_v48 = vmul.f32 %v2829_v30, %v4383_v0 }
 0xdd7   : > { %v2731_v60 = vsel %vm1623_vm15, %v2729_v37, 0.0  ;;  %v2730_v5 = vmul.f32 %v2728_v47, %v2728_v47  ;;  %v2836_v8 = vsel %vm2835_vm13, %v2833_v48, 0.0  ;;  %v2846_v9 = vsel %vm2845_vm5, %v2833_v48, 0.0 }
 0xdd8   : > { %2732 = vadd.xlane.f32.xlu1 %v2731_v60  ;;  %v2832_v20 = vpop.xlane.xlu1 %2831 }
 0xdd9   : > { %v2834_v59 = vmul.f32 %v2832_v20, %v4386_v1  ;;  %v2734_v22 = vsel %vm1623_vm15, %v2730_v5, 0.0 }
 0xddb   : > { %v2837_v38 = vsel %vm2835_vm13, %v2834_v59, 0.0  ;;  %v2847_v43 = vsel %vm2845_vm5, %v2834_v59, 0.0 }
 0xddc   : > { %v2838_v41 = vadd.f32 %v2837_v38, %v2836_v8  ;;  %v2848_v23 = vadd.f32 %v2847_v43, %v2846_v9  ;;  %2735 = vadd.xlane.f32.xlu1 %v2734_v22  ;;  %v4021_v9 = vld [vmem:[%s4417_s13] sm:$0xff]   ;;  %v4022_v38 = vld [vmem:[%s4417_s13 + $0x8] sm:$0xff]   ;;  %v4023_v43 = vld [vmem:[%s4417_s13 + $0x10] sm:$0xff]  }
 0xddd   : > { %3881 = vmatpush3.bf16.msra.mxu0 %v4021_v9  ;;  %v4024_v22 = vld [vmem:[%s4417_s13 + $0x18] sm:$0xff]   ;;  %s5140_s13 = scalar_lea.vmem %s4339_s20, %s4392_s0  ;;  %s5143_s0 = sld [smem:[#allocation31_spill]] }
 0xdde   : > { %v2849_v50 = vrot.slane %v2848_v23, 4  ;;  %v2839_v27 = vrot.slane %v2838_v41, 4  ;;  %3882 = vmatprep.subr.bf16.mxu0 %v4181_v34 }
 0xde0   : > { %v2850_v51 = vadd.f32 %v2849_v50, %v2848_v23  ;;  %v2840_v28 = vadd.f32 %v2839_v27, %v2838_v41 }
 0xde1   : > { %3883 = vmatpush3.bf16.msra.mxu0 %v4022_v38 }
 0xde2   : > { %v2851_v24 = vrot.slane %v2850_v51, 2  ;;  %v2841_v61 = vrot.slane %v2840_v28, 2  ;;  %3884 = vmatprep.subr.bf16.mxu0 %v4181_v34 }
 0xde3   : > { %p3716_p5 = scmp.ne.s32.totalorder %s5143_s0, 2 }
 0xde4   : > { %v2852_v45 = vadd.f32 %v2851_v24, %v2850_v51  ;;  %v2842_v13 = vadd.f32 %v2841_v61, %v2840_v28  ;;  %v3702_v51 = vld [vmem:[%s1184_s1] ss:$0 sm:$0xff]  ;;  %s4191_s28 = smov (!%p3716_p5), 1   ;;  %s4192_s1 = smov (!%p3716_p5), 127   ;;  %vm3423_vm12 = vcmask (!%p3716_p5), 517120  }
 0xde5   : > { %3885 = vmatpush3.bf16.msra.mxu0 %v4023_v43  ;;  %s4194_s23 = smov (!%p3716_p5), 32   ;;  %s5144_s16 = sld [smem:[#allocation29_spill]] (!%p3716_p5) }
 0xde6   : > { %v2853_v52 = vrot.slane %v2852_v45, 1  ;;  %v2843_v53 = vrot.slane %v2842_v13, 1  ;;  %3886 = vmatprep.subr.bf16.mxu0 %v4181_v34 }
 0xde8   : > { %v2854_v25 = vadd.f32 %v2853_v52, %v2852_v45  ;;  %v2844_v31 = vadd.f32 %v2843_v53, %v2842_v13 }
 0xde9   : > { %3887 = vmatpush3.bf16.msra.mxu0 %v4024_v22 }
 0xded   : > { %2856 = vrot.lane.b32.xlu1 %v2854_v25, %s4188_s18 }
 0xe65   : > { %v2733_v58 = vpop.xlane.xlu1 %2732 }
 0xe66   : > { %v2737_v16 = vmul.f32 0.03125, %v2733_v58 }
 0xe68   : > { %v2739_v46 = vadd.f32 1e-05, %v2737_v16 }
 0xe69   : > { %v2736_v63 = vpop.xlane.xlu1 %2735 }
 0xe6a   : > { %4073 = vrsqrt.f32 %v2739_v46  ;;  %v2738_v57 = vmul.f32 0.03125, %v2736_v63 }
 0xe6c   : > { %v2740_v62 = vadd.f32 1e-05, %v2738_v57 }
 0xe6d   : > { %v2857_v7 = vpop.permute.xlu1 %2856 }
 0xe6e   : > { %4075 = vrsqrt.f32 %v2740_v62  ;;  %v2859_v36 = vsel %vm2801_vm3, %v2844_v31, %v2857_v7 }
 0xe6f   : > { %v2860_v35 = vmul.f32 %v2859_v36, %v4389_v2 }
 0xe71   : > { %v2862_v3 = vmul.f32 0.33333334, %v2860_v35 }
 0xe73   : > { %v2863_v15 = vadd.f32 1e-06, %v2862_v3 }
 0xe74   : > { %v4074_v29 = vpop.eup %4073 }
 0xe75   : > { %v2743_v49 = vmul.f32 %v4074_v29, %v2727_v40  ;;  %4077 = vrsqrt.f32 %v2863_v15  ;;  %vm2866_vm6 = vcmp.eq.f32.partialorder %v2863_v15, inf  ;;  %v2869_v5 = vand.u32 2147483648, %v2863_v15 }
 0xe76   : > { %vm2868_vm7 = vcmp.eq.f32.partialorder %v2863_v15, 0.0 }
 0xe77   : > { %v2751_v44 = vmul.f32 %v3700_v54, %v2743_v49 }
 0xe78   : > { %v4076_v55 = vpop.eup %4075 }
 0xe79   : > { %v2744_v10 = vmul.f32 %v4076_v55, %v2728_v47  ;;  %v4881_v30 = vadd.f32 %v3701_v39, %v2751_v44 }
 0xe7b   : > { %v2752_v32 = vmul.f32 %v3700_v54, %v2744_v10 }
 0xe7d   : > { %v4883_v37 = vadd.f32 %v3701_v39, %v2752_v32 }
 0xe7f   : > { %v4078_v48 = vpop.eup %4077  ;;  %v2917_v60 = vpack.c.bf16 %v4883_v37, %v4881_v30 }
 0xe80   : > { %v2865_v40 = vmul.f32 %v4078_v48, %v2863_v15 }
 0xe81   : > { %3877 = vmatmul.mubr.msk.bf16.vlgmr.msra.gmra.mrb[32].mxu1 %vm1623_vm15, %v2917_v60 }
 0xe82   : > { %v2867_v47 = vsel %vm2866_vm6, %v2863_v15, %v2865_v40 }
 0xe83   : > { %v4888_v20 = vsel %vm2868_vm7, %v2869_v5, %v2867_v47 }
 0xe84   : > { %4079 = vrcp.f32 %v4888_v20 }
 0xe8e   : > { %v4080_v59 = vpop.eup %4079 }
 0xe8f   : > { %v2882_v8 = vrot.slane %v4080_v59, %v4822_v12  ;;  %v2876_v57 = vrot.slane %v4080_v59, %v4819_v4 }
 0xe91   : > { %2884 = vrot.lane.b32.xlu0 %v2882_v8, %s4189_s9  ;;  %v2877_v31 = vmul.f32 %v2876_v57, %v4383_v0  ;;  %v2878_v35 = vmul.f32 %v2876_v57, %v4386_v1 }
 0xf03   : > { %v2885_v41 = vpop.permute.xlu0 %2884 }
 0xf04   : > { %v2887_v23 = vmul.f32 %v2885_v41, %v4383_v0  ;;  %v2888_v50 = vmul.f32 %v2885_v41, %v4386_v1 }
 0xf06   : > { %2891 = vrot.lane.b32.xlu1 %v2887_v23, %s4188_s18 }
 0xf0a   : > { %2893 = vrot.lane.b32.xlu1 %v2888_v50, %s4188_s18 }
 0xf54   : > { %v2974_v24 = vpop.f32.mrb[32].mxu1 }
 0xf55   : > { %v2975_v45 = vadd.f32 %v3702_v51, %v2974_v24  ;;  %v3878_v52 = vpop.f32.mrb[33].mxu1 }
 0xf56   : > { %v2977_v25 = vpop.f32.mrb[34].mxu1 }
 0xf57   : > { %v3706_v26 = vmul.f32 -1.442695, %v2975_v45  ;;  %v2978_v18 = vadd.f32 %v3702_v51, %v2977_v25  ;;  %v3879_v34 = vpop.f32.mrb[35].mxu1 }
 0xf59   : > { %4081 = vpow2.f32 %v3706_v26  ;;  %v3707_v27 = vmul.f32 -1.442695, %v2978_v18 }
 0xf5b   : > { %4083 = vpow2.f32 %v3707_v27 }
 0xf63   : > { %v4082_v28 = vpop.eup %4081 }
 0xf64   : > { %v2987_v61 = vadd.f32 1.0, %v4082_v28 }
 0xf65   : > { %v4084_v13 = vpop.eup %4083 }
 0xf66   : > { %4085 = vrcp.f32 %v2987_v61  ;;  %v2988_v58 = vadd.f32 1.0, %v4084_v13 }
 0xf68   : > { %4087 = vrcp.f32 %v2988_v58 }
 0xf70   : > { %v4086_v16 = vpop.eup %4085 }
 0xf71   : > { %v2993_v53 = vmul.f32 %v4086_v16, %v2975_v45 }
 0xf72   : > { %v4088_v46 = vpop.eup %4087 }
 0xf73   : > { %v2994_v63 = vmul.f32 %v4088_v46, %v2978_v18 }
 0xf75   : > { %v3003_v62 = vpack.c.bf16 %v2994_v63, %v2993_v53 }
 0xf77   : > { %3889 = vmatmul.mubr.msk.bf16.vlgmr.msra.gmra.mrb[16].mxu0 %vm3028_vm8, %v3003_v62 }
 0xf78   : > { %v2892_v7 = vpop.permute.xlu1 %2891 }
 0xf79   : > { %v2897_v36 = vadd.f32 %v2892_v7, %v2877_v31 }
 0xf7b   : > { %2901 = vperm.xlu0 %4009, %v2897_v36  }
 0xf7c   : > { %v2894_v3 = vpop.permute.xlu1 %2893 }
 0xf7d   : > { %v2898_v15 = vadd.f32 %v2894_v3, %v2878_v35  ;;  %v3713_v3 = vld [vmem:[%s5140_s13] ss:$0 sm:$0xff] }
 0xf7f   : > { %2906 = vperm.xlu1 %4012, %v2898_v15  }
 0xffa   : > { %v2902_v29 = vpop.permute.xlu0 %2901 }
 0xffb   : > { %v2909_v49 = vmul.f32 %v2902_v29, %v4845_v56 }
 0xffd   : > { %v2911_v54 = vadd.f32 %v2909_v49, %v4835_v33 }
 0xffe   : > { %v2907_v55 = vpop.permute.xlu1 %2906 }
 0xfff   : > { %v2910_v44 = vmul.f32 %v2907_v55, %v4854_v19  ;;  %v3128_v10 = vmul.f32 %v2911_v54, %v4793_v6  ;;  %v3139_v39 = vmul.f32 %v2911_v54, %v4780_v17 }
0x1001   : > { %v2912_v32 = vadd.f32 %v2910_v44, %v4847_v14  ;;  %v3130_v40 = vsel %vm1681_vm14, %v3128_v10, 0.0  ;;  %v3141_v5 = vsel %vm1681_vm14, %v3139_v39, 0.0 }
0x1003   : > { %v3129_v48 = vmul.f32 %v2912_v32, %v4776_v21  ;;  %v3140_v60 = vmul.f32 %v2912_v32, %v4788_v11 }
0x1005   : > { %v3131_v56 = vsel %vm1681_vm14, %v3129_v48, 0.0  ;;  %v3142_v33 = vsel %vm1681_vm14, %v3140_v60, 0.0 }
0x1006   : > { %v3132_v47 = vadd.f32 %v3131_v56, %v3130_v40  ;;  %v3143_v19 = vadd.f32 %v3142_v33, %v3141_v5 }
0x1008   : > { %v3133_v59 = vrot.slane %v3132_v47, 4  ;;  %v3144_v8 = vrot.slane %v3143_v19, 4 }
0x100a   : > { %v3134_v9 = vadd.f32 %v3133_v59, %v3132_v47  ;;  %v3145_v38 = vadd.f32 %v3144_v8, %v3143_v19 }
0x100c   : > { %v3135_v43 = vrot.slane %v3134_v9, 2  ;;  %v3146_v14 = vrot.slane %v3145_v38, 2 }
0x100e   : > { %v3136_v22 = vadd.f32 %v3135_v43, %v3134_v9  ;;  %v3147_v41 = vadd.f32 %v3146_v14, %v3145_v38 }
0x1010   : > { %v3137_v23 = vrot.slane %v3136_v22, 1  ;;  %v3148_v50 = vrot.slane %v3147_v41, 1 }
0x1012   : > { %v3138_v51 = vadd.f32 %v3137_v23, %v3136_v22  ;;  %v3149_v24 = vadd.f32 %v3148_v50, %v3147_v41 }
0x1014   : > { %v3150_v45 = vsel %vm2801_vm3, %v3138_v51, %v3149_v24 }
0x1015   : > { %v3151_v52 = vmul.f32 %v3150_v45, %v4815_v42 }
0x1017   : > { %v3155_v25 = vrot.slane %v3151_v52, %v4819_v4  ;;  %v3161_v26 = vrot.slane %v3151_v52, %v4822_v12 }
0x1019   : > { %v3157_v18 = vmul.f32 %v3155_v25, %v4776_v21  ;;  %v3163_v34 = vmul.f32 %v3161_v26, %v4788_v11  ;;  %v3156_v27 = vmul.f32 %v3155_v25, %v4793_v6  ;;  %v3162_v28 = vmul.f32 %v3161_v26, %v4780_v17 }
0x101b   : > { %v4930_v61 = vadd.f32 %v3163_v34, %v3157_v18  ;;  %v4932_v13 = vadd.f32 %v3162_v28, %v3156_v27 }
0x101d   : > { %v4935_v58 = vsub.f32 %v2912_v32, %v4930_v61  ;;  %v4938_v16 = vsub.f32 %v2911_v54, %v4932_v13 }
0x101f   : > { %v3169_v46 = vmul.f32 %v4935_v58, %v4935_v58  ;;  %v3168_v53 = vmul.f32 %v4938_v16, %v4938_v16 }
0x1021   : > { %v3173_v63 = vsel %vm1681_vm14, %v3169_v46, 0.0  ;;  %v3170_v57 = vsel %vm1681_vm14, %v3168_v53, 0.0 }
0x1022   : > { %3174 = vadd.xlane.f32.xlu1 %v3173_v63  ;;  %3171 = vadd.xlane.f32.xlu0 %v3170_v57 }
0x104a   : > { %v3066_v62 = vpop.f32.mrb[16].mxu0 }
0x104b   : > { %v3890_v31 = vpop.f32.mrb[17].mxu0  ;;  %v3073_v19 = vadd.f32 %v3066_v62, %v4881_v30  ;;  %v1586_v30 = vld [vmem:[#allocation4] sm:$0x3] }
0x104c   : > { %v3069_v7 = vpop.f32.mrb[18].mxu0  ;;  %v3253_v18 = vmul.f32 %v4888_v20, %v1586_v30 }
0x104d   : > { %v3074_v36 = vadd.f32 %v3069_v7, %v4883_v37  ;;  %v3891_v35 = vpop.f32.mrb[19].mxu0  ;;  %v3082_v59 = vadd.f32 %v3713_v3, %v3073_v19  ;;  %v3715_v19 = vld [vmem:[%s5142_s22] ss:$0 sm:$0xff] }
0x104f   : > { %v4950_v15 = vadd.f32 %v3713_v3, %v3074_v36  ;;  %v3086_v8 = vsel %vm1623_vm15, %v3082_v59, 0.0 }
0x1051   : > { %v3089_v53 = vsel %vm1623_vm15, %v4950_v15, 0.0 }
0x10af   : > { %v3175_v29 = vpop.xlane.xlu1 %3174  ;;  %v3172_v49 = vpop.xlane.xlu0 %3171 }
0x10b0   : > { %v3177_v54 = vmul.f32 %v3175_v29, %v4386_v1  ;;  %v3176_v55 = vmul.f32 %v3172_v49, %v4383_v0 }
0x10b2   : > { %v3179_v44 = vsel %vm2835_vm13, %v3177_v54, 0.0  ;;  %v3188_v10 = vsel %vm2845_vm5, %v3177_v54, 0.0  ;;  %v3178_v39 = vsel %vm2835_vm13, %v3176_v55, 0.0  ;;  %v3187_v32 = vsel %vm2845_vm5, %v3176_v55, 0.0 }
0x10b3   : > { %v3180_v37 = vadd.f32 %v3179_v44, %v3178_v39  ;;  %v3189_v48 = vadd.f32 %v3188_v10, %v3187_v32 }
0x10b5   : > { %v3190_v60 = vrot.slane %v3189_v48, 4  ;;  %v3181_v9 = vrot.slane %v3180_v37, 4 }
0x10b7   : > { %v3191_v40 = vadd.f32 %v3190_v60, %v3189_v48  ;;  %v3182_v38 = vadd.f32 %v3181_v9, %v3180_v37 }
0x10b9   : > { %v3192_v5 = vrot.slane %v3191_v40, 2  ;;  %v3183_v43 = vrot.slane %v3182_v38, 2 }
0x10bb   : > { %v3193_v56 = vadd.f32 %v3192_v5, %v3191_v40  ;;  %v3184_v14 = vadd.f32 %v3183_v43, %v3182_v38 }
0x10bd   : > { %v3194_v33 = vrot.slane %v3193_v56, 1  ;;  %v3185_v22 = vrot.slane %v3184_v14, 1 }
0x10bf   : > { %v3195_v47 = vadd.f32 %v3194_v33, %v3193_v56  ;;  %v3186_v41 = vadd.f32 %v3185_v22, %v3184_v14  ;;  %v3714_v33 = vld [vmem:[%s5141_s7] ss:$0 sm:$0xff] }
0x10c1   : > { %3197 = vrot.lane.b32.xlu0 %v3195_v47, %s4188_s18 }
0x10e0   : > { %3087 = vadd.xlane.f32.xlu0 %v3086_v8 }
0x1133   : > { %v3198_v23 = vpop.permute.xlu0 %3197 }
0x1134   : > { %v3200_v50 = vsel %vm2801_vm3, %v3186_v41, %v3198_v23 }
0x1135   : > { %v3201_v51 = vmul.f32 %v3200_v50, %v4389_v2 }
0x1137   : > { %v3202_v24 = vmul.f32 0.33333334, %v3201_v51 }
0x1139   : > { %v3203_v45 = vadd.f32 1e-06, %v3202_v24 }
0x113b   : > { %4089 = vrsqrt.f32 %v3203_v45  ;;  %vm3206_vm9 = vcmp.eq.f32.partialorder %v3203_v45, inf  ;;  %v3209_v26 = vand.u32 2147483648, %v3203_v45  ;;  %vm3208_vm10 = vcmp.eq.f32.partialorder %v3203_v45, 0.0 }
0x1145   : > { %v4090_v52 = vpop.eup %4089 }
0x1146   : > { %v3205_v25 = vmul.f32 %v4090_v52, %v3203_v45 }
0x1148   : > { %v3207_v34 = vsel %vm3206_vm9, %v3203_v45, %v3205_v25  ;;  %v4190_v25 = vmov (!%p3716_p5), 0  }
0x1149   : > { %v3210_v27 = vsel %vm3208_vm10, %v3209_v26, %v3207_v34 }
0x114a   : > { %4091 = vrcp.f32 %v3210_v27  ;;  %v3254_v28 = vmul.f32 %v3253_v18, %v3210_v27 }
0x114c   : > { %3260 = vst.msk [vmem:[#allocation4] sm:$0x3] %vm3259_vm11, %v3254_v28 }
0x1154   : > { %v4092_v46 = vpop.eup %4091 }
0x1155   : > { %v3222_v2 = vrot.slane %v4092_v46, %v4822_v12  ;;  %v3216_v44 = vrot.slane %v4092_v46, %v4819_v4  ;;  %v4193_v46 = vmov (!%p3716_p5), 1  }
0x1157   : > { %3224 = vrot.lane.b32.xlu1 %v3222_v2, %s4189_s9  ;;  %v3217_v10 = vmul.f32 %v3216_v44, %v4383_v0  ;;  %v3218_v39 = vmul.f32 %v3216_v44, %v4386_v1 }
0x116d   : > { %v3088_v62 = vpop.xlane.xlu0 %3087 }
0x116e   : > { %v3092_v31 = vmul.f32 0.03125, %v3088_v62 }
0x1170   : > { %v3094_v7 = vsub.f32 %v3082_v59, %v3092_v31 }
0x1172   : > { %v3096_v36 = vmul.f32 %v3094_v7, %v3094_v7 }
0x1174   : > { %v3098_v35 = vsel %vm1623_vm15, %v3096_v36, 0.0 }
0x117b   : > { %3090 = vadd.xlane.f32.xlu1 %v3089_v53 }
0x11c9   : > { %v3225_v63 = vpop.permute.xlu1 %3224 }
0x11ca   : > { %v3227_v57 = vmul.f32 %v3225_v63, %v4383_v0  ;;  %v3228_v20 = vmul.f32 %v3225_v63, %v4386_v1 }
0x11cc   : > { %3233 = vrot.lane.b32.xlu1 %v3228_v20, %s4188_s18  ;;  %3231 = vrot.lane.b32.xlu0 %v3227_v57, %s4188_s18 }
0x11eb   : > { %3099 = vadd.xlane.f32.xlu0 %v3098_v35 }
0x1208   : > { %v3091_v3 = vpop.xlane.xlu1 %3090 }
0x1209   : > { %v3093_v29 = vmul.f32 0.03125, %v3091_v3 }
0x120b   : > { %v3095_v49 = vsub.f32 %v4950_v15, %v3093_v29 }
0x120d   : > { %v3097_v54 = vmul.f32 %v3095_v49, %v3095_v49 }
0x120f   : > { %v3101_v55 = vsel %vm1623_vm15, %v3097_v54, 0.0 }
0x1210   : > { %3102 = vadd.xlane.f32.xlu1 %v3101_v55 }
0x123e   : > { %v3232_v32 = vpop.permute.xlu0 %3231  ;;  %v3234_v37 = vpop.permute.xlu1 %3233 }
0x123f   : > { %v3237_v48 = vadd.f32 %v3232_v32, %v3217_v10  ;;  %v3238_v60 = vadd.f32 %v3234_v37, %v3218_v39 }
0x1241   : > { %3246 = vperm.xlu1 %4012, %v3238_v60   ;;  %3241 = vperm.xlu0 %4009, %v3237_v48  }
0x1245   : > { %4099 = vset.pattern.permute.xlu1 (!%p3716_p5), %v4190_v25  ;;  %4100 = vset.pattern.permute.xlu0 (!%p3716_p5), %v4190_v25 }
0x1278   : > { %v3100_v15 = vpop.xlane.xlu0 %3099 }
0x1279   : > { %v3104_v40 = vmul.f32 0.03125, %v3100_v15 }
0x127b   : > { %v3106_v5 = vadd.f32 1e-05, %v3104_v40 }
0x127d   : > { %4093 = vrsqrt.f32 %v3106_v5 }
0x1287   : > { %v4094_v56 = vpop.eup %4093 }
0x1288   : > { %v3110_v47 = vmul.f32 %v4094_v56, %v3094_v7 }
0x128a   : > { %v3118_v59 = vmul.f32 %v3714_v33, %v3110_v47 }
0x128c   : > { %v4984_v8 = vadd.f32 %v3715_v19, %v3118_v59 }
0x128e   : > { %3255 = vst.msk [vmem:[#allocation2] sm:$0xff] %vm1623_vm15, %v4984_v8  ;;  %v3349_v2 = vmul.f32 (!%p3716_p5), %v4984_v8, %v4793_v6  ;;  %v3360_v63 = vmul.f32 (!%p3716_p5), %v4984_v8, %v4780_v17 }
0x1290   : > { %v3351_v20 = vsel (!%p3716_p5), %vm1623_vm15, %v3349_v2, 0.0  ;;  %v3362_v31 = vsel (!%p3716_p5), %vm1623_vm15, %v3360_v63, 0.0 }
0x129d   : > { %v3103_v9 = vpop.xlane.xlu1 %3102 }
0x129e   : > { %v3105_v38 = vmul.f32 0.03125, %v3103_v9 }
0x12a0   : > { %v3107_v43 = vadd.f32 1e-05, %v3105_v38 }
0x12a2   : > { %4095 = vrsqrt.f32 %v3107_v43 }
0x12a3   : > { %4104 = vrcp.f32 (!%p3716_p5), %v3254_v28 }
0x12ac   : > { %v4096_v14 = vpop.eup %4095 }
0x12ad   : > { %v3111_v22 = vmul.f32 %v4096_v14, %v3095_v49 }
0x12af   : > { %v3119_v41 = vmul.f32 %v3714_v33, %v3111_v22 }
0x12b1   : > { %v4988_v23 = vadd.f32 %v3715_v19, %v3119_v41 }
0x12b3   : > { %3256 = vst.msk [vmem:[#allocation2 + $0x8] sm:$0xff] %vm1623_vm15, %v4988_v23  ;;  %v3350_v53 = vmul.f32 (!%p3716_p5), %v4988_v23, %v4776_v21  ;;  %v3361_v57 = vmul.f32 (!%p3716_p5), %v4988_v23, %v4788_v11 }
0x12b5   : > { %v3352_v62 = vsel (!%p3716_p5), %vm1623_vm15, %v3350_v53, 0.0  ;;  %v3363_v7 = vsel (!%p3716_p5), %vm1623_vm15, %v3361_v57, 0.0 }
0x12b6   : > { %v3353_v36 = vadd.f32 (!%p3716_p5), %v3352_v62, %v3351_v20  ;;  %v3364_v35 = vadd.f32 (!%p3716_p5), %v3363_v7, %v3362_v31 }
0x12b8   : > { %v3354_v3 = vrot.slane (!%p3716_p5), %v3353_v36, 4  ;;  %v3365_v29 = vrot.slane (!%p3716_p5), %v3364_v35, 4 }
0x12ba   : > { %v3355_v49 = vadd.f32 (!%p3716_p5), %v3354_v3, %v3353_v36  ;;  %v3366_v54 = vadd.f32 (!%p3716_p5), %v3365_v29, %v3364_v35 }
0x12bc   : > { %v3356_v55 = vrot.slane (!%p3716_p5), %v3355_v49, 2  ;;  %v3367_v44 = vrot.slane (!%p3716_p5), %v3366_v54, 2 }
0x12be   : > { %v3357_v10 = vadd.f32 (!%p3716_p5), %v3356_v55, %v3355_v49  ;;  %v3368_v39 = vadd.f32 (!%p3716_p5), %v3367_v44, %v3366_v54 }
0x12bf   : > { %3264 = sbr.rel (%p3716_p5) target bundleno = 5173 (0x1435), region = 156 }
0x12c0   : > { %v3247_v50 = vpop.permute.xlu1 %3246  ;;  %v3242_v51 = vpop.permute.xlu0 %3241  ;;  %v3358_v32 = vrot.slane (!%p3716_p5), %v3357_v10, 1  ;;  %v3369_v37 = vrot.slane (!%p3716_p5), %v3368_v39, 1 }
0x12c1   : > { %v3250_v24 = vmul.f32 %v3247_v50, %v4935_v58  ;;  %v3249_v45 = vmul.f32 %v3242_v51, %v4938_v16  ;;  %v4105_v58 = vpop.eup (!%p3716_p5), %4104  ;;  %v3374_v16 = vsub.f32 (!%p3716_p5), 1.0, %v4386_v1 }
0x12c2   : > { %v3310_v48 = vrot.slane (!%p3716_p5), %v4105_v58, %v4819_v4  ;;  %v3359_v60 = vadd.f32 (!%p3716_p5), %v3358_v32, %v3357_v10  ;;  %v3370_v15 = vadd.f32 (!%p3716_p5), %v3369_v37, %v3368_v39 }
0x12c3   : > { %v4995_v52 = vadd.f32 %v3250_v24, %v4930_v61  ;;  %v4998_v30 = vadd.f32 %v3249_v45, %v4932_v13  ;;  %v3316_v61 = vrot.slane (!%p3716_p5), %v4105_v58, %v4822_v12  ;;  %v3373_v13 = vsub.f32 (!%p3716_p5), 1.0, %v4383_v0 }
0x12c4   : > { %v3376_v28 = vmul.f32 (!%p3716_p5), -1e+30, %v3374_v16  ;;  %v3312_v40 = vmul.f32 (!%p3716_p5), %v3310_v48, %v4386_v1  ;;  %v3311_v5 = vmul.f32 (!%p3716_p5), %v3310_v48, %v4383_v0  ;;  %v3371_v47 = vsel (!%p3716_p5), %vm2801_vm3, %v3359_v60, %v3370_v15 }
0x12c5   : > { %3258 = vst.msk [vmem:[#allocation3 + $0x8] sm:$0xff] %vm1681_vm14, %v4995_v52  ;;  %3257 = vst.msk [vmem:[#allocation3] sm:$0xff] %vm1681_vm14, %v4998_v30  ;;  %3318 = vrot.lane.b32.xlu0 (!%p3716_p5), %v3316_v61, %s4191_s28  ;;  %v3375_v27 = vmul.f32 (!%p3716_p5), -1e+30, %v3373_v13  ;;  %v3372_v9 = vmul.f32 (!%p3716_p5), %v3371_v47, %v4815_v42  ;;  %v3265_v38 = vmul.f32 (!%p3716_p5), %v4998_v30, %v4793_v6 }
0x12c6   : > { %v3277_v43 = vmul.f32 %v4995_v52, %v4788_v11 }
0x12c7   : > { %v3267_v14 = vsel %vm1681_vm14, %v3265_v38, 0.0 }
0x12c8   : > { %v3279_v50 = vsel %vm1681_vm14, %v3277_v43, 0.0 }
0x1337   : > { %v3319_v26 = vpop.permute.xlu0 %3318 }
0x1338   : > { %v3321_v18 = vmul.f32 %v3319_v26, %v4383_v0  ;;  %v3322_v34 = vmul.f32 %v3319_v26, %v4386_v1  ;;  %v3266_v1 = vmul.f32 %v4995_v52, %v4776_v21  ;;  %v3276_v0 = vmul.f32 %v4998_v30, %v4780_v17 }
0x133a   : > { %3327 = vrot.lane.b32.xlu1 %v3322_v34, %s4192_s1  ;;  %3325 = vrot.lane.b32.xlu0 %v3321_v18, %s4192_s1  ;;  %v3268_v22 = vsel %vm1681_vm14, %v3266_v1, 0.0  ;;  %v3278_v41 = vsel %vm1681_vm14, %v3276_v0, 0.0 }
0x133b   : > { %v3269_v51 = vadd.f32 %v3268_v22, %v3267_v14  ;;  %v3280_v24 = vadd.f32 %v3279_v50, %v3278_v41 }
0x133d   : > { %v3281_v58 = vrot.slane %v3280_v24, 4 }
0x133e   : > { %3379 = vperm.xlu1 %4099, %v3375_v27   ;;  %3384 = vperm.xlu0 %4100, %v3376_v28  }
0x133f   : > { %v3282_v13 = vadd.f32 %v3281_v58, %v3280_v24 }
0x1341   : > { %v3283_v18 = vrot.slane %v3282_v13, 2 }
0x1342   : > { %4101 = vset.pattern.permute.xlu1 %v4193_v46 }
0x1343   : > { %3399 = vperm.xlu1 %4101, %v3375_v27  }
0x1347   : > { %3403 = vperm.xlu1 %4101, %v3376_v28  }
0x134b   : > { %4102 = vset.pattern.permute.xlu1 %v4190_v25  ;;  %v3270_v25 = vrot.slane %v3269_v51, 4 }
0x134d   : > { %v3271_v61 = vadd.f32 %v3270_v25, %v3269_v51 }
0x134f   : > { %v3272_v26 = vrot.slane %v3271_v61, 2 }
0x1351   : > { %v3273_v28 = vadd.f32 %v3272_v26, %v3271_v61 }
0x1353   : > { %v3274_v20 = vrot.slane %v3273_v28, 1 }
0x1355   : > { %v3275_v3 = vadd.f32 %v3274_v20, %v3273_v28 }
0x13ac   : > { %v3328_v56 = vpop.permute.xlu1 %3327  ;;  %v3326_v33 = vpop.permute.xlu0 %3325 }
0x13ad   : > { %v3332_v19 = vadd.f32 %v3328_v56, %v3312_v40  ;;  %v3331_v59 = vadd.f32 %v3326_v33, %v3311_v5 }
0x13af   : > { %3340 = vperm.xlu1 %4102, %v3332_v19   ;;  %3335 = vperm.xlu0 %4100, %v3331_v59  }
0x13b3   : > { %3419 = vrot.lane.b32.xlu0 %v3372_v9, %s4194_s23 }
0x13b4   : > { %4103 = vset.pattern.permute.xlu0 %v4193_v46  ;;  %v3284_v46 = vadd.f32 %v3283_v18, %v3282_v13 }
0x13b6   : > { %v3285_v62 = vrot.slane %v3284_v46, 1 }
0x13b8   : > { %v3286_v29 = vadd.f32 %v3285_v62, %v3284_v46 }
0x13bd   : > { %v3380_v45 = vpop.permute.xlu1 %3379  ;;  %v3385_v27 = vpop.permute.xlu0 %3384 }
0x13be   : > { %v3387_v2 = vadd.f32 %v3380_v45, %v4984_v8  ;;  %v3388_v57 = vadd.f32 %v3385_v27, %v4988_v23 }
0x13c0   : > { %v3389_v31 = vsel %vm1623_vm15, %v3387_v2, -inf  ;;  %v3390_v35 = vsel %vm1623_vm15, %v3388_v57, -inf }
0x13c1   : > { %v3391_v54 = vmax.f32 %v3389_v31, %v3390_v35 }
0x13c2   : > { %v3400_v16 = vpop.permute.xlu1 %3399 }
0x13c3   : > { %v3406_v53 = vadd.f32 %v3400_v16, %v4984_v8  ;;  %v3287_v8 = vsel %vm2801_vm3, %v3275_v3, %v3286_v29  ;;  %v3392_v44 = vrot.slane %v3391_v54, 4 }
0x13c5   : > { %v3408_v7 = vsel %vm1623_vm15, %v3406_v53, -inf  ;;  %v3393_v39 = vmax.f32 %v3391_v54, %v3392_v44 }
0x13c6   : > { %v3404_v34 = vpop.permute.xlu1 %3403 }
0x13c7   : > { %v3407_v63 = vadd.f32 %v3404_v34, %v4988_v23  ;;  %v3288_v23 = vmul.f32 %v3287_v8, %v4815_v42  ;;  %v3394_v60 = vrot.slane %v3393_v39, 2 }
0x13c9   : > { %v3409_v36 = vsel %vm1623_vm15, %v3407_v63, -inf  ;;  %v3292_v32 = vrot.slane %v3288_v23, %v4819_v4  ;;  %v3298_v37 = vrot.slane %v3288_v23, %v4822_v12  ;;  %v3395_v33 = vmax.f32 %v3393_v39, %v3394_v60 }
0x13ca   : > { %v3410_v49 = vmax.f32 %v3408_v7, %v3409_v36 }
0x13cb   : > { %v3294_v15 = vmul.f32 %v3292_v32, %v4776_v21  ;;  %v3300_v40 = vmul.f32 %v3298_v37, %v4788_v11  ;;  %v3293_v5 = vmul.f32 %v3292_v32, %v4793_v6  ;;  %v3299_v56 = vmul.f32 %v3298_v37, %v4780_v17 }
0x13cc   : > { %v3411_v55 = vrot.slane %v3410_v49, 4  ;;  %v3396_v59 = vrot.slane %v3395_v33, 1 }
0x13cd   : > { %v3302_v19 = vadd.f32 %v3300_v40, %v3294_v15  ;;  %v3301_v42 = vadd.f32 %v3299_v56, %v3293_v5 }
0x13ce   : > { %v3412_v10 = vmax.f32 %v3410_v49, %v3411_v55  ;;  %v3397_v1 = vmax.f32 %v3395_v33, %v3396_v59 }
0x13cf   : > { %v3304_v12 = vsub.f32 %v4995_v52, %v3302_v19  ;;  %v3303_v9 = vsub.f32 %v4998_v30, %v3301_v42 }
0x13d0   : > { %v3413_v48 = vrot.slane %v3412_v10, 2 }
0x13d2   : > { %v3414_v47 = vmax.f32 %v3412_v10, %v3413_v48 }
0x13d4   : > { %v3415_v4 = vrot.slane %v3414_v47, 1 }
0x13d6   : > { %v3416_v11 = vmax.f32 %v3414_v47, %v3415_v4 }
0x13d8   : > { %v3417_v14 = vsel %vm2801_vm3, %v3397_v1, %v3416_v11 }
0x142e   : > { %v3341_v38 = vpop.permute.xlu1 %3340  ;;  %v3336_v21 = vpop.permute.xlu0 %3335 }
0x142f   : > { %v3344_v0 = vmul.f32 %v3341_v38, %v3304_v12  ;;  %v3343_v6 = vmul.f32 %v3336_v21, %v3303_v9 }
0x1431   : > { %v3346_v43 = vadd.f32 %v3344_v0, %v3302_v19  ;;  %v3345_v17 = vadd.f32 %v3343_v6, %v3301_v42 }
0x1432   : > { %v3420_v22 = vpop.permute.xlu0 %3419 }
0x1433   : > { %3348 = vst.msk [vmem:[%s5144_s16 + $0x8] sm:$0xff] %vm1681_vm14, %v3346_v43  ;;  %3347 = vst.msk [vmem:[%s5144_s16] sm:$0xff] %vm1681_vm14, %v3345_v17  ;;  %v3422_v52 = vsel %vm1623_vm15, %v3417_v14, %v3420_v22 }
0x1434   : > { %3424 = vst.msk [vmem:[#allocation6] sm:$0x3] %vm3423_vm12, %v3422_v52 }
0x1435 PF: > { %s5145_s18 = sld [smem:[#allocation31_spill]]  ;;  %s4195_s9 = smov [#allocation6]  }
0x1436   : > { %s3432_s13 = sshll.u32 %s4195_s9, 4  ;;  %s3433_s13 = int_to_ptr.vmem [resolvable:$true] %s3432_s13 }
0x1437   : > { %s4106_s7 = scalar_lea.vmem %s3433_s13, 32  ;;  %p4113_p10 = scmp.lt.s32.totalorder %s3433_s13, %s3433_s13 }
0x1438   : > { %p4107_p7 = scmp.ne.s32.totalorder %s3433_s13, %s4106_s7  ;;  %p4114_p11 = scmp.lt.s32.totalorder %s4106_s7, %s4106_s7 }
0x143a   : > { %p4115_p12 = por %p4114_p11, %p4113_p10 }
0x143b   : > { %p3918_p6 = scmp.eq.s32.totalorder %s5145_s18, 2 }
0x143d   : > { %p4108_p8 = pnand %p4107_p7, %p3918_p6 }
0x143f   : > { %p4109_p9 = pneg %p4108_p8 }
0x1441   : > { %p4116_p13 = pnand %p4115_p12, %p4109_p9 }
0x1443   : > { %4119 = shalt.err (!%p4116_p13)
}
0x1444   : > { %s5146_s22 = sld [smem:[#allocation28_spill]] }
0x144a   : > { %s4120_s0 = scalar_lea.hbm %s5146_s22, 32 }
0x144b   : > { %p4121_p0 = scmp.ne.s32.totalorder %s5146_s22, %s4120_s0  ;;  %p4126_p3 = scmp.lt.u32.totalorder %s4120_s0, %s5146_s22 }
0x144d   : > { %p4122_p1 = pnand %p4121_p0, %p3918_p6 }
0x144f   : > { %p4123_p2 = pneg %p4122_p1 }
0x1451   : > { %p4128_p4 = pnand %p4126_p3, %p4123_p2 }
0x1453   : > { %4131 = shalt.err (!%p4128_p4)
}
0x1454   : > { %3915 = dma.vmem_to_hbm [thread:$0]  (%p3918_p6), %s3433_s13, 32, %s5146_s22, [#allocation7]  }
0x1455   : > { %4137 = dma.done.wait (%p3918_p6), [#allocation7], 32  }
0x1456   : > { %4139 = vsyncadd (%p3918_p6), [#allocation7], 4294967264 }
0x1457 PF: > { %s5147_s28 = sld [smem:[#allocation30_spill]] }
0x145d   : > { %s79_s7 = sadd.s32 1, %s5147_s28  }
0x145e   : > { %p76_p5 = scmp.ge.s32.totalorder %s79_s7, 5  }
0x1460   :  { %78 = sbr.rel (!%p76_p5) target bundleno = 61 (0x3d), region = 263 }
0x1467   :  { %3451 = vsyncpa [#allocation7], 1 }
0x1468   :  { %3453 = vsyncpa [#allocation7 + $0x1], 1 }

</bundles_post_ra>
